<compile_context>
chip_gen: v7x
topology: tpu7x:2x2x1
jax: 0.10.0
libtpu: 0.0.40
codegen_flags: <defaults>
</compile_context>

<pallas_src>
import functools
import math

import jax
import jax.numpy as jnp
from jax.experimental import pallas as pl
from jax.experimental.pallas import tpu as pltpu


_COMPUTE_DTYPE = jnp.bfloat16   # MXU operand dtype; accumulation stays f32.


# ----------------------------- Pallas kernels ------------------------------ #

def _linear_kernel(x_ref, w_ref, b_ref, o_ref):
    # x: (tm, K) f32, w: (K, N) bf16 (pre-cast), b: (1, N) f32 -> o: (tm, N)
    acc = jnp.dot(x_ref[...].astype(_COMPUTE_DTYPE), w_ref[...],
                  preferred_element_type=jnp.float32)
    o_ref[...] = (acc + b_ref[...]).astype(o_ref.dtype)


def _ln_highway_kernel(c_ref, x_ref, g_ref, b_ref, w_ref, hb_ref, o_ref, *, eps):
    # Fused: att_Hx = LayerNorm(context);  res_0 = Highway(x, att_Hx)
    # BERT-pytorch LayerNorm: unbiased std, divide by (std + eps).
    c = c_ref[...]
    x = x_ref[...]
    mean = jnp.mean(c, axis=-1, keepdims=True)
    var = jnp.sum((c - mean) ** 2, axis=-1, keepdims=True) / (c.shape[-1] - 1)
    inv = pl.reciprocal(jnp.sqrt(var) + eps, approx=True)
    y = g_ref[...] * (c - mean) * inv + b_ref[...]
    gate = jax.nn.sigmoid(
        jnp.dot(x.astype(_COMPUTE_DTYPE), w_ref[...],          # w pre-cast bf16
                preferred_element_type=jnp.float32) + hb_ref[...])
    o_ref[...] = gate * y + (1.0 - gate) * x


def _attn_kernel(qkv_ref, m_ref, ctx_ref, attn_ref, *, nh, dv):
    # One batch per grid step, heads unrolled (nh is small).
    # qkv: (1, S, 3H) bf16 (softmax scale already folded into wq/bq),
    # m:   (1, S, S) f32 {0,1} mask -> single additive bias shared by all heads.
    # ctx written lane-dense as (1, S, H); attn emitted bf16.
    # TODO(synk): for S beyond ~1k switch to KV-tiled online softmax (flash-style)
    # so the O(S^2) scores never sit whole in VMEM.
    qkv = qkv_ref[0]                                    # (S, 3H) bf16
    bias = (m_ref[0] - 1.0) * 1e9                       # (S, S) f32, once per batch
    h_all = nh * dv
    ctx_parts = []
    for h in range(nh):
        q = qkv[:, h * dv:(h + 1) * dv]
        k = qkv[:, h_all + h * dv:h_all + (h + 1) * dv]
        v = qkv[:, 2 * h_all + h * dv:2 * h_all + (h + 1) * dv]
        s = jax.lax.dot_general(q, k, (((1,), (1,)), ((), ())),
                                preferred_element_type=jnp.float32) + bias
        s = s - jnp.max(s, axis=-1, keepdims=True)
        p = jnp.exp(s)
        p = p * pl.reciprocal(jnp.sum(p, axis=-1, keepdims=True), approx=True)
        pb = p.astype(_COMPUTE_DTYPE)
        attn_ref[0, h] = pb
        ctx_parts.append(jnp.dot(pb, v, preferred_element_type=jnp.float32))
    ctx_ref[0] = jnp.concatenate(ctx_parts, axis=-1)    # lane-dense (S, H) store


def _conv_taps_from_flat(y_flat, bias, *, ksize, cout):
    """Assemble a 'same'-padded 1-D conv from the fused-tap matmul result.

    y_flat: (S, ksize*cout) f32 where slice k is x @ W[k] (unshifted).
    conv[t] = sum_k y_k[t - (pad - k)] with zero padding; the halo is a cheap
    sublane roll + mask on the XLU slot (no padded copies, no extra MXU pushes).
    """
    s = y_flat.shape[0]
    pad = (ksize - 1) // 2
    rows = jax.lax.broadcasted_iota(jnp.int32, (s, cout), 0)
    acc = jnp.zeros((s, cout), jnp.float32)
    for k in range(ksize):
        d = pad - k
        yk = y_flat[:, k * cout:(k + 1) * cout]
        if d == 0:
            acc = acc + yk
        else:
            shifted = pltpu.roll(yk, shift=d % s, axis=0)
            valid = (rows >= d) & (rows < s + d)
            acc = acc + jnp.where(valid, shifted, 0.0)
    return acc + bias


def _branch_ffn_kernel(res0h_ref, res0_ref, wo_w_ref, wo_b_ref,
                       w1_ref, b1_ref, w2_ref, b2_ref, g_ref, bb_ref,
                       hw_w_ref, hw_b_ref, out_ref, *, ksize, eps):
    # grid = (B, n_branches); branch axis last ("arbitrary"); the output block is
    # revisited across branches -> VMEM-resident accumulator for res_1.
    i = pl.program_id(1)
    n_br = pl.num_programs(1)
    dff = b1_ref.shape[-1]
    hdim = out_ref.shape[-1]

    @pl.when(i == 0)
    def _():
        out_ref[...] = jnp.zeros_like(out_ref)

    ci = res0h_ref[0, 0]                                # (S, dv) bf16 slice of res_0
    # w_o linear (w_kp already folded into weights/bias by prepare_params).
    oi = jnp.dot(ci, wo_w_ref[0], preferred_element_type=jnp.float32) + wo_b_ref[0]

    # Positionwise_Conv_Forward: LayerNorm(conv5(relu(conv5(x))) + x)
    # Each conv is ONE fused-tap matmul (N = ksize*Cout) + roll/mask assembly.
    y1 = jnp.dot(oi.astype(_COMPUTE_DTYPE), w1_ref[0],
                 preferred_element_type=jnp.float32)    # (S, ksize*dff)
    h1 = jnp.maximum(_conv_taps_from_flat(y1, b1_ref[0], ksize=ksize, cout=dff), 0.0)
    y2 = jnp.dot(h1.astype(_COMPUTE_DTYPE), w2_ref[0],
                 preferred_element_type=jnp.float32)    # (S, ksize*H)
    h2 = _conv_taps_from_flat(y2, b2_ref[0], ksize=ksize, cout=hdim)

    y = h2 + oi
    mean = jnp.mean(y, axis=-1, keepdims=True)
    var = jnp.sum((y - mean) ** 2, axis=-1, keepdims=True) / (y.shape[-1] - 1)
    inv = pl.reciprocal(jnp.sqrt(var) + eps, approx=True)
    ff = g_ref[0] * (y - mean) * inv + bb_ref[0]        # w_a folded into g / bb

    out_ref[0] += ff

    # Last-branch epilogue: fused output Highway (res_1 never hits HBM).
    @pl.when(i == n_br - 1)
    def _():
        r0 = res0_ref[0]                                # (S, H) f32
        res1 = out_ref[0]
        gate = jax.nn.sigmoid(
            jnp.dot(r0.astype(_COMPUTE_DTYPE), hw_w_ref[...],   # pre-cast bf16
                    preferred_element_type=jnp.float32) + hw_b_ref[...])
        out_ref[0] = gate * res1 + (1.0 - gate) * r0


# ----------------------------- kernel wrappers ----------------------------- #

def pallas_linear(x, w, b, *, out_dtype=jnp.float32, tm=256):
    m, kdim = x.shape
    n = w.shape[1]
    tm = m if m <= tm else tm
    return pl.pallas_call(
        _linear_kernel,
        grid=(pl.cdiv(m, tm),),
        in_specs=[pl.BlockSpec((tm, kdim), lambda i: (i, 0)),
                  pl.BlockSpec((kdim, n), lambda i: (0, 0)),
                  pl.BlockSpec((1, n), lambda i: (0, 0))],
        out_specs=pl.BlockSpec((tm, n), lambda i: (i, 0)),
        out_shape=jax.ShapeDtypeStruct((m, n), out_dtype),
        compiler_params=pltpu.CompilerParams(dimension_semantics=("parallel",)),
    )(x, w, b)


def pallas_ln_highway(context, x, ln_g, ln_b, hw_w, hw_b, *, eps=1e-6, tm=256):
    m, h = x.shape
    tm = m if m <= tm else tm
    kernel = functools.partial(_ln_highway_kernel, eps=eps)
    return pl.pallas_call(
        kernel,
        grid=(pl.cdiv(m, tm),),
        in_specs=[pl.BlockSpec((tm, h), lambda i: (i, 0)),
                  pl.BlockSpec((tm, h), lambda i: (i, 0)),
                  pl.BlockSpec((1, h), lambda i: (0, 0)),
                  pl.BlockSpec((1, h), lambda i: (0, 0)),
                  pl.BlockSpec((h, h), lambda i: (0, 0)),
                  pl.BlockSpec((1, h), lambda i: (0, 0))],
        out_specs=pl.BlockSpec((tm, h), lambda i: (i, 0)),
        out_shape=jax.ShapeDtypeStruct((m, h), jnp.float32),
        compiler_params=pltpu.CompilerParams(dimension_semantics=("parallel",)),
    )(context, x, ln_g, ln_b, hw_w, hw_b)


def pallas_attention(qkv, mask, *, nh):
    bsz, s, h3 = qkv.shape
    h = h3 // 3
    dv = h // nh
    kernel = functools.partial(_attn_kernel, nh=nh, dv=dv)
    ctx, attn = pl.pallas_call(
        kernel,
        grid=(bsz,),
        in_specs=[
            pl.BlockSpec((1, s, h3), lambda b: (b, 0, 0)),   # fused QKV, bf16
            pl.BlockSpec((1, s, s), lambda b: (b, 0, 0)),    # mask, batch-indexed
        ],
        out_specs=[
            pl.BlockSpec((1, s, h), lambda b: (b, 0, 0)),    # lane-dense context
            pl.BlockSpec((1, nh, s, s), lambda b: (b, 0, 0, 0)),
        ],
        out_shape=[
            jax.ShapeDtypeStruct((bsz, s, h), jnp.float32),
            jax.ShapeDtypeStruct((bsz, nh, s, s), _COMPUTE_DTYPE),   # attn in bf16
        ],
        compiler_params=pltpu.CompilerParams(
            dimension_semantics=("parallel",),
            vmem_limit_bytes=64 * 1024 * 1024),
    )(qkv, mask)
    return ctx, attn


def pallas_branch_ffn(res0_heads, res0_3d, wo_w, wo_b, ff_w1, ff_b1, ff_w2, ff_b2,
                      ln_g, ln_b, hw_w, hw_b, *, ksize, eps=1e-6):
    nh, bsz, s, dv = res0_heads.shape
    h = res0_3d.shape[-1]
    kdff = ff_w1.shape[-1]     # ksize * d_ff (taps pre-flattened)
    dff = ff_b1.shape[-1]
    kernel = functools.partial(_branch_ffn_kernel, ksize=ksize, eps=eps)
    return pl.pallas_call(
        kernel,
        grid=(bsz, nh),
        in_specs=[
            pl.BlockSpec((1, 1, s, dv), lambda b, i: (i, b, 0, 0)),   # res_0 branch slice (bf16)
            pl.BlockSpec((1, s, h), lambda b, i: (b, 0, 0)),          # full res_0 (epilogue)
            pl.BlockSpec((1, dv, h), lambda b, i: (i, 0, 0)),         # w_o weight (bf16, *w_kp)
            pl.BlockSpec((1, 1, h), lambda b, i: (i, 0, 0)),          # w_o bias (*w_kp)
            pl.BlockSpec((1, h, kdff), lambda b, i: (i, 0, 0)),       # conv1 weight (bf16, taps flat)
            pl.BlockSpec((1, 1, dff), lambda b, i: (i, 0, 0)),        # conv1 bias
            pl.BlockSpec((1, dff, ksize * h), lambda b, i: (i, 0, 0)),# conv2 weight (bf16, taps flat)
            pl.BlockSpec((1, 1, h), lambda b, i: (i, 0, 0)),          # conv2 bias
            pl.BlockSpec((1, 1, h), lambda b, i: (i, 0, 0)),          # FFN LN gain (*w_a)
            pl.BlockSpec((1, 1, h), lambda b, i: (i, 0, 0)),          # FFN LN bias (*w_a)
            pl.BlockSpec((h, h), lambda b, i: (0, 0)),                # output Highway W (bf16)
            pl.BlockSpec((1, h), lambda b, i: (0, 0)),                # output Highway b
        ],
        out_specs=pl.BlockSpec((1, s, h), lambda b, i: (b, 0, 0)),
        out_shape=jax.ShapeDtypeStruct((bsz, s, h), jnp.float32),
        compiler_params=pltpu.CompilerParams(
            dimension_semantics=("parallel", "arbitrary"),
            vmem_limit_bytes=64 * 1024 * 1024),
    )(res0_heads, res0_3d, wo_w, wo_b, ff_w1, ff_b1, ff_w2, ff_b2,
      ln_g, ln_b, hw_w, hw_b)


# --------------------------- parameters & forward --------------------------- #

def init_params(key, hidden, n_branches, feed_forward_hidden, ksize=5):
    d_v = hidden // n_branches
    d_ff = feed_forward_hidden // n_branches
    ks = jax.random.split(key, 32)
    nrm = lambda k, shape, s=0.05: (s * jax.random.normal(k, shape)).astype(jnp.float32)

    w_kp = jax.random.uniform(ks[0], (n_branches,), dtype=jnp.float32)
    w_a = jax.random.uniform(ks[1], (n_branches,), dtype=jnp.float32)

    return dict(
        wq=nrm(ks[2], (hidden, hidden)), bq=nrm(ks[3], (1, hidden)),
        wk=nrm(ks[4], (hidden, hidden)), bk=nrm(ks[5], (1, hidden)),
        wv=nrm(ks[6], (hidden, hidden)), bv=nrm(ks[7], (1, hidden)),
        wo_w=nrm(ks[8], (n_branches, d_v, hidden)),
        wo_b=nrm(ks[9], (n_branches, 1, hidden)),
        w_kp=w_kp / jnp.sum(w_kp),
        w_a=w_a / jnp.sum(w_a),
        ff_w1=nrm(ks[10], (n_branches, ksize, hidden, d_ff)),
        ff_b1=nrm(ks[11], (n_branches, 1, d_ff)),
        ff_w2=nrm(ks[12], (n_branches, ksize, d_ff, hidden)),
        ff_b2=nrm(ks[13], (n_branches, 1, hidden)),
        ff_ln_g=jnp.ones((n_branches, 1, hidden), jnp.float32),
        ff_ln_b=jnp.zeros((n_branches, 1, hidden), jnp.float32),
        ln_g=jnp.ones((1, hidden), jnp.float32),
        ln_b=jnp.zeros((1, hidden), jnp.float32),
        hw_in_w=nrm(ks[14], (hidden, hidden)),
        hw_in_b=jnp.full((1, hidden), -2.0, jnp.float32),
        hw_out_w=nrm(ks[15], (hidden, hidden)),
        hw_out_b=jnp.full((1, hidden), -2.0, jnp.float32),
    )


def prepare_params(params, *, n_branches, ksize):
    """One-time weight prep (hoisted out of the per-call forward):
    QKV fuse + softmax-scale fold into wq/bq, w_kp fold into w_o, w_a fold into the
    FFN LayerNorm affine (exact algebraic identities), conv-tap flattening for the
    single fused-tap matmul, and bf16 pre-cast of every matmul weight."""
    h = params["wq"].shape[0]
    dv = h // n_branches
    scale = 1.0 / math.sqrt(dv)

    w_qkv = jnp.concatenate([params["wq"] * scale, params["wk"], params["wv"]], axis=1)
    b_qkv = jnp.concatenate([params["bq"] * scale, params["bk"], params["bv"]], axis=1)

    kp = params["w_kp"][:, None, None]
    wa = params["w_a"][:, None, None]

    nb, ks_, _, dff = params["ff_w1"].shape
    ff_w1_flat = jnp.transpose(params["ff_w1"], (0, 2, 1, 3)).reshape(nb, h, ks_ * dff)
    ff_w2_flat = jnp.transpose(params["ff_w2"], (0, 2, 1, 3)).reshape(nb, dff, ks_ * h)

    return dict(
        w_qkv=w_qkv.astype(_COMPUTE_DTYPE), b_qkv=b_qkv,
        ln_g=params["ln_g"], ln_b=params["ln_b"],
        hw_in_w=params["hw_in_w"].astype(_COMPUTE_DTYPE), hw_in_b=params["hw_in_b"],
        hw_out_w=params["hw_out_w"].astype(_COMPUTE_DTYPE), hw_out_b=params["hw_out_b"],
        wo_w=(params["wo_w"] * kp).astype(_COMPUTE_DTYPE),
        wo_b=params["wo_b"] * kp,
        ff_w1=ff_w1_flat.astype(_COMPUTE_DTYPE), ff_b1=params["ff_b1"],
        ff_w2=ff_w2_flat.astype(_COMPUTE_DTYPE), ff_b2=params["ff_b2"],
        ff_ln_g=params["ff_ln_g"] * wa,
        ff_ln_b=params["ff_ln_b"] * wa,
    )


def weighted_transformer_block(p, x, mask, adj, layer=0, *, n_branches, ksize=5):
    """x: (B, S, H) f32; mask: (B, S, S) {0,1}; adj/layer unused (see TODO)."""
    del adj, layer  # TODO(synk): adj/layer handling inside attention not reproducible.
    B, S, H = x.shape
    nh = n_branches
    dv = H // nh

    x2d = x.reshape(B * S, H)

    # --- fused QKV projection: single (B*S, H) @ (H, 3H) matmul, bf16 output ---
    qkv = pallas_linear(x2d, p["w_qkv"], p["b_qkv"], out_dtype=_COMPUTE_DTYPE)
    qkv3 = qkv.reshape(B, S, 3 * H)                 # contiguous reshape, no relayout

    # --- multi-head attention: heads sliced in-kernel; lane-dense (B,S,H) context ---
    ctx, attn = pallas_attention(qkv3, mask, nh=nh)

    # --- fused block LayerNorm + input Highway ---
    res_0 = pallas_ln_highway(ctx.reshape(B * S, H), x2d, p["ln_g"], p["ln_b"],
                              p["hw_in_w"], p["hw_in_b"])          # (B*S, H) f32

    # TODO(synk): this (nh,B,S,dv) relayout could be replaced by a dv-wide lane
    # BlockSpec once dv is a multiple of 128; kept as a bf16 XLA transpose for
    # lane-layout safety at small dv.
    res0_heads = (res_0.reshape(B, S, nh, dv).transpose(2, 0, 1, 3)
                  .astype(_COMPUTE_DTYPE))                          # (nh, B, S, dv)
    res0_3d = res_0.reshape(B, S, H)

    # --- fused per-branch section (one pallas_call, branch grid axis) ---
    out = pallas_branch_ffn(res0_heads, res0_3d, p["wo_w"], p["wo_b"],
                            p["ff_w1"], p["ff_b1"], p["ff_w2"], p["ff_b2"],
                            p["ff_ln_g"], p["ff_ln_b"],
                            p["hw_out_w"], p["hw_out_b"], ksize=ksize)  # (B, S, H)
    return out, attn


# ---------------------------------- main ----------------------------------- #

if __name__ == "__main__":
    B, S, H = 2, 8, 32
    n_branches = 4
    feed_forward_hidden = 4 * H  # 128 -> 32 per branch
    ksize = 5

    key = jax.random.PRNGKey(0)
    k_params, k_x, k_adj = jax.random.split(key, 3)

    raw_params = init_params(k_params, H, n_branches, feed_forward_hidden, ksize=ksize)
    params = prepare_params(raw_params, n_branches=n_branches, ksize=ksize)

    x = jax.random.normal(k_x, (B, S, H), dtype=jnp.float32)
    # padding-style mask: batch 1 masks its last two key positions
    mask = jnp.ones((B, S, S), jnp.float32)
    mask = mask.at[1, :, S - 2:].set(0.0)
    adj = (jax.random.uniform(k_adj, (B, S, S)) > 0.5).astype(jnp.float32)

    fwd = jax.jit(functools.partial(weighted_transformer_block,
                                    n_branches=n_branches, ksize=ksize))
    out, attn = fwd(params, x, mask, adj)
    jax.block_until_ready(out)
    jax.block_until_ready(attn)

    assert out.shape == (B, S, H) and attn.shape == (B, n_branches, S, S)
    assert bool(jnp.all(jnp.isfinite(out)))
    assert bool(jnp.all(jnp.isfinite(attn.astype(jnp.float32))))
    print("KERNEL_OK")
</pallas_src>

<mosaic_0001>
module attributes {stable_mosaic.version = 11 : i64} {
  func.func @_linear_kernel(%arg0: i32, %arg1: memref<16x32xf32, #tpu.memory_space<vmem>>, %arg2: memref<32x96xbf16, #tpu.memory_space<vmem>>, %arg3: memref<1x96xf32, #tpu.memory_space<vmem>>, %arg4: memref<16x96xbf16, #tpu.memory_space<vmem>>) attributes {dimension_semantics = [#tpu.dimension_semantics<parallel>], iteration_bounds = array<i64: 1>, scalar_prefetch = 0 : i64, scratch_operands = 0 : i64, tpu.core_type = #tpu.core_type<tc>, window_params = [{transform_indices = @transform_0, window_bounds = array<i64: 16, 32>}, {pipeline_mode = #tpu.pipeline_mode<synchronous>, transform_indices = @transform_1, window_bounds = array<i64: 32, 96>}, {pipeline_mode = #tpu.pipeline_mode<synchronous>, transform_indices = @transform_2, window_bounds = array<i64: 1, 96>}, {transform_indices = @transform_3, window_bounds = array<i64: 16, 96>}]} {
    %c0 = arith.constant 0 : index
    %c0_0 = arith.constant 0 : index
    %0 = vector.load %arg1[%c0, %c0_0] : memref<16x32xf32, #tpu.memory_space<vmem>>, vector<16x32xf32>
    %1 = arith.truncf %0 : vector<16x32xf32> to vector<16x32xbf16>
    %c0_1 = arith.constant 0 : index
    %c0_2 = arith.constant 0 : index
    %2 = vector.load %arg2[%c0_1, %c0_2] : memref<32x96xbf16, #tpu.memory_space<vmem>>, vector<32x96xbf16>
    %cst = arith.constant dense<0.000000e+00> : vector<16x96xf32>
    %3 = tpu.matmul %1, %2, %cst {dimension_numbers = #tpu.dot_dimension_numbers<[1], [0], [0], [1], [0, 0, 1, 1], [], []>} : vector<16x32xbf16>, vector<32x96xbf16>, vector<16x96xf32> -> vector<16x96xf32>
    %c0_3 = arith.constant 0 : index
    %c0_4 = arith.constant 0 : index
    %4 = vector.load %arg3[%c0_3, %c0_4] : memref<1x96xf32, #tpu.memory_space<vmem>>, vector<1x96xf32>
    %5 = vector.broadcast %4 : vector<1x96xf32> to vector<16x96xf32>
    %6 = arith.addf %3, %5 : vector<16x96xf32>
    %7 = arith.truncf %6 : vector<16x96xf32> to vector<16x96xbf16>
    %c0_5 = arith.constant 0 : index
    %c0_6 = arith.constant 0 : index
    %8 = vector.load %arg4[%c0_5, %c0_6] : memref<16x96xbf16, #tpu.memory_space<vmem>>, vector<16x96xbf16>
    tpu.vector_store %arg4[%c0_5, %c0_6], %7 {strides = array<i32>} : memref<16x96xbf16, #tpu.memory_space<vmem>>, vector<16x96xbf16>,
    return
  }
  func.func @transform_0(%arg0: i32) -> (i32, i32) {
    %c0_i32 = arith.constant 0 : i32
    %c0_i32_0 = arith.constant 0 : i32
    return %arg0, %c0_i32 : i32, i32
  }
  func.func @transform_1(%arg0: i32) -> (i32, i32) {
    %c0_i32 = arith.constant 0 : i32
    %c0_i32_0 = arith.constant 0 : i32
    %c0_i32_1 = arith.constant 0 : i32
    return %c0_i32, %c0_i32_0 : i32, i32
  }
  func.func @transform_2(%arg0: i32) -> (i32, i32) {
    %c0_i32 = arith.constant 0 : i32
    %c0_i32_0 = arith.constant 0 : i32
    %c0_i32_1 = arith.constant 0 : i32
    return %c0_i32, %c0_i32_0 : i32, i32
  }
  func.func @transform_3(%arg0: i32) -> (i32, i32) {
    %c0_i32 = arith.constant 0 : i32
    %c0_i32_0 = arith.constant 0 : i32
    return %arg0, %c0_i32 : i32, i32
  }
}

module attributes {stable_mosaic.version = 11 : i64} {
  func.func @_ln_highway_kernel(%arg0: i32, %arg1: memref<16x32xf32, #tpu.memory_space<vmem>>, %arg2: memref<16x32xf32, #tpu.memory_space<vmem>>, %arg3: memref<1x32xf32, #tpu.memory_space<vmem>>, %arg4: memref<1x32xf32, #tpu.memory_space<vmem>>, %arg5: memref<32x32xbf16, #tpu.memory_space<vmem>>, %arg6: memref<1x32xf32, #tpu.memory_space<vmem>>, %arg7: memref<16x32xf32, #tpu.memory_space<vmem>>) attributes {dimension_semantics = [#tpu.dimension_semantics<parallel>], iteration_bounds = array<i64: 1>, scalar_prefetch = 0 : i64, scratch_operands = 0 : i64, tpu.core_type = #tpu.core_type<tc>, window_params = [{transform_indices = @transform_0, window_bounds = array<i64: 16, 32>}, {transform_indices = @transform_1, window_bounds = array<i64: 16, 32>}, {pipeline_mode = #tpu.pipeline_mode<synchronous>, transform_indices = @transform_2, window_bounds = array<i64: 1, 32>}, {pipeline_mode = #tpu.pipeline_mode<synchronous>, transform_indices = @transform_3, window_bounds = array<i64: 1, 32>}, {pipeline_mode = #tpu.pipeline_mode<synchronous>, transform_indices = @transform_4, window_bounds = array<i64: 32, 32>}, {pipeline_mode = #tpu.pipeline_mode<synchronous>, transform_indices = @transform_5, window_bounds = array<i64: 1, 32>}, {transform_indices = @transform_6, window_bounds = array<i64: 16, 32>}]} {
    %c0 = arith.constant 0 : index
    %c0_0 = arith.constant 0 : index
    %0 = vector.load %arg1[%c0, %c0_0] : memref<16x32xf32, #tpu.memory_space<vmem>>, vector<16x32xf32>
    %c0_1 = arith.constant 0 : index
    %c0_2 = arith.constant 0 : index
    %1 = vector.load %arg2[%c0_1, %c0_2] : memref<16x32xf32, #tpu.memory_space<vmem>>, vector<16x32xf32>
    %cst = arith.constant dense<0.000000e+00> : vector<16xf32>
    %2 = vector.multi_reduction <add>, %0, %cst [1] : vector<16x32xf32> to vector<16xf32>
    %3 = vector.shape_cast %2 : vector<16xf32> to vector<16x1xf32>
    %cst_3 = arith.constant 3.200000e+01 : f32
    %4 = vector.broadcast %cst_3 : f32 to vector<16x1xf32>
    %5 = arith.divf %3, %4 : vector<16x1xf32>
    %6 = vector.broadcast %5 : vector<16x1xf32> to vector<16x32xf32>
    %7 = arith.subf %0, %6 : vector<16x32xf32>
    %8 = arith.mulf %7, %7 : vector<16x32xf32>
    %cst_4 = arith.constant dense<0.000000e+00> : vector<16xf32>
    %9 = vector.multi_reduction <add>, %8, %cst_4 [1] : vector<16x32xf32> to vector<16xf32>
    %10 = vector.shape_cast %9 : vector<16xf32> to vector<16x1xf32>
    %cst_5 = arith.constant 3.100000e+01 : f32
    %11 = vector.broadcast %cst_5 : f32 to vector<16x1xf32>
    %12 = arith.divf %10, %11 : vector<16x1xf32>
    %13 = math.sqrt %12 : vector<16x1xf32>
    %cst_6 = arith.constant 9.99999997E-7 : f32
    %14 = vector.broadcast %cst_6 : f32 to vector<16x1xf32>
    %15 = arith.addf %13, %14 : vector<16x1xf32>
    %16 = tpu.reciprocal %15 {approx = true} : vector<16x1xf32> -> vector<16x1xf32>
    %c0_7 = arith.constant 0 : index
    %c0_8 = arith.constant 0 : index
    %17 = vector.load %arg3[%c0_7, %c0_8] : memref<1x32xf32, #tpu.memory_space<vmem>>, vector<1x32xf32>
    %18 = vector.broadcast %5 : vector<16x1xf32> to vector<16x32xf32>
    %19 = arith.subf %0, %18 : vector<16x32xf32>
    %20 = vector.broadcast %17 : vector<1x32xf32> to vector<16x32xf32>
    %21 = arith.mulf %20, %19 : vector<16x32xf32>
    %22 = vector.broadcast %16 : vector<16x1xf32> to vector<16x32xf32>
    %23 = arith.mulf %21, %22 : vector<16x32xf32>
    %c0_9 = arith.constant 0 : index
    %c0_10 = arith.constant 0 : index
    %24 = vector.load %arg4[%c0_9, %c0_10] : memref<1x32xf32, #tpu.memory_space<vmem>>, vector<1x32xf32>
    %25 = vector.broadcast %24 : vector<1x32xf32> to vector<16x32xf32>
    %26 = arith.addf %23, %25 : vector<16x32xf32>
    %27 = arith.truncf %1 : vector<16x32xf32> to vector<16x32xbf16>
    %c0_11 = arith.constant 0 : index
    %c0_12 = arith.constant 0 : index
    %28 = vector.load %arg5[%c0_11, %c0_12] : memref<32x32xbf16, #tpu.memory_space<vmem>>, vector<32x32xbf16>
    %cst_13 = arith.constant dense<0.000000e+00> : vector<16x32xf32>
    %29 = tpu.matmul %27, %28, %cst_13 {dimension_numbers = #tpu.dot_dimension_numbers<[1], [0], [0], [1], [0, 0, 1, 1], [], []>} : vector<16x32xbf16>, vector<32x32xbf16>, vector<16x32xf32> -> vector<16x32xf32>
    %c0_14 = arith.constant 0 : index
    %c0_15 = arith.constant 0 : index
    %30 = vector.load %arg6[%c0_14, %c0_15] : memref<1x32xf32, #tpu.memory_space<vmem>>, vector<1x32xf32>
    %31 = vector.broadcast %30 : vector<1x32xf32> to vector<16x32xf32>
    %32 = arith.addf %29, %31 : vector<16x32xf32>
    %33 = arith.negf %32 : vector<16x32xf32>
    %34 = math.exp %33 : vector<16x32xf32>
    %cst_16 = arith.constant 1.000000e+00 : f32
    %35 = vector.broadcast %cst_16 : f32 to vector<16x32xf32>
    %36 = arith.addf %35, %34 : vector<16x32xf32>
    %37 = arith.divf %35, %36 : vector<16x32xf32>
    %38 = arith.mulf %37, %26 : vector<16x32xf32>
    %cst_17 = arith.constant 1.000000e+00 : f32
    %39 = vector.broadcast %cst_17 : f32 to vector<16x32xf32>
    %40 = arith.subf %39, %37 : vector<16x32xf32>
    %41 = arith.mulf %40, %1 : vector<16x32xf32>
    %42 = arith.addf %38, %41 : vector<16x32xf32>
    %c0_18 = arith.constant 0 : index
    %c0_19 = arith.constant 0 : index
    %43 = vector.load %arg7[%c0_18, %c0_19] : memref<16x32xf32, #tpu.memory_space<vmem>>, vector<16x32xf32>
    tpu.vector_store %arg7[%c0_18, %c0_19], %42 {strides = array<i32>} : memref<16x32xf32, #tpu.memory_space<vmem>>, vector<16x32xf32>,
    return
  }
  func.func @transform_0(%arg0: i32) -> (i32, i32) {
    %c0_i32 = arith.constant 0 : i32
    %c0_i32_0 = arith.constant 0 : i32
    return %arg0, %c0_i32 : i32, i32
  }
  func.func @transform_1(%arg0: i32) -> (i32, i32) {
    %c0_i32 = arith.constant 0 : i32
    %c0_i32_0 = arith.constant 0 : i32
    return %arg0, %c0_i32 : i32, i32
  }
  func.func @transform_2(%arg0: i32) -> (i32, i32) {
    %c0_i32 = arith.constant 0 : i32
    %c0_i32_0 = arith.constant 0 : i32
    %c0_i32_1 = arith.constant 0 : i32
    return %c0_i32, %c0_i32_0 : i32, i32
  }
  func.func @transform_3(%arg0: i32) -> (i32, i32) {
    %c0_i32 = arith.constant 0 : i32
    %c0_i32_0 = arith.constant 0 : i32
    %c0_i32_1 = arith.constant 0 : i32
    return %c0_i32, %c0_i32_0 : i32, i32
  }
  func.func @transform_4(%arg0: i32) -> (i32, i32) {
    %c0_i32 = arith.constant 0 : i32
    %c0_i32_0 = arith.constant 0 : i32
    %c0_i32_1 = arith.constant 0 : i32
    return %c0_i32, %c0_i32_0 : i32, i32
  }
  func.func @transform_5(%arg0: i32) -> (i32, i32) {
    %c0_i32 = arith.constant 0 : i32
    %c0_i32_0 = arith.constant 0 : i32
    %c0_i32_1 = arith.constant 0 : i32
    return %c0_i32, %c0_i32_0 : i32, i32
  }
  func.func @transform_6(%arg0: i32) -> (i32, i32) {
    %c0_i32 = arith.constant 0 : i32
    %c0_i32_0 = arith.constant 0 : i32
    return %arg0, %c0_i32 : i32, i32
  }
}

module attributes {stable_mosaic.version = 11 : i64} {
  func.func @_attn_kernel(%arg0: i32, %arg1: memref<1x8x96xbf16, #tpu.memory_space<vmem>>, %arg2: memref<1x8x8xf32, #tpu.memory_space<vmem>>, %arg3: memref<1x8x32xf32, #tpu.memory_space<vmem>>, %arg4: memref<1x4x8x8xbf16, #tpu.memory_space<vmem>>) attributes {dimension_semantics = [#tpu.dimension_semantics<parallel>], iteration_bounds = array<i64: 2>, scalar_prefetch = 0 : i64, scratch_operands = 0 : i64, tpu.core_type = #tpu.core_type<tc>, window_params = [{transform_indices = @transform_0, window_bounds = array<i64: 1, 8, 96>}, {transform_indices = @transform_1, window_bounds = array<i64: 1, 8, 8>}, {transform_indices = @transform_2, window_bounds = array<i64: 1, 8, 32>}, {transform_indices = @transform_3, window_bounds = array<i64: 1, 4, 8, 8>}]} {
    %c0 = arith.constant 0 : index
    %c0_0 = arith.constant 0 : index
    %c0_1 = arith.constant 0 : index
    %0 = vector.load %arg1[%c0, %c0_0, %c0_1] : memref<1x8x96xbf16, #tpu.memory_space<vmem>>, vector<1x8x96xbf16>
    %1 = vector.shape_cast %0 : vector<1x8x96xbf16> to vector<8x96xbf16>
    %c0_2 = arith.constant 0 : index
    %c0_3 = arith.constant 0 : index
    %c0_4 = arith.constant 0 : index
    %2 = vector.load %arg2[%c0_2, %c0_3, %c0_4] : memref<1x8x8xf32, #tpu.memory_space<vmem>>, vector<1x8x8xf32>
    %3 = vector.shape_cast %2 : vector<1x8x8xf32> to vector<8x8xf32>
    %cst = arith.constant 1.000000e+00 : f32
    %4 = vector.broadcast %cst : f32 to vector<8x8xf32>
    %5 = arith.subf %3, %4 : vector<8x8xf32>
    %cst_5 = arith.constant 1.000000e+09 : f32
    %6 = vector.broadcast %cst_5 : f32 to vector<8x8xf32>
    %7 = arith.mulf %5, %6 : vector<8x8xf32>
    %8 = vector.extract_strided_slice %1 {offsets = [0, 0], sizes = [8, 8], strides = [1, 1]} : vector<8x96xbf16> to vector<8x8xbf16>
    %9 = vector.extract_strided_slice %1 {offsets = [0, 32], sizes = [8, 8], strides = [1, 1]} : vector<8x96xbf16> to vector<8x8xbf16>
    %10 = vector.extract_strided_slice %1 {offsets = [0, 64], sizes = [8, 8], strides = [1, 1]} : vector<8x96xbf16> to vector<8x8xbf16>
    %cst_6 = arith.constant dense<0.000000e+00> : vector<8x8xf32>
    %11 = tpu.matmul %8, %9, %cst_6 {dimension_numbers = #tpu.dot_dimension_numbers<[1], [1], [0], [0], [0, 0, 1, 0], [], []>} : vector<8x8xbf16>, vector<8x8xbf16>, vector<8x8xf32> -> vector<8x8xf32>
    %12 = arith.addf %11, %7 : vector<8x8xf32>
    %cst_7 = arith.constant dense<0xFF800000> : vector<8xf32>
    %13 = vector.multi_reduction <maximumf>, %12, %cst_7 [1] : vector<8x8xf32> to vector<8xf32>
    %14 = vector.shape_cast %13 : vector<8xf32> to vector<8x1xf32>
    %15 = vector.broadcast %14 : vector<8x1xf32> to vector<8x8xf32>
    %16 = arith.subf %12, %15 : vector<8x8xf32>
    %17 = math.exp %16 : vector<8x8xf32>
    %cst_8 = arith.constant dense<0.000000e+00> : vector<8xf32>
    %18 = vector.multi_reduction <add>, %17, %cst_8 [1] : vector<8x8xf32> to vector<8xf32>
    %19 = vector.shape_cast %18 : vector<8xf32> to vector<8x1xf32>
    %20 = tpu.reciprocal %19 {approx = true} : vector<8x1xf32> -> vector<8x1xf32>
    %21 = vector.broadcast %20 : vector<8x1xf32> to vector<8x8xf32>
    %22 = arith.mulf %17, %21 : vector<8x8xf32>
    %23 = arith.truncf %22 : vector<8x8xf32> to vector<8x8xbf16>
    %c0_9 = arith.constant 0 : index
    %c0_10 = arith.constant 0 : index
    %c0_11 = arith.constant 0 : index
    %c0_12 = arith.constant 0 : index
    %24 = vector.load %arg4[%c0_9, %c0_10, %c0_11, %c0_12] : memref<1x4x8x8xbf16, #tpu.memory_space<vmem>>, vector<1x1x8x8xbf16>
    %25 = vector.shape_cast %24 : vector<1x1x8x8xbf16> to vector<8x8xbf16>
    %26 = vector.shape_cast %23 : vector<8x8xbf16> to vector<1x1x8x8xbf16>
    tpu.vector_store %arg4[%c0_9, %c0_10, %c0_11, %c0_12], %26 {strides = array<i32>} : memref<1x4x8x8xbf16, #tpu.memory_space<vmem>>, vector<1x1x8x8xbf16>,
    %cst_13 = arith.constant dense<0.000000e+00> : vector<8x8xf32>
    %27 = tpu.matmul %23, %10, %cst_13 {dimension_numbers = #tpu.dot_dimension_numbers<[1], [0], [0], [1], [0, 0, 1, 1], [], []>} : vector<8x8xbf16>, vector<8x8xbf16>, vector<8x8xf32> -> vector<8x8xf32>
    %28 = vector.extract_strided_slice %1 {offsets = [0, 8], sizes = [8, 8], strides = [1, 1]} : vector<8x96xbf16> to vector<8x8xbf16>
    %29 = vector.extract_strided_slice %1 {offsets = [0, 40], sizes = [8, 8], strides = [1, 1]} : vector<8x96xbf16> to vector<8x8xbf16>
    %30 = vector.extract_strided_slice %1 {offsets = [0, 72], sizes = [8, 8], strides = [1, 1]} : vector<8x96xbf16> to vector<8x8xbf16>
    %cst_14 = arith.constant dense<0.000000e+00> : vector<8x8xf32>
    %31 = tpu.matmul %28, %29, %cst_14 {dimension_numbers = #tpu.dot_dimension_numbers<[1], [1], [0], [0], [0, 0, 1, 0], [], []>} : vector<8x8xbf16>, vector<8x8xbf16>, vector<8x8xf32> -> vector<8x8xf32>
    %32 = arith.addf %31, %7 : vector<8x8xf32>
    %cst_15 = arith.constant dense<0xFF800000> : vector<8xf32>
    %33 = vector.multi_reduction <maximumf>, %32, %cst_15 [1] : vector<8x8xf32> to vector<8xf32>
    %34 = vector.shape_cast %33 : vector<8xf32> to vector<8x1xf32>
    %35 = vector.broadcast %34 : vector<8x1xf32> to vector<8x8xf32>
    %36 = arith.subf %32, %35 : vector<8x8xf32>
    %37 = math.exp %36 : vector<8x8xf32>
    %cst_16 = arith.constant dense<0.000000e+00> : vector<8xf32>
    %38 = vector.multi_reduction <add>, %37, %cst_16 [1] : vector<8x8xf32> to vector<8xf32>
    %39 = vector.shape_cast %38 : vector<8xf32> to vector<8x1xf32>
    %40 = tpu.reciprocal %39 {approx = true} : vector<8x1xf32> -> vector<8x1xf32>
    %41 = vector.broadcast %40 : vector<8x1xf32> to vector<8x8xf32>
    %42 = arith.mulf %37, %41 : vector<8x8xf32>
    %43 = arith.truncf %42 : vector<8x8xf32> to vector<8x8xbf16>
    %c0_17 = arith.constant 0 : index
    %c1 = arith.constant 1 : index
    %c0_18 = arith.constant 0 : index
    %c0_19 = arith.constant 0 : index
    %44 = vector.load %arg4[%c0_17, %c1, %c0_18, %c0_19] : memref<1x4x8x8xbf16, #tpu.memory_space<vmem>>, vector<1x1x8x8xbf16>
    %45 = vector.shape_cast %44 : vector<1x1x8x8xbf16> to vector<8x8xbf16>
    %46 = vector.shape_cast %43 : vector<8x8xbf16> to vector<1x1x8x8xbf16>
    tpu.vector_store %arg4[%c0_17, %c1, %c0_18, %c0_19], %46 {strides = array<i32>} : memref<1x4x8x8xbf16, #tpu.memory_space<vmem>>, vector<1x1x8x8xbf16>,
    %cst_20 = arith.constant dense<0.000000e+00> : vector<8x8xf32>
    %47 = tpu.matmul %43, %30, %cst_20 {dimension_numbers = #tpu.dot_dimension_numbers<[1], [0], [0], [1], [0, 0, 1, 1], [], []>} : vector<8x8xbf16>, vector<8x8xbf16>, vector<8x8xf32> -> vector<8x8xf32>
    %48 = vector.extract_strided_slice %1 {offsets = [0, 16], sizes = [8, 8], strides = [1, 1]} : vector<8x96xbf16> to vector<8x8xbf16>
    %49 = vector.extract_strided_slice %1 {offsets = [0, 48], sizes = [8, 8], strides = [1, 1]} : vector<8x96xbf16> to vector<8x8xbf16>
    %50 = vector.extract_strided_slice %1 {offsets = [0, 80], sizes = [8, 8], strides = [1, 1]} : vector<8x96xbf16> to vector<8x8xbf16>
    %cst_21 = arith.constant dense<0.000000e+00> : vector<8x8xf32>
    %51 = tpu.matmul %48, %49, %cst_21 {dimension_numbers = #tpu.dot_dimension_numbers<[1], [1], [0], [0], [0, 0, 1, 0], [], []>} : vector<8x8xbf16>, vector<8x8xbf16>, vector<8x8xf32> -> vector<8x8xf32>
    %52 = arith.addf %51, %7 : vector<8x8xf32>
    %cst_22 = arith.constant dense<0xFF800000> : vector<8xf32>
    %53 = vector.multi_reduction <maximumf>, %52, %cst_22 [1] : vector<8x8xf32> to vector<8xf32>
    %54 = vector.shape_cast %53 : vector<8xf32> to vector<8x1xf32>
    %55 = vector.broadcast %54 : vector<8x1xf32> to vector<8x8xf32>
    %56 = arith.subf %52, %55 : vector<8x8xf32>
    %57 = math.exp %56 : vector<8x8xf32>
    %cst_23 = arith.constant dense<0.000000e+00> : vector<8xf32>
    %58 = vector.multi_reduction <add>, %57, %cst_23 [1] : vector<8x8xf32> to vector<8xf32>
    %59 = vector.shape_cast %58 : vector<8xf32> to vector<8x1xf32>
    %60 = tpu.reciprocal %59 {approx = true} : vector<8x1xf32> -> vector<8x1xf32>
    %61 = vector.broadcast %60 : vector<8x1xf32> to vector<8x8xf32>
    %62 = arith.mulf %57, %61 : vector<8x8xf32>
    %63 = arith.truncf %62 : vector<8x8xf32> to vector<8x8xbf16>
    %c0_24 = arith.constant 0 : index
    %c2 = arith.constant 2 : index
    %c0_25 = arith.constant 0 : index
    %c0_26 = arith.constant 0 : index
    %64 = vector.load %arg4[%c0_24, %c2, %c0_25, %c0_26] : memref<1x4x8x8xbf16, #tpu.memory_space<vmem>>, vector<1x1x8x8xbf16>
    %65 = vector.shape_cast %64 : vector<1x1x8x8xbf16> to vector<8x8xbf16>
    %66 = vector.shape_cast %63 : vector<8x8xbf16> to vector<1x1x8x8xbf16>
    tpu.vector_store %arg4[%c0_24, %c2, %c0_25, %c0_26], %66 {strides = array<i32>} : memref<1x4x8x8xbf16, #tpu.memory_space<vmem>>, vector<1x1x8x8xbf16>,
    %cst_27 = arith.constant dense<0.000000e+00> : vector<8x8xf32>
    %67 = tpu.matmul %63, %50, %cst_27 {dimension_numbers = #tpu.dot_dimension_numbers<[1], [0], [0], [1], [0, 0, 1, 1], [], []>} : vector<8x8xbf16>, vector<8x8xbf16>, vector<8x8xf32> -> vector<8x8xf32>
    %68 = vector.extract_strided_slice %1 {offsets = [0, 24], sizes = [8, 8], strides = [1, 1]} : vector<8x96xbf16> to vector<8x8xbf16>
    %69 = vector.extract_strided_slice %1 {offsets = [0, 56], sizes = [8, 8], strides = [1, 1]} : vector<8x96xbf16> to vector<8x8xbf16>
    %70 = vector.extract_strided_slice %1 {offsets = [0, 88], sizes = [8, 8], strides = [1, 1]} : vector<8x96xbf16> to vector<8x8xbf16>
    %cst_28 = arith.constant dense<0.000000e+00> : vector<8x8xf32>
    %71 = tpu.matmul %68, %69, %cst_28 {dimension_numbers = #tpu.dot_dimension_numbers<[1], [1], [0], [0], [0, 0, 1, 0], [], []>} : vector<8x8xbf16>, vector<8x8xbf16>, vector<8x8xf32> -> vector<8x8xf32>
    %72 = arith.addf %71, %7 : vector<8x8xf32>
    %cst_29 = arith.constant dense<0xFF800000> : vector<8xf32>
    %73 = vector.multi_reduction <maximumf>, %72, %cst_29 [1] : vector<8x8xf32> to vector<8xf32>
    %74 = vector.shape_cast %73 : vector<8xf32> to vector<8x1xf32>
    %75 = vector.broadcast %74 : vector<8x1xf32> to vector<8x8xf32>
    %76 = arith.subf %72, %75 : vector<8x8xf32>
    %77 = math.exp %76 : vector<8x8xf32>
    %cst_30 = arith.constant dense<0.000000e+00> : vector<8xf32>
    %78 = vector.multi_reduction <add>, %77, %cst_30 [1] : vector<8x8xf32> to vector<8xf32>
    %79 = vector.shape_cast %78 : vector<8xf32> to vector<8x1xf32>
    %80 = tpu.reciprocal %79 {approx = true} : vector<8x1xf32> -> vector<8x1xf32>
    %81 = vector.broadcast %80 : vector<8x1xf32> to vector<8x8xf32>
    %82 = arith.mulf %77, %81 : vector<8x8xf32>
    %83 = arith.truncf %82 : vector<8x8xf32> to vector<8x8xbf16>
    %c0_31 = arith.constant 0 : index
    %c3 = arith.constant 3 : index
    %c0_32 = arith.constant 0 : index
    %c0_33 = arith.constant 0 : index
    %84 = vector.load %arg4[%c0_31, %c3, %c0_32, %c0_33] : memref<1x4x8x8xbf16, #tpu.memory_space<vmem>>, vector<1x1x8x8xbf16>
    %85 = vector.shape_cast %84 : vector<1x1x8x8xbf16> to vector<8x8xbf16>
    %86 = vector.shape_cast %83 : vector<8x8xbf16> to vector<1x1x8x8xbf16>
    tpu.vector_store %arg4[%c0_31, %c3, %c0_32, %c0_33], %86 {strides = array<i32>} : memref<1x4x8x8xbf16, #tpu.memory_space<vmem>>, vector<1x1x8x8xbf16>,
    %cst_34 = arith.constant dense<0.000000e+00> : vector<8x8xf32>
    %87 = tpu.matmul %83, %70, %cst_34 {dimension_numbers = #tpu.dot_dimension_numbers<[1], [0], [0], [1], [0, 0, 1, 1], [], []>} : vector<8x8xbf16>, vector<8x8xbf16>, vector<8x8xf32> -> vector<8x8xf32>
    %88 = tpu.concatenate %27, %47, %67, %87 in 1 : vector<8x8xf32>, vector<8x8xf32>, vector<8x8xf32>, vector<8x8xf32> -> vector<8x32xf32>
    %c0_35 = arith.constant 0 : index
    %c0_36 = arith.constant 0 : index
    %c0_37 = arith.constant 0 : index
    %89 = vector.load %arg3[%c0_35, %c0_36, %c0_37] : memref<1x8x32xf32, #tpu.memory_space<vmem>>, vector<1x8x32xf32>
    %90 = vector.shape_cast %89 : vector<1x8x32xf32> to vector<8x32xf32>
    %91 = vector.shape_cast %88 : vector<8x32xf32> to vector<1x8x32xf32>
    tpu.vector_store %arg3[%c0_35, %c0_36, %c0_37], %91 {strides = array<i32>} : memref<1x8x32xf32, #tpu.memory_space<vmem>>, vector<1x8x32xf32>,
    return
  }
  func.func @transform_0(%arg0: i32) -> (i32, i32, i32) {
    %c0_i32 = arith.constant 0 : i32
    %c0_i32_0 = arith.constant 0 : i32
    %c0_i32_1 = arith.constant 0 : i32
    return %arg0, %c0_i32, %c0_i32_0 : i32, i32, i32
  }
  func.func @transform_1(%arg0: i32) -> (i32, i32, i32) {
    %c0_i32 = arith.constant 0 : i32
    %c0_i32_0 = arith.constant 0 : i32
    %c0_i32_1 = arith.constant 0 : i32
    return %arg0, %c0_i32, %c0_i32_0 : i32, i32, i32
  }
  func.func @transform_2(%arg0: i32) -> (i32, i32, i32) {
    %c0_i32 = arith.constant 0 : i32
    %c0_i32_0 = arith.constant 0 : i32
    %c0_i32_1 = arith.constant 0 : i32
    return %arg0, %c0_i32, %c0_i32_0 : i32, i32, i32
  }
  func.func @transform_3(%arg0: i32) -> (i32, i32, i32, i32) {
    %c0_i32 = arith.constant 0 : i32
    %c0_i32_0 = arith.constant 0 : i32
    %c0_i32_1 = arith.constant 0 : i32
    %c0_i32_2 = arith.constant 0 : i32
    return %arg0, %c0_i32, %c0_i32_0, %c0_i32_1 : i32, i32, i32, i32
  }
}

module attributes {stable_mosaic.version = 11 : i64} {
  func.func @_branch_ffn_kernel(%arg0: i32, %arg1: i32, %arg2: memref<1x1x8x8xbf16, #tpu.memory_space<vmem>>, %arg3: memref<1x8x32xf32, #tpu.memory_space<vmem>>, %arg4: memref<1x8x32xbf16, #tpu.memory_space<vmem>>, %arg5: memref<1x1x32xf32, #tpu.memory_space<vmem>>, %arg6: memref<1x32x160xbf16, #tpu.memory_space<vmem>>, %arg7: memref<1x1x32xf32, #tpu.memory_space<vmem>>, %arg8: memref<1x32x160xbf16, #tpu.memory_space<vmem>>, %arg9: memref<1x1x32xf32, #tpu.memory_space<vmem>>, %arg10: memref<1x1x32xf32, #tpu.memory_space<vmem>>, %arg11: memref<1x1x32xf32, #tpu.memory_space<vmem>>, %arg12: memref<32x32xbf16, #tpu.memory_space<vmem>>, %arg13: memref<1x32xf32, #tpu.memory_space<vmem>>, %arg14: memref<1x8x32xf32, #tpu.memory_space<vmem>>) attributes {dimension_semantics = [#tpu.dimension_semantics<parallel>, #tpu.dimension_semantics<arbitrary>], iteration_bounds = array<i64: 2, 4>, scalar_prefetch = 0 : i64, scratch_operands = 0 : i64, tpu.core_type = #tpu.core_type<tc>, window_params = [{transform_indices = @transform_0, window_bounds = array<i64: 1, 1, 8, 8>}, {transform_indices = @transform_1, window_bounds = array<i64: 1, 8, 32>}, {transform_indices = @transform_2, window_bounds = array<i64: 1, 8, 32>}, {transform_indices = @transform_3, window_bounds = array<i64: 1, 1, 32>}, {transform_indices = @transform_4, window_bounds = array<i64: 1, 32, 160>}, {transform_indices = @transform_5, window_bounds = array<i64: 1, 1, 32>}, {transform_indices = @transform_6, window_bounds = array<i64: 1, 32, 160>}, {transform_indices = @transform_7, window_bounds = array<i64: 1, 1, 32>}, {transform_indices = @transform_8, window_bounds = array<i64: 1, 1, 32>}, {transform_indices = @transform_9, window_bounds = array<i64: 1, 1, 32>}, {pipeline_mode = #tpu.pipeline_mode<synchronous>, transform_indices = @transform_10, window_bounds = array<i64: 32, 32>}, {pipeline_mode = #tpu.pipeline_mode<synchronous>, transform_indices = @transform_11, window_bounds = array<i64: 1, 32>}, {transform_indices = @transform_12, window_bounds = array<i64: 1, 8, 32>}]} {
    %c0_i32 = arith.constant 0 : i32
    %0 = arith.cmpi eq, %arg1, %c0_i32 : i32
    %1 = arith.extui %0 : i1 to i32
    %c0_i32_0 = arith.constant 0 : i32
    %2 = arith.cmpi ne, %1, %c0_i32_0 : i32
    scf.if %2 {
      %cst_69 = arith.constant 0.000000e+00 : f32
      %155 = vector.broadcast %cst_69 : f32 to vector<1x8x32xf32>
      %c0_70 = arith.constant 0 : index
      %c0_71 = arith.constant 0 : index
      %c0_72 = arith.constant 0 : index
      %156 = vector.load %arg14[%c0_70, %c0_71, %c0_72] : memref<1x8x32xf32, #tpu.memory_space<vmem>>, vector<1x8x32xf32>
      tpu.vector_store %arg14[%c0_70, %c0_71, %c0_72], %155 {strides = array<i32>} : memref<1x8x32xf32, #tpu.memory_space<vmem>>, vector<1x8x32xf32>,
    } else {
    }
    %c0 = arith.constant 0 : index
    %c0_1 = arith.constant 0 : index
    %c0_2 = arith.constant 0 : index
    %c0_3 = arith.constant 0 : index
    %3 = vector.load %arg2[%c0, %c0_1, %c0_2, %c0_3] : memref<1x1x8x8xbf16, #tpu.memory_space<vmem>>, vector<1x1x8x8xbf16>
    %4 = vector.shape_cast %3 : vector<1x1x8x8xbf16> to vector<8x8xbf16>
    %c0_4 = arith.constant 0 : index
    %c0_5 = arith.constant 0 : index
    %c0_6 = arith.constant 0 : index
    %5 = vector.load %arg4[%c0_4, %c0_5, %c0_6] : memref<1x8x32xbf16, #tpu.memory_space<vmem>>, vector<1x8x32xbf16>
    %6 = vector.shape_cast %5 : vector<1x8x32xbf16> to vector<8x32xbf16>
    %cst = arith.constant dense<0.000000e+00> : vector<8x32xf32>
    %7 = tpu.matmul %4, %6, %cst {dimension_numbers = #tpu.dot_dimension_numbers<[1], [0], [0], [1], [0, 0, 1, 1], [], []>} : vector<8x8xbf16>, vector<8x32xbf16>, vector<8x32xf32> -> vector<8x32xf32>
    %c0_7 = arith.constant 0 : index
    %c0_8 = arith.constant 0 : index
    %c0_9 = arith.constant 0 : index
    %8 = vector.load %arg5[%c0_7, %c0_8, %c0_9] : memref<1x1x32xf32, #tpu.memory_space<vmem>>, vector<1x1x32xf32>
    %9 = vector.shape_cast %8 : vector<1x1x32xf32> to vector<1x32xf32>
    %10 = vector.broadcast %9 : vector<1x32xf32> to vector<8x32xf32>
    %11 = arith.addf %7, %10 : vector<8x32xf32>
    %12 = arith.truncf %11 : vector<8x32xf32> to vector<8x32xbf16>
    %c0_10 = arith.constant 0 : index
    %c0_11 = arith.constant 0 : index
    %c0_12 = arith.constant 0 : index
    %13 = vector.load %arg6[%c0_10, %c0_11, %c0_12] : memref<1x32x160xbf16, #tpu.memory_space<vmem>>, vector<1x32x160xbf16>
    %14 = vector.shape_cast %13 : vector<1x32x160xbf16> to vector<32x160xbf16>
    %cst_13 = arith.constant dense<0.000000e+00> : vector<8x160xf32>
    %15 = tpu.matmul %12, %14, %cst_13 {dimension_numbers = #tpu.dot_dimension_numbers<[1], [0], [0], [1], [0, 0, 1, 1], [], []>} : vector<8x32xbf16>, vector<32x160xbf16>, vector<8x160xf32> -> vector<8x160xf32>
    %c0_14 = arith.constant 0 : index
    %c0_15 = arith.constant 0 : index
    %c0_16 = arith.constant 0 : index
    %16 = vector.load %arg7[%c0_14, %c0_15, %c0_16] : memref<1x1x32xf32, #tpu.memory_space<vmem>>, vector<1x1x32xf32>
    %17 = vector.shape_cast %16 : vector<1x1x32xf32> to vector<1x32xf32>
    %18 = tpu.iota {dimensions = array<i32: 0>} : vector<8x32xi32>
    %cst_17 = arith.constant 0.000000e+00 : f32
    %19 = vector.broadcast %cst_17 : f32 to vector<8x32xf32>
    %20 = vector.extract_strided_slice %15 {offsets = [0, 0], sizes = [8, 32], strides = [1, 1]} : vector<8x160xf32> to vector<8x32xf32>
    %c2_i32 = arith.constant 2 : i32
    %21 = tpu.dynamic_rotate %20 by %c2_i32 dim 0 : vector<8x32xf32>, i32 -> vector<8x32xf32>
    %c2_i32_18 = arith.constant 2 : i32
    %22 = vector.broadcast %c2_i32_18 : i32 to vector<8x32xi32>
    %23 = arith.cmpi sge, %18, %22 : vector<8x32xi32>
    %c10_i32 = arith.constant 10 : i32
    %24 = vector.broadcast %c10_i32 : i32 to vector<8x32xi32>
    %25 = arith.cmpi slt, %18, %24 : vector<8x32xi32>
    %26 = arith.andi %23, %25 : vector<8x32xi1>
    %cst_19 = arith.constant 0.000000e+00 : f32
    %27 = vector.broadcast %cst_19 : f32 to vector<8x32xf32>
    %28 = arith.select %26, %21, %27 : vector<8x32xi1>, vector<8x32xf32>
    %29 = arith.addf %19, %28 : vector<8x32xf32>
    %30 = vector.extract_strided_slice %15 {offsets = [0, 32], sizes = [8, 32], strides = [1, 1]} : vector<8x160xf32> to vector<8x32xf32>
    %c1_i32 = arith.constant 1 : i32
    %31 = tpu.dynamic_rotate %30 by %c1_i32 dim 0 : vector<8x32xf32>, i32 -> vector<8x32xf32>
    %c1_i32_20 = arith.constant 1 : i32
    %32 = vector.broadcast %c1_i32_20 : i32 to vector<8x32xi32>
    %33 = arith.cmpi sge, %18, %32 : vector<8x32xi32>
    %c9_i32 = arith.constant 9 : i32
    %34 = vector.broadcast %c9_i32 : i32 to vector<8x32xi32>
    %35 = arith.cmpi slt, %18, %34 : vector<8x32xi32>
    %36 = arith.andi %33, %35 : vector<8x32xi1>
    %cst_21 = arith.constant 0.000000e+00 : f32
    %37 = vector.broadcast %cst_21 : f32 to vector<8x32xf32>
    %38 = arith.select %36, %31, %37 : vector<8x32xi1>, vector<8x32xf32>
    %39 = arith.addf %29, %38 : vector<8x32xf32>
    %40 = vector.extract_strided_slice %15 {offsets = [0, 64], sizes = [8, 32], strides = [1, 1]} : vector<8x160xf32> to vector<8x32xf32>
    %41 = arith.addf %39, %40 : vector<8x32xf32>
    %42 = vector.extract_strided_slice %15 {offsets = [0, 96], sizes = [8, 32], strides = [1, 1]} : vector<8x160xf32> to vector<8x32xf32>
    %c7_i32 = arith.constant 7 : i32
    %43 = tpu.dynamic_rotate %42 by %c7_i32 dim 0 : vector<8x32xf32>, i32 -> vector<8x32xf32>
    %c-1_i32 = arith.constant -1 : i32
    %44 = vector.broadcast %c-1_i32 : i32 to vector<8x32xi32>
    %45 = arith.cmpi sge, %18, %44 : vector<8x32xi32>
    %c7_i32_22 = arith.constant 7 : i32
    %46 = vector.broadcast %c7_i32_22 : i32 to vector<8x32xi32>
    %47 = arith.cmpi slt, %18, %46 : vector<8x32xi32>
    %48 = arith.andi %45, %47 : vector<8x32xi1>
    %cst_23 = arith.constant 0.000000e+00 : f32
    %49 = vector.broadcast %cst_23 : f32 to vector<8x32xf32>
    %50 = arith.select %48, %43, %49 : vector<8x32xi1>, vector<8x32xf32>
    %51 = arith.addf %41, %50 : vector<8x32xf32>
    %52 = vector.extract_strided_slice %15 {offsets = [0, 128], sizes = [8, 32], strides = [1, 1]} : vector<8x160xf32> to vector<8x32xf32>
    %c6_i32 = arith.constant 6 : i32
    %53 = tpu.dynamic_rotate %52 by %c6_i32 dim 0 : vector<8x32xf32>, i32 -> vector<8x32xf32>
    %c-2_i32 = arith.constant -2 : i32
    %54 = vector.broadcast %c-2_i32 : i32 to vector<8x32xi32>
    %55 = arith.cmpi sge, %18, %54 : vector<8x32xi32>
    %c6_i32_24 = arith.constant 6 : i32
    %56 = vector.broadcast %c6_i32_24 : i32 to vector<8x32xi32>
    %57 = arith.cmpi slt, %18, %56 : vector<8x32xi32>
    %58 = arith.andi %55, %57 : vector<8x32xi1>
    %cst_25 = arith.constant 0.000000e+00 : f32
    %59 = vector.broadcast %cst_25 : f32 to vector<8x32xf32>
    %60 = arith.select %58, %53, %59 : vector<8x32xi1>, vector<8x32xf32>
    %61 = arith.addf %51, %60 : vector<8x32xf32>
    %62 = vector.broadcast %17 : vector<1x32xf32> to vector<8x32xf32>
    %63 = arith.addf %61, %62 : vector<8x32xf32>
    %cst_26 = arith.constant 0.000000e+00 : f32
    %64 = vector.broadcast %cst_26 : f32 to vector<8x32xf32>
    %65 = arith.maximumf %63, %64 : vector<8x32xf32>
    %66 = arith.truncf %65 : vector<8x32xf32> to vector<8x32xbf16>
    %c0_27 = arith.constant 0 : index
    %c0_28 = arith.constant 0 : index
    %c0_29 = arith.constant 0 : index
    %67 = vector.load %arg8[%c0_27, %c0_28, %c0_29] : memref<1x32x160xbf16, #tpu.memory_space<vmem>>, vector<1x32x160xbf16>
    %68 = vector.shape_cast %67 : vector<1x32x160xbf16> to vector<32x160xbf16>
    %cst_30 = arith.constant dense<0.000000e+00> : vector<8x160xf32>
    %69 = tpu.matmul %66, %68, %cst_30 {dimension_numbers = #tpu.dot_dimension_numbers<[1], [0], [0], [1], [0, 0, 1, 1], [], []>} : vector<8x32xbf16>, vector<32x160xbf16>, vector<8x160xf32> -> vector<8x160xf32>
    %c0_31 = arith.constant 0 : index
    %c0_32 = arith.constant 0 : index
    %c0_33 = arith.constant 0 : index
    %70 = vector.load %arg9[%c0_31, %c0_32, %c0_33] : memref<1x1x32xf32, #tpu.memory_space<vmem>>, vector<1x1x32xf32>
    %71 = vector.shape_cast %70 : vector<1x1x32xf32> to vector<1x32xf32>
    %72 = tpu.iota {dimensions = array<i32: 0>} : vector<8x32xi32>
    %cst_34 = arith.constant 0.000000e+00 : f32
    %73 = vector.broadcast %cst_34 : f32 to vector<8x32xf32>
    %74 = vector.extract_strided_slice %69 {offsets = [0, 0], sizes = [8, 32], strides = [1, 1]} : vector<8x160xf32> to vector<8x32xf32>
    %c2_i32_35 = arith.constant 2 : i32
    %75 = tpu.dynamic_rotate %74 by %c2_i32_35 dim 0 : vector<8x32xf32>, i32 -> vector<8x32xf32>
    %c2_i32_36 = arith.constant 2 : i32
    %76 = vector.broadcast %c2_i32_36 : i32 to vector<8x32xi32>
    %77 = arith.cmpi sge, %72, %76 : vector<8x32xi32>
    %c10_i32_37 = arith.constant 10 : i32
    %78 = vector.broadcast %c10_i32_37 : i32 to vector<8x32xi32>
    %79 = arith.cmpi slt, %72, %78 : vector<8x32xi32>
    %80 = arith.andi %77, %79 : vector<8x32xi1>
    %cst_38 = arith.constant 0.000000e+00 : f32
    %81 = vector.broadcast %cst_38 : f32 to vector<8x32xf32>
    %82 = arith.select %80, %75, %81 : vector<8x32xi1>, vector<8x32xf32>
    %83 = arith.addf %73, %82 : vector<8x32xf32>
    %84 = vector.extract_strided_slice %69 {offsets = [0, 32], sizes = [8, 32], strides = [1, 1]} : vector<8x160xf32> to vector<8x32xf32>
    %c1_i32_39 = arith.constant 1 : i32
    %85 = tpu.dynamic_rotate %84 by %c1_i32_39 dim 0 : vector<8x32xf32>, i32 -> vector<8x32xf32>
    %c1_i32_40 = arith.constant 1 : i32
    %86 = vector.broadcast %c1_i32_40 : i32 to vector<8x32xi32>
    %87 = arith.cmpi sge, %72, %86 : vector<8x32xi32>
    %c9_i32_41 = arith.constant 9 : i32
    %88 = vector.broadcast %c9_i32_41 : i32 to vector<8x32xi32>
    %89 = arith.cmpi slt, %72, %88 : vector<8x32xi32>
    %90 = arith.andi %87, %89 : vector<8x32xi1>
    %cst_42 = arith.constant 0.000000e+00 : f32
    %91 = vector.broadcast %cst_42 : f32 to vector<8x32xf32>
    %92 = arith.select %90, %85, %91 : vector<8x32xi1>, vector<8x32xf32>
    %93 = arith.addf %83, %92 : vector<8x32xf32>
    %94 = vector.extract_strided_slice %69 {offsets = [0, 64], sizes = [8, 32], strides = [1, 1]} : vector<8x160xf32> to vector<8x32xf32>
    %95 = arith.addf %93, %94 : vector<8x32xf32>
    %96 = vector.extract_strided_slice %69 {offsets = [0, 96], sizes = [8, 32], strides = [1, 1]} : vector<8x160xf32> to vector<8x32xf32>
    %c7_i32_43 = arith.constant 7 : i32
    %97 = tpu.dynamic_rotate %96 by %c7_i32_43 dim 0 : vector<8x32xf32>, i32 -> vector<8x32xf32>
    %c-1_i32_44 = arith.constant -1 : i32
    %98 = vector.broadcast %c-1_i32_44 : i32 to vector<8x32xi32>
    %99 = arith.cmpi sge, %72, %98 : vector<8x32xi32>
    %c7_i32_45 = arith.constant 7 : i32
    %100 = vector.broadcast %c7_i32_45 : i32 to vector<8x32xi32>
    %101 = arith.cmpi slt, %72, %100 : vector<8x32xi32>
    %102 = arith.andi %99, %101 : vector<8x32xi1>
    %cst_46 = arith.constant 0.000000e+00 : f32
    %103 = vector.broadcast %cst_46 : f32 to vector<8x32xf32>
    %104 = arith.select %102, %97, %103 : vector<8x32xi1>, vector<8x32xf32>
    %105 = arith.addf %95, %104 : vector<8x32xf32>
    %106 = vector.extract_strided_slice %69 {offsets = [0, 128], sizes = [8, 32], strides = [1, 1]} : vector<8x160xf32> to vector<8x32xf32>
    %c6_i32_47 = arith.constant 6 : i32
    %107 = tpu.dynamic_rotate %106 by %c6_i32_47 dim 0 : vector<8x32xf32>, i32 -> vector<8x32xf32>
    %c-2_i32_48 = arith.constant -2 : i32
    %108 = vector.broadcast %c-2_i32_48 : i32 to vector<8x32xi32>
    %109 = arith.cmpi sge, %72, %108 : vector<8x32xi32>
    %c6_i32_49 = arith.constant 6 : i32
    %110 = vector.broadcast %c6_i32_49 : i32 to vector<8x32xi32>
    %111 = arith.cmpi slt, %72, %110 : vector<8x32xi32>
    %112 = arith.andi %109, %111 : vector<8x32xi1>
    %cst_50 = arith.constant 0.000000e+00 : f32
    %113 = vector.broadcast %cst_50 : f32 to vector<8x32xf32>
    %114 = arith.select %112, %107, %113 : vector<8x32xi1>, vector<8x32xf32>
    %115 = arith.addf %105, %114 : vector<8x32xf32>
    %116 = vector.broadcast %71 : vector<1x32xf32> to vector<8x32xf32>
    %117 = arith.addf %115, %116 : vector<8x32xf32>
    %118 = arith.addf %117, %11 : vector<8x32xf32>
    %cst_51 = arith.constant dense<0.000000e+00> : vector<8xf32>
    %119 = vector.multi_reduction <add>, %118, %cst_51 [1] : vector<8x32xf32> to vector<8xf32>
    %120 = vector.shape_cast %119 : vector<8xf32> to vector<8x1xf32>
    %cst_52 = arith.constant 3.200000e+01 : f32
    %121 = vector.broadcast %cst_52 : f32 to vector<8x1xf32>
    %122 = arith.divf %120, %121 : vector<8x1xf32>
    %123 = vector.broadcast %122 : vector<8x1xf32> to vector<8x32xf32>
    %124 = arith.subf %118, %123 : vector<8x32xf32>
    %125 = arith.mulf %124, %124 : vector<8x32xf32>
    %cst_53 = arith.constant dense<0.000000e+00> : vector<8xf32>
    %126 = vector.multi_reduction <add>, %125, %cst_53 [1] : vector<8x32xf32> to vector<8xf32>
    %127 = vector.shape_cast %126 : vector<8xf32> to vector<8x1xf32>
    %cst_54 = arith.constant 3.100000e+01 : f32
    %128 = vector.broadcast %cst_54 : f32 to vector<8x1xf32>
    %129 = arith.divf %127, %128 : vector<8x1xf32>
    %130 = math.sqrt %129 : vector<8x1xf32>
    %cst_55 = arith.constant 9.99999997E-7 : f32
    %131 = vector.broadcast %cst_55 : f32 to vector<8x1xf32>
    %132 = arith.addf %130, %131 : vector<8x1xf32>
    %133 = tpu.reciprocal %132 {approx = true} : vector<8x1xf32> -> vector<8x1xf32>
    %c0_56 = arith.constant 0 : index
    %c0_57 = arith.constant 0 : index
    %c0_58 = arith.constant 0 : index
    %134 = vector.load %arg10[%c0_56, %c0_57, %c0_58] : memref<1x1x32xf32, #tpu.memory_space<vmem>>, vector<1x1x32xf32>
    %135 = vector.shape_cast %134 : vector<1x1x32xf32> to vector<1x32xf32>
    %136 = vector.broadcast %122 : vector<8x1xf32> to vector<8x32xf32>
    %137 = arith.subf %118, %136 : vector<8x32xf32>
    %138 = vector.broadcast %135 : vector<1x32xf32> to vector<8x32xf32>
    %139 = arith.mulf %138, %137 : vector<8x32xf32>
    %140 = vector.broadcast %133 : vector<8x1xf32> to vector<8x32xf32>
    %141 = arith.mulf %139, %140 : vector<8x32xf32>
    %c0_59 = arith.constant 0 : index
    %c0_60 = arith.constant 0 : index
    %c0_61 = arith.constant 0 : index
    %142 = vector.load %arg11[%c0_59, %c0_60, %c0_61] : memref<1x1x32xf32, #tpu.memory_space<vmem>>, vector<1x1x32xf32>
    %143 = vector.shape_cast %142 : vector<1x1x32xf32> to vector<1x32xf32>
    %144 = vector.broadcast %143 : vector<1x32xf32> to vector<8x32xf32>
    %145 = arith.addf %141, %144 : vector<8x32xf32>
    %c0_62 = arith.constant 0 : index
    %c0_63 = arith.constant 0 : index
    %c0_64 = arith.constant 0 : index
    %146 = vector.load %arg14[%c0_62, %c0_63, %c0_64] : memref<1x8x32xf32, #tpu.memory_space<vmem>>, vector<1x8x32xf32>
    %147 = vector.shape_cast %146 : vector<1x8x32xf32> to vector<8x32xf32>
    %148 = arith.addf %147, %145 : vector<8x32xf32>
    %c0_65 = arith.constant 0 : index
    %c0_66 = arith.constant 0 : index
    %c0_67 = arith.constant 0 : index
    %149 = vector.load %arg14[%c0_65, %c0_66, %c0_67] : memref<1x8x32xf32, #tpu.memory_space<vmem>>, vector<1x8x32xf32>
    %150 = vector.shape_cast %149 : vector<1x8x32xf32> to vector<8x32xf32>
    %151 = vector.shape_cast %148 : vector<8x32xf32> to vector<1x8x32xf32>
    tpu.vector_store %arg14[%c0_65, %c0_66, %c0_67], %151 {strides = array<i32>} : memref<1x8x32xf32, #tpu.memory_space<vmem>>, vector<1x8x32xf32>,
    %c3_i32 = arith.constant 3 : i32
    %152 = arith.cmpi eq, %arg1, %c3_i32 : i32
    %153 = arith.extui %152 : i1 to i32
    %c0_i32_68 = arith.constant 0 : i32
    %154 = arith.cmpi ne, %153, %c0_i32_68 : i32
    scf.if %154 {
      %c0_69 = arith.constant 0 : index
      %c0_70 = arith.constant 0 : index
      %c0_71 = arith.constant 0 : index
      %155 = vector.load %arg3[%c0_69, %c0_70, %c0_71] : memref<1x8x32xf32, #tpu.memory_space<vmem>>, vector<1x8x32xf32>
      %156 = vector.shape_cast %155 : vector<1x8x32xf32> to vector<8x32xf32>
      %c0_72 = arith.constant 0 : index
      %c0_73 = arith.constant 0 : index
      %c0_74 = arith.constant 0 : index
      %157 = vector.load %arg14[%c0_72, %c0_73, %c0_74] : memref<1x8x32xf32, #tpu.memory_space<vmem>>, vector<1x8x32xf32>
      %158 = vector.shape_cast %157 : vector<1x8x32xf32> to vector<8x32xf32>
      %159 = arith.truncf %156 : vector<8x32xf32> to vector<8x32xbf16>
      %c0_75 = arith.constant 0 : index
      %c0_76 = arith.constant 0 : index
      %160 = vector.load %arg12[%c0_75, %c0_76] : memref<32x32xbf16, #tpu.memory_space<vmem>>, vector<32x32xbf16>
      %cst_77 = arith.constant dense<0.000000e+00> : vector<8x32xf32>
      %161 = tpu.matmul %159, %160, %cst_77 {dimension_numbers = #tpu.dot_dimension_numbers<[1], [0], [0], [1], [0, 0, 1, 1], [], []>} : vector<8x32xbf16>, vector<32x32xbf16>, vector<8x32xf32> -> vector<8x32xf32>
      %c0_78 = arith.constant 0 : index
      %c0_79 = arith.constant 0 : index
      %162 = vector.load %arg13[%c0_78, %c0_79] : memref<1x32xf32, #tpu.memory_space<vmem>>, vector<1x32xf32>
      %163 = vector.broadcast %162 : vector<1x32xf32> to vector<8x32xf32>
      %164 = arith.addf %161, %163 : vector<8x32xf32>
      %165 = arith.negf %164 : vector<8x32xf32>
      %166 = math.exp %165 : vector<8x32xf32>
      %cst_80 = arith.constant 1.000000e+00 : f32
      %167 = vector.broadcast %cst_80 : f32 to vector<8x32xf32>
      %168 = arith.addf %167, %166 : vector<8x32xf32>
      %169 = arith.divf %167, %168 : vector<8x32xf32>
      %170 = arith.mulf %169, %158 : vector<8x32xf32>
      %cst_81 = arith.constant 1.000000e+00 : f32
      %171 = vector.broadcast %cst_81 : f32 to vector<8x32xf32>
      %172 = arith.subf %171, %169 : vector<8x32xf32>
      %173 = arith.mulf %172, %156 : vector<8x32xf32>
      %174 = arith.addf %170, %173 : vector<8x32xf32>
      %c0_82 = arith.constant 0 : index
      %c0_83 = arith.constant 0 : index
      %c0_84 = arith.constant 0 : index
      %175 = vector.load %arg14[%c0_82, %c0_83, %c0_84] : memref<1x8x32xf32, #tpu.memory_space<vmem>>, vector<1x8x32xf32>
      %176 = vector.shape_cast %175 : vector<1x8x32xf32> to vector<8x32xf32>
      %177 = vector.shape_cast %174 : vector<8x32xf32> to vector<1x8x32xf32>
      tpu.vector_store %arg14[%c0_82, %c0_83, %c0_84], %177 {strides = array<i32>} : memref<1x8x32xf32, #tpu.memory_space<vmem>>, vector<1x8x32xf32>,
    } else {
    }
    return
  }
  func.func @transform_0(%arg0: i32, %arg1: i32) -> (i32, i32, i32, i32) {
    %c0_i32 = arith.constant 0 : i32
    %c0_i32_0 = arith.constant 0 : i32
    %c0_i32_1 = arith.constant 0 : i32
    return %arg1, %arg0, %c0_i32, %c0_i32_0 : i32, i32, i32, i32
  }
  func.func @transform_1(%arg0: i32, %arg1: i32) -> (i32, i32, i32) {
    %c0_i32 = arith.constant 0 : i32
    %c0_i32_0 = arith.constant 0 : i32
    %c0_i32_1 = arith.constant 0 : i32
    return %arg0, %c0_i32, %c0_i32_0 : i32, i32, i32
  }
  func.func @transform_2(%arg0: i32, %arg1: i32) -> (i32, i32, i32) {
    %c0_i32 = arith.constant 0 : i32
    %c0_i32_0 = arith.constant 0 : i32
    %c0_i32_1 = arith.constant 0 : i32
    return %arg1, %c0_i32, %c0_i32_0 : i32, i32, i32
  }
  func.func @transform_3(%arg0: i32, %arg1: i32) -> (i32, i32, i32) {
    %c0_i32 = arith.constant 0 : i32
    %c0_i32_0 = arith.constant 0 : i32
    %c0_i32_1 = arith.constant 0 : i32
    return %arg1, %c0_i32, %c0_i32_0 : i32, i32, i32
  }
  func.func @transform_4(%arg0: i32, %arg1: i32) -> (i32, i32, i32) {
    %c0_i32 = arith.constant 0 : i32
    %c0_i32_0 = arith.constant 0 : i32
    %c0_i32_1 = arith.constant 0 : i32
    return %arg1, %c0_i32, %c0_i32_0 : i32, i32, i32
  }
  func.func @transform_5(%arg0: i32, %arg1: i32) -> (i32, i32, i32) {
    %c0_i32 = arith.constant 0 : i32
    %c0_i32_0 = arith.constant 0 : i32
    %c0_i32_1 = arith.constant 0 : i32
    return %arg1, %c0_i32, %c0_i32_0 : i32, i32, i32
  }
  func.func @transform_6(%arg0: i32, %arg1: i32) -> (i32, i32, i32) {
    %c0_i32 = arith.constant 0 : i32
    %c0_i32_0 = arith.constant 0 : i32
    %c0_i32_1 = arith.constant 0 : i32
    return %arg1, %c0_i32, %c0_i32_0 : i32, i32, i32
  }
  func.func @transform_7(%arg0: i32, %arg1: i32) -> (i32, i32, i32) {
    %c0_i32 = arith.constant 0 : i32
    %c0_i32_0 = arith.constant 0 : i32
    %c0_i32_1 = arith.constant 0 : i32
    return %arg1, %c0_i32, %c0_i32_0 : i32, i32, i32
  }
  func.func @transform_8(%arg0: i32, %arg1: i32) -> (i32, i32, i32) {
    %c0_i32 = arith.constant 0 : i32
    %c0_i32_0 = arith.constant 0 : i32
    %c0_i32_1 = arith.constant 0 : i32
    return %arg1, %c0_i32, %c0_i32_0 : i32, i32, i32
  }
  func.func @transform_9(%arg0: i32, %arg1: i32) -> (i32, i32, i32) {
    %c0_i32 = arith.constant 0 : i32
    %c0_i32_0 = arith.constant 0 : i32
    %c0_i32_1 = arith.constant 0 : i32
    return %arg1, %c0_i32, %c0_i32_0 : i32, i32, i32
  }
  func.func @transform_10(%arg0: i32, %arg1: i32) -> (i32, i32) {
    %c0_i32 = arith.constant 0 : i32
    %c0_i32_0 = arith.constant 0 : i32
    %c0_i32_1 = arith.constant 0 : i32
    return %c0_i32, %c0_i32_0 : i32, i32
  }
  func.func @transform_11(%arg0: i32, %arg1: i32) -> (i32, i32) {
    %c0_i32 = arith.constant 0 : i32
    %c0_i32_0 = arith.constant 0 : i32
    %c0_i32_1 = arith.constant 0 : i32
    return %c0_i32, %c0_i32_0 : i32, i32
  }
  func.func @transform_12(%arg0: i32, %arg1: i32) -> (i32, i32, i32) {
    %c0_i32 = arith.constant 0 : i32
    %c0_i32_0 = arith.constant 0 : i32
    %c0_i32_1 = arith.constant 0 : i32
    return %arg0, %c0_i32, %c0_i32_0 : i32, i32, i32
  }
}

</mosaic_0001>

<bundles_post_ra>
// kernel: weighted_transformer_block.6
= control target key start
LH: loop header
LB: loop body
LE: loop exit
PB: predicated region body
PF: predicated region fallthrough
CT: control target
= control target key end

     0   :  { %11 = vsyncpa [#allocation3], 0  ;;  %s459_s0 = inlined_call_operand.hbm [shape: f32[16,32], index: 0, kind: input, shape index: {}]   ;;  %s460_s1 = inlined_call_operand.hbm [shape: f32[16,32], index: 1, kind: input, shape index: {}]   ;;  %s461_s2 = inlined_call_operand.vmem [shape: f32[1,32], index: 2, kind: input, shape index: {}]   ;;  %s462_s3 = inlined_call_operand.vmem [shape: f32[1,32], index: 3, kind: input, shape index: {}]   ;;  %s463_s4 = inlined_call_operand.hbm [shape: bf16[32,32], index: 4, kind: input, shape index: {}]   ;;  %s464_s5 = inlined_call_operand.vmem [shape: f32[1,32], index: 5, kind: input, shape index: {}]   ;;  %s465_s6 = inlined_call_operand.vmem [shape: f32[16,32], index: 6, kind: output, shape index: {}]  }
   0x1   :  { %12 = vsyncpa [#allocation5], 0  ;;  %s342_s21 = smov [#allocation4]   ;;  %s343_s23 = smov [#allocation2]  }
   0x2   :  { %s30_s22 = sshll.u32 %s342_s21, 4  ;;  %s18_s24 = sshll.u32 %s343_s23, 4  ;;  %s31_s22 = int_to_ptr.vmem [resolvable:$true] %s30_s22  ;;  %s386_s24 = int_to_ptr.vmem [resolvable:$true] %s18_s24 }
   0x3   :  { %s272_s27 = scalar_lea.hbm %s460_s1, 256 }
   0x4   :  { %p273_p0 = scmp.ne.s32.totalorder %s460_s1, %s272_s27  ;;  %p276_p1 = scmp.lt.u32.totalorder %s272_s27, %s460_s1 }
   0x6   :  { %p278_p2 = pnand %p276_p1, %p273_p0 }
   0x8   :  { %281 = shalt.err (!%p278_p2)
}
   0x9   :  { %s282_s8 = scalar_lea.vmem %s31_s22, 256  ;;  %p287_p4 = scmp.lt.s32.totalorder %s31_s22, %s31_s22 }
   0xa   :  { %p283_p3 = scmp.ne.s32.totalorder %s31_s22, %s282_s8  ;;  %p288_p5 = scmp.lt.s32.totalorder %s282_s8, %s282_s8 }
   0xc   :  { %p289_p6 = por %p288_p5, %p287_p4 }
   0xe   :  { %p290_p7 = pnand %p289_p6, %p283_p3 }
  0x10   :  { %293 = shalt.err (!%p290_p7)
}
  0x11   :  { %s344_s9 = smov 128   ;;  %s345_s10 = smov 8  }
  0x12   :  { %36 = dma.hbm_to_vmem [thread:$0]  %s460_s1, 256, %s31_s22, [#allocation5], %s344_s9, %s344_s9, %s345_s10  }
  0x13   :  { %s294_s15 = scalar_lea.hbm %s459_s0, 256 }
  0x14   :  { %p295_p8 = scmp.ne.s32.totalorder %s459_s0, %s294_s15  ;;  %p298_p9 = scmp.lt.u32.totalorder %s294_s15, %s459_s0 }
  0x16   :  { %p300_p10 = pnand %p298_p9, %p295_p8 }
  0x18   :  { %303 = shalt.err (!%p300_p10)
}
  0x19   :  { %s304_s20 = scalar_lea.vmem %s386_s24, 256  ;;  %p309_p12 = scmp.lt.s32.totalorder %s386_s24, %s386_s24 }
  0x1a   :  { %p305_p11 = scmp.ne.s32.totalorder %s386_s24, %s304_s20  ;;  %p310_p13 = scmp.lt.s32.totalorder %s304_s20, %s304_s20 }
  0x1c   :  { %p311_p0 = por %p310_p13, %p309_p12 }
  0x1e   :  { %p312_p1 = pnand %p311_p0, %p305_p11 }
  0x20   :  { %315 = shalt.err (!%p312_p1)
}
  0x21   :  { %24 = dma.hbm_to_vmem [thread:$0]  %s459_s0, 256, %s386_s24, [#allocation3], %s344_s9, %s344_s9, %s345_s10  }
  0x22   :  { %s346_s22 = smov [#allocation6]   ;;  %s316_s27 = scalar_lea.hbm %s463_s4, 256 }
  0x23   :  { %s46_s23 = sshll.u32 %s346_s22, 4  ;;  %p317_p2 = scmp.ne.s32.totalorder %s463_s4, %s316_s27  ;;  %s47_s23 = int_to_ptr.vmem [resolvable:$true] %s46_s23 }
  0x24   :  { %p320_p3 = scmp.lt.u32.totalorder %s316_s27, %s463_s4 }
  0x26   :  { %p322_p4 = pnand %p320_p3, %p317_p2 }
  0x28   :  { %325 = shalt.err (!%p322_p4)
}
  0x29   :  { %s326_s8 = scalar_lea.vmem %s47_s23, 256  ;;  %p331_p6 = scmp.lt.s32.totalorder %s47_s23, %s47_s23 }
  0x2a   :  { %p327_p5 = scmp.ne.s32.totalorder %s47_s23, %s326_s8  ;;  %p332_p7 = scmp.lt.s32.totalorder %s326_s8, %s326_s8 }
  0x2c   :  { %p333_p8 = por %p332_p7, %p331_p6 }
  0x2e   :  { %p334_p9 = pnand %p333_p8, %p327_p5 }
  0x30   :  { %337 = shalt.err (!%p334_p9)
}
  0x31   :  { %s347_s0 = smov 64   ;;  %s348_s24 = smov 4  }
  0x32   :  { %52 = dma.hbm_to_vmem [thread:$0]  %s463_s4, 256, %s47_s23, [#allocation5], %s347_s0, %s347_s0, %s348_s24  }
  0x33   :  { %338 = dma.done.wait [#allocation3], 256  }
  0x34   :  { %339 = vsyncadd [#allocation3], 4294967040 }
  0x35   :  { %340 = dma.done.wait [#allocation5], 512  }
  0x36   :  { %341 = vsyncadd [#allocation5], 4294966784  ;;  %v349_v0 = vmov 0.0   ;;  %vm350_vm0 = vmmov 0   ;;  %vm69_vm1 = vcmask 261120   ;;  %v65_v1 = vld [vmem:[#allocation2] sm:$0xff] }
  0x37   :  { %237 = vmatprep.subr.bf16.mxu0 %v349_v0  ;;  %241 = vmatprep.mubr.msk.bf16.mxu0 %vm350_vm0, %v349_v0  ;;  %v66_v2 = vld [vmem:[#allocation2 + $0x8] sm:$0xff]  ;;  %v70_v3 = vsel %vm69_vm1, %v65_v1, 0.0  ;;  %v254_v4 = vld [vmem:[#allocation6] sm:$0xff]   ;;  %v431_v7 = vld [vmem:[#allocation4] sm:$0xff] }
  0x38   :  { %71 = vadd.xlane.f32.xlu0 %v70_v3  ;;  %v73_v5 = vsel %vm69_vm1, %v66_v2, 0.0  ;;  %238 = vmatpush3.bf16.msra.mxu0 %v254_v4  ;;  %v255_v6 = vld [vmem:[#allocation6 + $0x8] sm:$0xff]   ;;  %v433_v8 = vld [vmem:[#allocation4 + $0x8] sm:$0xff]  ;;  %v228_v24 = vld [vmem:[%s464_s5] ss:$0 sm:$0xff] }
  0x39   :  { %239 = vmatprep.subr.bf16.mxu0 %v349_v0  ;;  %v130_v9 = vpack.c.bf16 %v433_v8, %v431_v7  ;;  %v226_v50 = vld [vmem:[%s461_s2] ss:$0 sm:$0xff] }
  0x3a   :  { %v227_v54 = vld [vmem:[%s462_s3] ss:$0 sm:$0xff] }
  0x3c   :  { %74 = vadd.xlane.f32.xlu0 %v73_v5  ;;  %240 = vmatpush3.bf16.msra.mxu0 %v255_v6 }
  0x3f   :  { %242 = vmatmul.mubr.msk.bf16.vlgmr.msra.gmra.mrb[0].mxu0 %vm69_vm1, %v130_v9 }
  0xc5   :  { %v72_v10 = vpop.xlane.xlu0 %71 }
  0xc6   :  { %v77_v11 = vmul.f32 0.03125, %v72_v10 }
  0xc8   :  { %v79_v12 = vsub.f32 %v65_v1, %v77_v11 }
  0xc9   :  { %v75_v13 = vpop.xlane.xlu0 %74 }
  0xca   :  { %v78_v14 = vmul.f32 0.03125, %v75_v13  ;;  %v81_v15 = vmul.f32 %v79_v12, %v79_v12  ;;  %v117_v51 = vmul.f32 %v226_v50, %v79_v12 }
  0xcc   :  { %v80_v16 = vsub.f32 %v66_v2, %v78_v14  ;;  %v83_v17 = vsel %vm69_vm1, %v81_v15, 0.0 }
  0xcd   :  { %84 = vadd.xlane.f32.xlu1 %v83_v17 }
  0xce   :  { %v82_v18 = vmul.f32 %v80_v16, %v80_v16  ;;  %v118_v57 = vmul.f32 %v226_v50, %v80_v16 }
  0xd0   :  { %v86_v19 = vsel %vm69_vm1, %v82_v18, 0.0 }
  0xd1   :  { %87 = vadd.xlane.f32.xlu1 %v86_v19 }
 0x112   :  { %v191_v20 = vpop.f32.mrb[0].mxu0 }
 0x113   :  { %v243_v21 = vpop.f32.mrb[1].mxu0  ;;  %v192_v25 = vadd.f32 %v228_v24, %v191_v20 }
 0x114   :  { %v194_v22 = vpop.f32.mrb[2].mxu0 }
 0x115   :  { %v244_v23 = vpop.f32.mrb[3].mxu0  ;;  %v232_v26 = vmul.f32 -1.442695, %v192_v25  ;;  %v195_v27 = vadd.f32 %v228_v24, %v194_v22 }
 0x117   :  { %256 = vpow2.f32 %v232_v26  ;;  %v233_v30 = vmul.f32 -1.442695, %v195_v27 }
 0x121   :  { %v257_v33 = vpop.eup %256 }
 0x122   :  { %v204_v34 = vadd.f32 1.0, %v257_v33 }
 0x15a   :  { %v85_v28 = vpop.xlane.xlu1 %84 }
 0x15b   :  { %v90_v29 = vmul.f32 0.032258064, %v85_v28 }
 0x15d   :  { %258 = vrsqrt.f32 %v90_v29  ;;  %vm94_vm2 = vcmp.eq.f32.partialorder %v90_v29, inf  ;;  %v97_v38 = vand.u32 2147483648, %v90_v29  ;;  %vm96_vm3 = vcmp.eq.f32.partialorder %v90_v29, 0.0 }
 0x15e   :  { %v88_v31 = vpop.xlane.xlu1 %87  ;;  %260 = vpow2.f32 %v233_v30 }
 0x15f   :  { %v91_v32 = vmul.f32 0.032258064, %v88_v31 }
 0x161   :  { %262 = vrsqrt.f32 %v91_v32  ;;  %vm101_vm4 = vcmp.eq.f32.partialorder %v91_v32, inf  ;;  %v104_v45 = vand.u32 2147483648, %v91_v32  ;;  %vm103_vm5 = vcmp.eq.f32.partialorder %v91_v32, 0.0 }
 0x162   :  { %264 = vrcp.f32 %v204_v34 }
 0x167   :  { %v259_v35 = vpop.eup %258 }
 0x168   :  { %v93_v36 = vmul.f32 %v259_v35, %v90_v29  ;;  %v261_v37 = vpop.eup %260 }
 0x169   :  { %v205_v44 = vadd.f32 1.0, %v261_v37 }
 0x16a   :  { %v95_v39 = vsel %vm94_vm2, %v90_v29, %v93_v36 }
 0x16b   :  { %v263_v40 = vpop.eup %262  ;;  %v98_v41 = vsel %vm96_vm3, %v97_v38, %v95_v39 }
 0x16c   :  { %v106_v42 = vadd.f32 1e-06, %v98_v41  ;;  %v100_v43 = vmul.f32 %v263_v40, %v91_v32  ;;  %v265_v49 = vpop.eup %264 }
 0x16d   :  { %v212_v52 = vsub.f32 1.0, %v265_v49 }
 0x16e   :  { %266 = vrcp.f32 %v106_v42  ;;  %v102_v46 = vsel %vm101_vm4, %v91_v32, %v100_v43 }
 0x16f   :  { %v105_v47 = vsel %vm103_vm5, %v104_v45, %v102_v46  ;;  %268 = vrcp.f32 %v205_v44  ;;  %v214_v59 = vmul.f32 %v212_v52, %v431_v7 }
 0x170   :  { %v107_v48 = vadd.f32 1e-06, %v105_v47 }
 0x172   :  { %270 = vrcp.f32 %v107_v48 }
 0x178   :  { %v267_v53 = vpop.eup %266 }
 0x179   :  { %v119_v55 = vmul.f32 %v267_v53, %v117_v51  ;;  %v269_v56 = vpop.eup %268 }
 0x17a   :  { %v213_v63 = vsub.f32 1.0, %v269_v56 }
 0x17b   :  { %v128_v58 = vadd.f32 %v227_v54, %v119_v55 }
 0x17c   :  { %v271_v60 = vpop.eup %270  ;;  %v215_v3 = vmul.f32 %v213_v63, %v433_v8 }
 0x17d   :  { %v210_v61 = vmul.f32 %v265_v49, %v128_v58  ;;  %v120_v62 = vmul.f32 %v271_v60, %v118_v57 }
 0x17f   :  { %v216_v0 = vadd.f32 %v214_v59, %v210_v61  ;;  %v129_v1 = vadd.f32 %v227_v54, %v120_v62 }
 0x181   :  { %218 = vst.msk [vmem:[%s465_s6] sm:$0xff] %vm69_vm1, %v216_v0  ;;  %v211_v2 = vmul.f32 %v269_v56, %v129_v1 }
 0x183   :  { %v217_v4 = vadd.f32 %v215_v3, %v211_v2 }
 0x185   :  { %219 = vst.msk [vmem:[%s465_s6 + $0x8] sm:$0xff] %vm69_vm1, %v217_v4 }
 0x186   :  { %224 = vsyncpa [#allocation3], 1 }
 0x187   :  { %225 = vsyncpa [#allocation5], 1 }

// kernel: weighted_transformer_block.4
= control target key start
LH: loop header
LB: loop body
LE: loop exit
PB: predicated region body
PF: predicated region fallthrough
CT: control target
= control target key end

     0   :  { %v164_v1 = vmov 0.0   ;;  %vm165_vm0 = vmmov 0   ;;  %s216_s0 = inlined_call_operand.vmem [shape: f32[16,32], index: 0, kind: input, shape index: {}]   ;;  %s217_s1 = inlined_call_operand.vmem [shape: bf16[32,96], index: 1, kind: input, shape index: {}]   ;;  %s218_s2 = inlined_call_operand.vmem [shape: f32[1,96], index: 2, kind: input, shape index: {}]   ;;  %s219_s3 = inlined_call_operand.hbm [shape: bf16[16,96], index: 3, kind: output, shape index: {}]  }
   0x1   :  { %v138_v0 = vld [vmem:[%s217_s1] sm:$0xff]   ;;  %125 = vmatprep.subr.bf16.mxu0 %v164_v1  ;;  %v139_v2 = vld [vmem:[%s217_s1 + $0x8] sm:$0xff]   ;;  %129 = vmatprep.mubr.msk.bf16.mxu0 %vm165_vm0, %v164_v1 }
   0x2   :  { %126 = vmatpush3.bf16.msra.mxu0 %v138_v0  ;;  %v16_v3 = vld [vmem:[%s216_s0] sm:$0xff]  ;;  %v17_v4 = vld [vmem:[%s216_s0 + $0x8] sm:$0xff] }
   0x3   :  { %127 = vmatprep.subr.bf16.mxu0 %v164_v1 }
   0x4   :  { %8 = vsyncpa [#allocation3], 0  ;;  %v18_v5 = vpack.c.bf16 %v17_v4, %v16_v3  ;;  %vm42_vm1 = vcmask 261120   ;;  %v114_v6 = vld [vmem:[%s218_s2] ss:$0 sm:$0xff]  ;;  %s166_s1 = smov [#allocation2]  }
   0x5   :  { %s103_s22 = sshll.u32 %s166_s1, 4  ;;  %vm95_vm2 = vcmask 781312   ;;  %s104_s22 = int_to_ptr.vmem [resolvable:$true] %s103_s22 }
   0x6   :  { %128 = vmatpush3.bf16.msra.mxu0 %v139_v2  ;;  %s140_s0 = scalar_lea.vmem %s104_s22, 128  ;;  %p145_p1 = scmp.lt.s32.totalorder %s104_s22, %s104_s22 }
   0x7   :  { %p141_p0 = scmp.ne.s32.totalorder %s104_s22, %s140_s0  ;;  %p146_p2 = scmp.lt.s32.totalorder %s140_s0, %s140_s0 }
   0x9   :  { %130 = vmatmul.mubr.msk.bf16.vlgmr.msra.gmra.mrb[0].mxu0 %vm42_vm1, %v18_v5  ;;  %p147_p3 = por %p146_p2, %p145_p1 }
   0xb   :  { %p148_p4 = pnand %p147_p3, %p141_p0 }
  0xdc   :  { %v80_v7 = vpop.f32.mrb[0].mxu0 }
  0xdd   :  { %v81_v8 = vadd.f32 %v114_v6, %v80_v7  ;;  %v131_v9 = vpop.f32.mrb[1].mxu0 }
  0xde   :  { %v83_v10 = vpop.f32.mrb[2].mxu0 }
  0xdf   :  { %v120_v11 = vpack.c.bf16 %v81_v8, %v81_v8  ;;  %v84_v12 = vadd.f32 %v114_v6, %v83_v10  ;;  %v132_v13 = vpop.f32.mrb[3].mxu0 }
  0xe1   :  { %96 = vst.msk [vmem:[#allocation2] sm:$0xf] %vm95_vm2, %v120_v11  ;;  %v121_v14 = vpack.c.bf16 %v84_v12, %v84_v12 }
  0xe3   :  { %97 = vst.msk [vmem:[#allocation2 + $0x4] sm:$0xf] %vm95_vm2, %v121_v14 }
  0xe4   :  { %151 = shalt.err (!%p148_p4)
}
  0xe5   :  { %s152_s24 = scalar_lea.hbm %s219_s3, 128 }
  0xe6   :  { %p153_p5 = scmp.ne.s32.totalorder %s219_s3, %s152_s24  ;;  %p156_p6 = scmp.lt.u32.totalorder %s152_s24, %s219_s3 }
  0xe8   :  { %p158_p7 = pnand %p156_p6, %p153_p5 }
  0xea   :  { %161 = shalt.err (!%p158_p7)
}
  0xeb   :  { %s167_s29 = smov 64   ;;  %s168_s30 = smov 4  }
  0xec   :  { %109 = dma.vmem_to_hbm [thread:$0]  %s104_s22, 128, %s219_s3, [#allocation3], %s167_s29, %s167_s29, %s168_s30  }
  0xed   :  { %162 = dma.done.wait [#allocation3], 128  }
  0xee   :  { %163 = vsyncadd [#allocation3], 4294967168 }
  0xef   :  { %113 = vsyncpa [#allocation3], 1 }

// kernel: weighted_transformer_block.5
= control target key start
LH: loop header
LB: loop body
LE: loop exit
PB: predicated region body
PF: predicated region fallthrough
CT: control target
= control target key end

     0   :  { %9 = vsyncpa [#allocation3], 0  ;;  %s1587_s0 = inlined_call_operand.hbm [shape: bf16[2,8,96], index: 0, kind: input, shape index: {}]   ;;  %s1588_s1 = inlined_call_operand.hbm [shape: f32[2,8,8], index: 1, kind: input, shape index: {}]   ;;  %s1589_s2 = inlined_call_operand.hbm [shape: f32[2,8,32], index: 2, kind: output, shape index: {0}]   ;;  %s1590_s3 = inlined_call_operand.hbm [shape: bf16[2,4,8,8], index: 3, kind: output, shape index: {1}]  }
   0x1   :  { %11 = vsyncpa [#allocation3 + $0x1], 0 }
   0x2   :  { %12 = vsyncpa [#allocation6], 0 }
   0x3   :  { %14 = vsyncpa [#allocation6 + $0x1], 0 }
   0x4   :  { %15 = vsyncpa [#allocation4], 0 }
   0x5   :  { %17 = vsyncpa [#allocation4 + $0x1], 0 }
   0x6   :  { %18 = vsyncpa [#allocation9], 0 }
   0x7   :  { %20 = vsyncpa [#allocation9 + $0x1], 0  ;;  %s1261_s12 = smov 0   ;;  %s1263_s13 = smov 0  }
   0x8   :  { %s1265_s14 = smov 0   ;;  %s1267_s15 = smov 0  }
   0x9 LB: > { %s1282_s16 = sadd.s32 4294967295, %s1218_s15   ;;  %s869_s17 = sadd.s32 4294967294, %s1218_s15   ;;  %s1218_s15 = sphi %s1267_s15, %s1609_s15   ;;  %s1214_s14 = sphi %s1265_s14, %s1608_s14   ;;  %s1210_s13 = sphi %s1263_s13, %s1607_s13   ;;  %s1206_s12 = sphi %s1261_s12, %s1606_s12  }
   0xa   : > { %s1286_s18 = sadd.s32 1, %s1218_s15   ;;  %s33_s19 = sadd.s32 1, %s1214_s14 }
   0xb   : > { %s30_s20 = ssub.s32 %s1218_s15, %s1286_s18  ;;  %p40_p0 = scmp.ne.s32.totalorder %s1214_s14, %s1210_s13 }
   0xc   : > { %p31_p1 = scmp.eq.s32.totalorder %s30_s20, 0  ;;  %p41_p2 = scmp.eq.s32.totalorder %s1218_s15, 0 }
   0xd   : > { %p46_p3 = scmp.ne.s32.totalorder %s1210_s13, %s1206_s12  ;;  %p47_p4 = scmp.eq.s32.totalorder %s1282_s16, 0 }
   0xe   : > { %s1298_s21 = scalar_select %p31_p1, %s1214_s14, %s33_s19  }
   0xf   : > { %p1300_p5 = por %p41_p2, %p40_p0  ;;  %p1304_p6 = por %p47_p4, %p46_p3 }
  0x10   : > { %p96_p7 = scmp.eq.s32.totalorder %s1282_s16, 1  ;;  %p102_p8 = scmp.eq.s32.totalorder %s869_s17, 1 }
  0x11   : > { %s1594_s23 = scalar_select %p1304_p6, 1, 0 }
  0x12   : > { %p988_p10 = scmp.lt.s32.totalorder %s1218_s15, 2  ;;  %p1311_p11 = por %p96_p7, %p40_p0 }
  0x13   : > { %p1315_p12 = por %p102_p8, %p46_p3  ;;  %s1320_s26 = sand.u32 1, %s1214_s14  }
  0x14   : > { %s1595_s24 = scalar_select %p1311_p11, 1, 0 }
  0x15   : > { %s1596_s25 = scalar_select %p1315_p12, 1, 0 }
  0x16   : > { %s873_s27 = sshll.u32 %s1218_s15, 6  ;;  %s872_s28 = sshll.u32 %s1320_s26, 2 }
  0x17   : > { %s1327_s4 = scalar_lea.hbm %s1587_s0, %s873_s27  ;;  %s152_s5 = scalar_lea.vmem [#allocation2], %s872_s28 }
  0x18   : > { %s159_s6 = sshll.u32 %s152_s5, 4  ;;  %p1331_p13 = pnand %p988_p10, %p1300_p5  ;;  %s1335_s6 = int_to_ptr.vmem [resolvable:$true] %s159_s6 }
  0x19   : > { %s149_s8 = scalar_lea.sflag [#allocation3], %s1320_s26  ;;  %s1056_s9 = scalar_lea.hbm %s1327_s4, 64 }
  0x1a   : > { %p1057_p2 = scmp.ne.s32.totalorder %s1327_s4, %s1056_s9  ;;  %p1058_p3 = pneg %p1331_p13 }
  0x1b   : > { %s1061_s17 = scalar_lea.hbm %s1587_s0, 128  ;;  %p1062_p5 = scmp.lt.u32.totalorder %s1327_s4, %s1587_s0 }
  0x1c   : > { %p1059_p4 = pnand %p1058_p3, %p1057_p2  ;;  %p1063_p8 = scmp.lt.u32.totalorder %s1061_s17, %s1056_s9 }
  0x1d   : > { %p1065_p9 = scmp.lt.u32.totalorder %s1056_s9, %s1327_s4 }
  0x1e   : > { %p1060_p7 = pneg %p1059_p4  ;;  %p1064_p10 = por %p1063_p8, %p1062_p5 }
  0x20   : > { %p1066_p0 = por %p1065_p9, %p1064_p10 }
  0x22   : > { %p1067_p1 = pnand %p1066_p0, %p1060_p7 }
  0x24   : > { %1070 = shalt.err (!%p1067_p1)
}
  0x25   : > { %s1071_s22 = scalar_lea.vmem %s1335_s6, 64  ;;  %s1220_s27 = smov [#allocation2]  }
  0x26   : > { %p1072_p2 = scmp.ne.s32.totalorder %s1335_s6, %s1071_s22  ;;  %s1076_s28 = sshll.u32 %s1220_s27, 4  ;;  %s1077_s28 = int_to_ptr.vmem [resolvable:$false] %s1076_s28 }
  0x27   : > { %s1078_s29 = scalar_lea.vmem %s1077_s28, 128  ;;  %p1079_p11 = scmp.lt.s32.totalorder %s1335_s6, %s1077_s28 }
  0x28   : > { %p1074_p4 = pnand %p1072_p2, %p1058_p3  ;;  %p1080_p5 = scmp.lt.s32.totalorder %s1078_s29, %s1071_s22 }
  0x2a   : > { %p1075_p12 = pneg %p1074_p4  ;;  %p1081_p8 = por %p1080_p5, %p1079_p11 }
  0x2c   : > { %p1082_p9 = pnand %p1081_p8, %p1075_p12 }
  0x2e   : > { %1085 = shalt.err (!%p1082_p9)
}
  0x2f   : > { %977 = dma.hbm_to_vmem [thread:$0]  (!%p1331_p13), %s1327_s4, 64, %s1335_s6, %s149_s8  }
  0x30   : > { %p1598_p0 = scmp.lt.s32.totalorder %s1218_s15, 3  ;;  %p1599_p1 = scmp.ge.s32.totalorder %s1218_s15, 1 }
  0x31   : > { %s874_s5 = sshll.u32 %s1320_s26, 3  ;;  %s875_s9 = sshll.u32 %s1218_s15, 7 }
  0x32   : > { %p1369_p7 = pnand %p1599_p1, %p1598_p0  ;;  %s1378_s17 = scalar_lea.hbm %s1588_s1, %s875_s9 }
  0x33   : > { %s170_s19 = scalar_lea.vmem [#allocation5], %s874_s5  ;;  %s167_s4 = scalar_lea.sflag [#allocation6], %s1320_s26 }
  0x34   : > { %s1600_s30 = scalar_select %p1369_p7, 1, 0 }
  0x35   : > { %s177_s20 = sshll.u32 %s170_s19, 4  ;;  %s1086_s6 = scalar_lea.hbm %s1378_s17, 128  ;;  %s178_s20 = int_to_ptr.vmem [resolvable:$true] %s177_s20 }
  0x36   : > { %p1087_p11 = scmp.ne.s32.totalorder %s1378_s17, %s1086_s6  ;;  %s1091_s27 = scalar_lea.hbm %s1588_s1, 256 }
  0x37   : > { %p1092_p2 = scmp.lt.u32.totalorder %s1378_s17, %s1588_s1  ;;  %p1093_p4 = scmp.lt.u32.totalorder %s1091_s27, %s1086_s6 }
  0x38   : > { %p1089_p12 = pnand %p1087_p11, %p1058_p3  ;;  %p1095_p8 = scmp.lt.u32.totalorder %s1086_s6, %s1378_s17 }
  0x39   : > { %p1094_p5 = por %p1093_p4, %p1092_p2 }
  0x3a   : > { %p1090_p10 = pneg %p1089_p12 }
  0x3b   : > { %p1096_p9 = por %p1095_p8, %p1094_p5 }
  0x3d   : > { %p1097_p0 = pnand %p1096_p9, %p1090_p10 }
  0x3f   : > { %1100 = shalt.err (!%p1097_p0)
}
  0x40   : > { %s1101_s26 = scalar_lea.vmem %s178_s20, 128  ;;  %s1221_s5 = smov [#allocation5]  }
  0x41   : > { %p1102_p1 = scmp.ne.s32.totalorder %s178_s20, %s1101_s26  ;;  %s1106_s9 = sshll.u32 %s1221_s5, 4  ;;  %s1107_s9 = int_to_ptr.vmem [resolvable:$false] %s1106_s9 }
  0x42   : > { %s1108_s10 = scalar_lea.vmem %s1107_s9, 256  ;;  %p1109_p6 = scmp.lt.s32.totalorder %s178_s20, %s1107_s9 }
  0x43   : > { %p1104_p11 = pnand %p1102_p1, %p1058_p3  ;;  %p1110_p7 = scmp.lt.s32.totalorder %s1108_s10, %s1101_s26 }
  0x45   : > { %p1105_p12 = pneg %p1104_p11  ;;  %p1111_p2 = por %p1110_p7, %p1109_p6 }
  0x47   : > { %p1112_p4 = pnand %p1111_p2, %p1105_p12 }
  0x49   : > { %1115 = shalt.err (!%p1112_p4)
}
  0x4a   : > { %980 = dma.hbm_to_vmem [thread:$0]  (!%p1331_p13), %s1378_s17, 128, %s178_s20, %s167_s4  }
  0x4b   : > { %p1601_p10 = scmp.ne.s32.totalorder %s1600_s30, 0 }
  0x4c   : > { %s1403_s11 = sand.u32 (!%p1601_p10), 1, %s1210_s13   ;;  %p1602_p3 = scmp.ne.s32.totalorder (!%p1601_p10), %s1594_s23, 0 }
  0x4d   : > { %186 = sbr.rel (%p1601_p10) target bundleno = 1694 (0x69e), region = 28  ;;  %s877_s19 = sshll.u32 (!%p1601_p10), %s1403_s11, 2 }
  0x4e   : > { %s189_s6 = scalar_lea.sflag (!%p1601_p10), [#allocation3], %s1403_s11  ;;  %s192_s8 = scalar_lea.vmem (!%p1601_p10), [#allocation2], %s877_s19 }
  0x54   : > { %1189 = dma.done.wait (%p1602_p3), %s189_s6, 64  }
  0x55   : > { %1191 = vsyncadd (%p1602_p3), %s189_s6, 4294967232  ;;  %s878_s7 = sshll.u32 %s1403_s11, 3  ;;  %s198_s30 = scalar_lea.sflag [#allocation6], %s1403_s11 }
  0x56   : > { %s201_s17 = scalar_lea.vmem [#allocation5], %s878_s7 }
  0x57   : > { %1193 = dma.done.wait (%p1602_p3), %s198_s30, 128  }
  0x58   : > { %1195 = vsyncadd (%p1602_p3), %s198_s30, 4294967168  ;;  %v1222_v0 = vmov 0.0   ;;  %vm1223_vm0 = vmmov 0   ;;  %v235_v1 = vld [vmem:[%s192_s8] sm:$0xf]  ;;  %s1224_s20 = smov 96  }
  0x59   : > { %918 = vmatprep.subr.bf16.mxu0 %v1222_v0  ;;  %920 = vmatprep.mubr.msk.bf16.mxu0 %vm1223_vm0, %v1222_v0  ;;  %v1425_v2 = vcombine.low %v235_v1, %v235_v1  ;;  %vm244_vm1 = vcmask 64512   ;;  %s1225_s23 = smov 64   ;;  %s1226_s4 = smov 88   ;;  %v236_v5 = vld [vmem:[%s201_s17] sm:$0xff]  ;;  %vm310_vm2 = vcmask 1043456   ;;  %vm303_vm3 = vcmask 60416  }
  0x5a   : > { %924 = vmatprep.subr.bf16.mxu1 %v1222_v0  ;;  %926 = vmatprep.mubr.msk.bf16.mxu1 %vm1223_vm0, %v1222_v0  ;;  %v881_v6 = vadd.f32 -1.0, %v236_v5  ;;  %s1227_s22 = smov 72   ;;  %s1228_s27 = smov 120  }
  0x5b   : > { %242 = vrot.lane.b32.xlu0 %v1425_v2, %s1224_s20  ;;  %305 = vrot.lane.b32.xlu1 %v1425_v2, %s1225_s23  ;;  %s1229_s28 = smov 80   ;;  %s1230_s29 = smov 112  }
  0x5c   : > { %v1436_v7 = vmul.f32 1e+09, %v881_v6  ;;  %s1231_s26 = smov 104   ;;  %s880_s5 = sshll.u32 %s1403_s11, 4 }
  0x5d   : > { %s1450_s9 = scalar_lea.vmem [#allocation8], %s880_s5  ;;  %s1232_s10 = smov 56  }
  0x5e   : > { %s1233_s19 = smov 48   ;;  %s1234_s6 = smov 40  }
  0x5f   : > { %356 = vrot.lane.b32.xlu1 %v1425_v2, %s1226_s4  ;;  %s1235_s8 = smov 8   ;;  %s901_s30 = sshll.u32 %s1282_s16, 8 }
  0x60   : > { %s741_s17 = sshll.u32 %s1450_s9, 4  ;;  %s1236_s20 = smov 16   ;;  %s1507_s17 = int_to_ptr.vmem [resolvable:$true] %s741_s17 }
  0x61   : > { %p1603_p13 = scmp.ne.s32.totalorder %s1595_s24, 0 }
  0xcd   : > { %v243_v3 = vpop.permute.xlu0 %242  ;;  %v306_v14 = vpop.permute.xlu1 %305 }
  0xce   : > { %v249_v4 = vsel %vm244_vm1, %v243_v3, 0  ;;  %v312_v15 = vsel %vm310_vm2, %v306_v14, 0 }
  0xcf   : > { %919 = vmatpush3.bf16.xpose.msra.mxu0 %v249_v4  ;;  %925 = vmatpush3.bf16.msra.mxu1 %v312_v15 }
  0xd0   : > { %936 = vmatprep.subr.bf16.mxu0 %v1222_v0  ;;  %930 = vmatprep.subr.bf16.mxu1 %v1222_v0 }
  0xd1   : > { %v357_v21 = vpop.permute.xlu1 %356 }
  0xd2   : > { %v362_v27 = vsel %vm244_vm1, %v357_v21, 0 }
  0xd6   : > { %921 = vmatmul.mubr.msk.bf16.vlgmr.msra.gmra.mrb[0].mxu0 %vm244_vm1, %v235_v1 }
  0xd7   : > { %938 = vmatprep.mubr.msk.bf16.mxu0 %vm1223_vm0, %v1222_v0 }
 0x1a9   : > { %v285_v8 = vpop.f32.mrb[0].mxu0 }
 0x1aa   : > { %v286_v9 = vadd.f32 %v285_v8, %v1436_v7  ;;  %v922_v10 = vpop.f32.mrb[1].mxu0 }
 0x1ab   : > { %v288_v11 = vpop.f32.mrb[2].mxu0 }
 0x1ac   : > { %v923_v12 = vpop.f32.mrb[3].mxu0  ;;  %v291_v13 = vsel %vm244_vm1, %v286_v9, -inf }
 0x1ad   : > { %292 = vmax.xlane.f32.xlu0 %v291_v13 }
 0x1c3   : > { %580 = vrot.lane.b32.xlu0 %v1425_v2, %s1227_s22 }
 0x23a   : > { %v293_v16 = vpop.xlane.xlu0 %292 }
 0x23b   : > { %v294_v17 = vsub.f32 %v286_v9, %v293_v16 }
 0x23d   : > { %v295_v18 = vmul.f32 1.442695, %v294_v17 }
 0x23e   : > { %v581_v30 = vpop.permute.xlu0 %580 }
 0x23f   : > { %1040 = vpow2.f32 %v295_v18  ;;  %v586_v32 = vsel %vm244_vm1, %v581_v30, 0 }
 0x249   : > { %v1041_v19 = vpop.eup %1040 }
 0x24a   : > { %v297_v20 = vsel %vm244_vm1, %v1041_v19, 0.0 }
 0x24b   : > { %298 = vadd.xlane.f32.xlu1 %v297_v20 }
 0x25c   : > { %354 = vrot.lane.b32.xlu1 %v1425_v2, %s1228_s27  ;;  %s1505_s27 = scalar_lea.hbm %s1590_s3, %s901_s30 }
 0x260   : > { %468 = vrot.lane.b32.xlu1 %v1425_v2, %s1229_s28  ;;  %s715_s28 = scalar_lea.sflag [#allocation9], %s1403_s11 }
 0x264   : > { %466 = vrot.lane.b32.xlu1 %v1425_v2, %s1230_s29  ;;  %s1116_s29 = scalar_lea.vmem %s1507_s17, 256 }
 0x265   : > { %p1117_p6 = scmp.ne.s32.totalorder %s1507_s17, %s1116_s29 }
 0x267   : > { %p1118_p7 = pnand %p1117_p6, %p1603_p13 }
 0x268   : > { %578 = vrot.lane.b32.xlu1 %v1425_v2, %s1231_s26  ;;  %s1237_s26 = smov [#allocation8]  }
 0x269   : > { %p1119_p5 = pneg %p1118_p7  ;;  %s1120_s5 = sshll.u32 %s1237_s26, 4  ;;  %s1121_s5 = int_to_ptr.vmem [resolvable:$false] %s1120_s5 }
 0x26a   : > { %p1123_p8 = scmp.lt.s32.totalorder %s1507_s17, %s1121_s5 }
 0x2d8   : > { %v299_v22 = vpop.xlane.xlu1 %298 }
 0x2d9   : > { %1042 = vrcp.f32 %v299_v22 }
 0x2dc   : > { %v355_v25 = vpop.permute.xlu1 %354 }
 0x2e0   : > { %v469_v28 = vpop.permute.xlu1 %468 }
 0x2e1   : > { %v474_v29 = vsel %vm244_vm1, %v469_v28, 0 }
 0x2e3   : > { %v1043_v23 = vpop.eup %1042 }
 0x2e4   : > { %v301_v24 = vmul.f32 %v1043_v23, %v1041_v19  ;;  %v467_v31 = vpop.permute.xlu1 %466 }
 0x2e6   : > { %v302_v26 = vpack.c.bf16 %v301_v24, %v301_v24 }
 0x2e8   : > { %304 = vst.msk [vmem:[%s1450_s9] sm:$0xf] %vm303_vm3, %v302_v26  ;;  %927 = vmatmul.mubr.msk.bf16.vlgmr.msra.gmra.mrb[0].mxu1 %vm244_vm1, %v302_v26  ;;  %v579_v33 = vpop.permute.xlu1 %578 }
 0x2e9   : > { %931 = vmatpush3.bf16.xpose.msra.mxu1 %v362_v27  ;;  %932 = vmatprep.mubr.msk.bf16.mxu1 %vm1223_vm0, %v1222_v0 }
 0x2ea   : > { %942 = vmatprep.subr.bf16.mxu1 %v1222_v0 }
 0x2f0   : > { %933 = vmatmul.mubr.msk.bf16.vlgmr.msra.gmra.mrb[4].mxu1 %vm244_vm1, %v355_v25 }
 0x2f1   : > { %943 = vmatpush3.bf16.xpose.msra.mxu1 %v474_v29  ;;  %944 = vmatprep.mubr.msk.bf16.mxu1 %vm1223_vm0, %v1222_v0 }
 0x2f2   : > { %954 = vmatprep.subr.bf16.mxu1 %v1222_v0 }
 0x2f8   : > { %945 = vmatmul.mubr.msk.bf16.vlgmr.msra.gmra.mrb[8].mxu1 %vm244_vm1, %v467_v31 }
 0x2f9   : > { %955 = vmatpush3.bf16.xpose.msra.mxu1 %v586_v32  ;;  %956 = vmatprep.mubr.msk.bf16.mxu1 %vm1223_vm0, %v1222_v0 }
 0x300   : > { %957 = vmatmul.mubr.msk.bf16.vlgmr.msra.gmra.mrb[12].mxu1 %vm244_vm1, %v579_v33 }
 0x3bb   : > { %v1468_v34 = vpop.f32.mrb[0].mxu1 }
 0x3bc   : > { %v928_v35 = vpop.f32.mrb[1].mxu1 }
 0x3bd   : > { %v351_v36 = vpop.f32.mrb[2].mxu1 }
 0x3be   : > { %v929_v37 = vpop.f32.mrb[3].mxu1 }
 0x3c3   : > { %v398_v38 = vpop.f32.mrb[4].mxu1 }
 0x3c4   : > { %v399_v39 = vadd.f32 %v398_v38, %v1436_v7  ;;  %v934_v40 = vpop.f32.mrb[5].mxu1 }
 0x3c5   : > { %v401_v41 = vpop.f32.mrb[6].mxu1 }
 0x3c6   : > { %v935_v42 = vpop.f32.mrb[7].mxu1  ;;  %v404_v43 = vsel %vm244_vm1, %v399_v39, -inf }
 0x3c7   : > { %405 = vmax.xlane.f32.xlu1 %v404_v43 }
 0x3cb   : > { %v510_v44 = vpop.f32.mrb[8].mxu1 }
 0x3cc   : > { %v511_v45 = vadd.f32 %v510_v44, %v1436_v7  ;;  %v946_v46 = vpop.f32.mrb[9].mxu1 }
 0x3cd   : > { %v513_v47 = vpop.f32.mrb[10].mxu1 }
 0x3ce   : > { %v516_v48 = vsel %vm244_vm1, %v511_v45, -inf  ;;  %v947_v49 = vpop.f32.mrb[11].mxu1 }
 0x3cf   : > { %517 = vmax.xlane.f32.xlu0 %v516_v48 }
 0x3d3   : > { %v622_v50 = vpop.f32.mrb[12].mxu1 }
 0x3d4   : > { %v623_v51 = vadd.f32 %v622_v50, %v1436_v7  ;;  %v958_v52 = vpop.f32.mrb[13].mxu1 }
 0x3d5   : > { %v625_v53 = vpop.f32.mrb[14].mxu1 }
 0x3d6   : > { %v628_v54 = vsel %vm244_vm1, %v623_v51, -inf  ;;  %v959_v55 = vpop.f32.mrb[15].mxu1 }
 0x3d7   : > { %629 = vmax.xlane.f32.xlu1 %v628_v54 }
 0x454   : > { %v406_v56 = vpop.xlane.xlu1 %405 }
 0x455   : > { %v407_v57 = vsub.f32 %v399_v39, %v406_v56 }
 0x457   : > { %v408_v58 = vmul.f32 1.442695, %v407_v57 }
 0x459   : > { %1044 = vpow2.f32 %v408_v58 }
 0x45c   : > { %v518_v4 = vpop.xlane.xlu0 %517 }
 0x45d   : > { %v519_v5 = vsub.f32 %v511_v45, %v518_v4 }
 0x45f   : > { %v520_v6 = vmul.f32 1.442695, %v519_v5 }
 0x463   : > { %v1045_v59 = vpop.eup %1044 }
 0x464   : > { %v630_v60 = vpop.xlane.xlu1 %629  ;;  %v410_v61 = vsel %vm244_vm1, %v1045_v59, 0.0 }
 0x465   : > { %v631_v62 = vsub.f32 %v623_v51, %v630_v60  ;;  %411 = vadd.xlane.f32.xlu1 %v410_v61 }
 0x467   : > { %v632_v63 = vmul.f32 1.442695, %v631_v62 }
 0x469   : > { %1046 = vpow2.f32 %v632_v63 }
 0x46a   : > { %1048 = vpow2.f32 %v520_v6 }
 0x473   : > { %v1047_v1 = vpop.eup %1046 }
 0x474   : > { %v634_v3 = vsel %vm244_vm1, %v1047_v1, 0.0  ;;  %v1049_v7 = vpop.eup %1048 }
 0x475   : > { %635 = vadd.xlane.f32.xlu0 %v634_v3  ;;  %v522_v8 = vsel %vm244_vm1, %v1049_v7, 0.0 }
 0x476   : > { %418 = vrot.lane.b32.xlu1 %v1425_v2, %s1232_s10 }
 0x48b   : > { %530 = vrot.lane.b32.xlu0 %v1425_v2, %s1233_s19 }
 0x49a   : > { %523 = vadd.xlane.f32.xlu1 %v522_v8 }
 0x4ab   : > { %642 = vrot.lane.b32.xlu1 %v1425_v2, %s1234_s6 }
 0x4f2   : > { %v412_v9 = vpop.xlane.xlu1 %411 }
 0x4f3   : > { %1050 = vrcp.f32 %v412_v9 }
 0x4f6   : > { %v419_v10 = vpop.permute.xlu1 %418 }
 0x4f7   : > { %v424_v11 = vsel %vm310_vm2, %v419_v10, 0 }
 0x4f8   : > { %937 = vmatpush3.bf16.msra.mxu0 %v424_v11 }
 0x4f9   : > { %948 = vmatprep.subr.bf16.mxu0 %v1222_v0 }
 0x4fd   : > { %v1051_v12 = vpop.eup %1050 }
 0x4fe   : > { %v414_v13 = vmul.f32 %v1051_v12, %v1045_v59 }
 0x500   : > { %v415_v14 = vpack.c.bf16 %v414_v13, %v414_v13 }
 0x502   : > { %886 = vst.msk [vmem:[%s1450_s9 + $0x4] sm:$0xf] %vm303_vm3, %v415_v14  ;;  %939 = vmatmul.mubr.msk.bf16.vlgmr.msra.gmra.mrb[4].mxu0 %vm244_vm1, %v415_v14  ;;  %v636_v15 = vpop.xlane.xlu0 %635 }
 0x503   : > { %1052 = vrcp.f32 %v636_v15  ;;  %950 = vmatprep.mubr.msk.bf16.mxu0 %vm1223_vm0, %v1222_v0 }
 0x506   : > { %v531_v2 = vpop.permute.xlu0 %530 }
 0x507   : > { %v536_v16 = vsel %vm310_vm2, %v531_v2, 0 }
 0x508   : > { %949 = vmatpush3.bf16.msra.mxu0 %v536_v16 }
 0x509   : > { %960 = vmatprep.subr.bf16.mxu0 %v1222_v0 }
 0x50d   : > { %v1053_v17 = vpop.eup %1052 }
 0x50e   : > { %v638_v18 = vmul.f32 %v1053_v17, %v1047_v1 }
 0x510   : > { %v639_v19 = vpack.c.bf16 %v638_v18, %v638_v18 }
 0x512   : > { %892 = vst.msk [vmem:[%s1450_s9 + $0xc] sm:$0xf] %vm303_vm3, %v639_v19 }
 0x527   : > { %v524_v20 = vpop.xlane.xlu1 %523 }
 0x528   : > { %1054 = vrcp.f32 %v524_v20 }
 0x52b   : > { %v643_v22 = vpop.permute.xlu1 %642 }
 0x52c   : > { %v648_v24 = vsel %vm310_vm2, %v643_v22, 0 }
 0x532   : > { %v1055_v21 = vpop.eup %1054 }
 0x533   : > { %v526_v23 = vmul.f32 %v1055_v21, %v1049_v7 }
 0x535   : > { %v527_v25 = vpack.c.bf16 %v526_v23, %v526_v23 }
 0x537   : > { %889 = vst.msk [vmem:[%s1450_s9 + $0x8] sm:$0xf] %vm303_vm3, %v527_v25  ;;  %951 = vmatmul.mubr.msk.bf16.vlgmr.msra.gmra.mrb[8].mxu0 %vm244_vm1, %v527_v25  ;;  %s1122_s9 = scalar_lea.vmem %s1121_s5, 512 }
 0x538   : > { %961 = vmatpush3.bf16.msra.mxu0 %v648_v24  ;;  %962 = vmatprep.mubr.msk.bf16.mxu0 %vm1223_vm0, %v1222_v0  ;;  %p1124_p9 = scmp.lt.s32.totalorder %s1122_s9, %s1116_s29 }
 0x53a   : > { %p1125_p0 = por %p1124_p9, %p1123_p8 }
 0x53c   : > { %p1126_p1 = pnand %p1125_p0, %p1119_p5 }
 0x53f   : > { %963 = vmatmul.mubr.msk.bf16.vlgmr.msra.gmra.mrb[12].mxu0 %vm244_vm1, %v639_v19 }
 0x5d5   : > { %v460_v26 = vpop.f32.mrb[4].mxu0 }
 0x5d6   : > { %691 = vrot.lane.b32.xlu1 %v460_v26, %s1235_s8  ;;  %v940_v27 = vpop.f32.mrb[5].mxu0 }
 0x5d7   : > { %v463_v28 = vpop.f32.mrb[6].mxu0 }
 0x5d8   : > { %v941_v29 = vpop.f32.mrb[7].mxu0 }
 0x60a   : > { %v572_v30 = vpop.f32.mrb[8].mxu0 }
 0x60b   : > { %695 = vrot.lane.b32.xlu0 %v572_v30, %s1236_s20  ;;  %v952_v31 = vpop.f32.mrb[9].mxu0 }
 0x60c   : > { %v575_v0 = vpop.f32.mrb[10].mxu0 }
 0x60d   : > { %v953_v32 = vpop.f32.mrb[11].mxu0 }
 0x60e   : > { %1129 = shalt.err (!%p1126_p1)
}
 0x60f   : > { %s1130_s10 = scalar_lea.hbm %s1505_s27, 256  ;;  %s1134_s8 = scalar_lea.hbm %s1590_s3, 512 }
 0x610   : > { %p1131_p11 = scmp.ne.s32.totalorder %s1505_s27, %s1130_s10  ;;  %p1135_p4 = scmp.lt.u32.totalorder %s1505_s27, %s1590_s3 }
 0x611   : > { %p1136_p10 = scmp.lt.u32.totalorder %s1134_s8, %s1130_s10  ;;  %p1138_p6 = scmp.lt.u32.totalorder %s1130_s10, %s1505_s27 }
 0x612   : > { %p1132_p12 = pnand %p1131_p11, %p1603_p13 }
 0x613   : > { %p1137_p3 = por %p1136_p10, %p1135_p4 }
 0x614   : > { %p1133_p2 = pneg %p1132_p12 }
 0x615   : > { %p1139_p7 = por %p1138_p6, %p1137_p3 }
 0x617   : > { %p1140_p5 = pnand %p1139_p7, %p1133_p2 }
 0x619   : > { %1143 = shalt.err (!%p1140_p5)
}
 0x61a   : > { %s1238_s4 = smov 4   ;;  %v684_v33 = vpop.f32.mrb[12].mxu0  ;;  %s1239_s22 = smov 24   ;;  %vm703_vm4 = vcmask 130048   ;;  %vm705_vm5 = vcmask 195584   ;;  %vm707_vm6 = vcmask 261120  }
 0x61b   : > { %971 = dma.vmem_to_hbm [thread:$0]  (%p1603_p13), %s1507_s17, 256, %s1505_s27, %s715_s28, %s1225_s23, %s1225_s23, %s1238_s4   ;;  %v964_v35 = vpop.f32.mrb[13].mxu0 }
 0x61c   : > { %699 = vrot.lane.b32.xlu1 %v684_v33, %s1239_s22  ;;  %v687_v36 = vpop.f32.mrb[14].mxu0  ;;  %s896_s29 = sshll.u32 %s1282_s16, 7  ;;  %s226_s26 = scalar_lea.vmem [#allocation7], %s878_s7 }
 0x61d   : > { %v965_v37 = vpop.f32.mrb[15].mxu0  ;;  %s728_s5 = sshll.u32 %s226_s26, 4  ;;  %s1543_s27 = scalar_lea.hbm %s1589_s2, %s896_s29  ;;  %s1545_s5 = int_to_ptr.vmem [resolvable:$true] %s728_s5 }
 0x61e   : > { %s710_s16 = scalar_lea.sflag [#allocation4], %s1403_s11  ;;  %s1144_s7 = scalar_lea.vmem %s1545_s5, 128 }
 0x61f   : > { %p1145_p8 = scmp.ne.s32.totalorder %s1545_s5, %s1144_s7  ;;  %s1240_s28 = smov [#allocation7]  }
 0x620   : > { %s1148_s9 = sshll.u32 %s1240_s28, 4  ;;  %s1149_s9 = int_to_ptr.vmem [resolvable:$false] %s1148_s9 }
 0x621   : > { %p1146_p9 = pnand %p1145_p8, %p1603_p13  ;;  %s1150_s10 = scalar_lea.vmem %s1149_s9, 256 }
 0x622   : > { %p1151_p1 = scmp.lt.s32.totalorder %s1545_s5, %s1149_s9  ;;  %p1152_p11 = scmp.lt.s32.totalorder %s1150_s10, %s1144_s7 }
 0x623   : > { %p1147_p0 = pneg %p1146_p9 }
 0x624   : > { %p1153_p12 = por %p1152_p11, %p1151_p1 }
 0x626   : > { %p1154_p2 = pnand %p1153_p12, %p1147_p0 }
 0x648   : > { %v692_v38 = vpop.permute.xlu1 %691 }
 0x649   : > { %v702_v40 = vsel %vm244_vm1, %v1468_v34, %v692_v38 }
 0x67d   : > { %v696_v39 = vpop.permute.xlu0 %695 }
 0x67e   : > { %v704_v41 = vsel %vm703_vm4, %v702_v40, %v696_v39 }
 0x68e   : > { %v700_v42 = vpop.permute.xlu1 %699 }
 0x68f   : > { %v706_v43 = vsel %vm705_vm5, %v704_v41, %v700_v42 }
 0x690   : > { %708 = vst.msk [vmem:[%s226_s26] sm:$0xff] %vm707_vm6, %v706_v43 }
 0x691   : > { %1157 = shalt.err (!%p1154_p2)
}
 0x692   : > { %s1158_s11 = scalar_lea.hbm %s1543_s27, 128  ;;  %s1162_s8 = scalar_lea.hbm %s1589_s2, 256 }
 0x693   : > { %p1159_p4 = scmp.ne.s32.totalorder %s1543_s27, %s1158_s11  ;;  %p1163_p6 = scmp.lt.u32.totalorder %s1543_s27, %s1589_s2 }
 0x694   : > { %p1164_p7 = scmp.lt.u32.totalorder %s1162_s8, %s1158_s11  ;;  %p1166_p8 = scmp.lt.u32.totalorder %s1158_s11, %s1543_s27 }
 0x695   : > { %p1160_p10 = pnand %p1159_p4, %p1603_p13 }
 0x696   : > { %p1165_p5 = por %p1164_p7, %p1163_p6 }
 0x697   : > { %p1161_p3 = pneg %p1160_p10 }
 0x698   : > { %p1167_p9 = por %p1166_p8, %p1165_p5 }
 0x69a   : > { %p1168_p0 = pnand %p1167_p9, %p1161_p3 }
 0x69c   : > { %1171 = shalt.err (!%p1168_p0)
}
 0x69d   : > { %970 = dma.vmem_to_hbm [thread:$0]  (%p1603_p13), %s1545_s5, 128, %s1543_s27, %s710_s16  }
 0x69e PF: > { %s756_s4 = sand.u32 1, %s1206_s12   ;;  %p1604_p1 = scmp.ne.s32.totalorder %s1596_s25, 0 }
 0x69f   : > { %p1605_p11 = scmp.ge.s32.totalorder %s1218_s15, 2  ;;  %s757_s22 = scalar_lea.sflag [#allocation4], %s756_s4 }
 0x6a1   : > { %p982_p12 = pnand %p1605_p11, %p1604_p1 }
 0x6a3   : > { %1197 = dma.done.wait (!%p982_p12), %s757_s22, 128  }
 0x6a4   : > { %1199 = vsyncadd (!%p982_p12), %s757_s22, 4294967168  ;;  %s766_s29 = scalar_lea.sflag [#allocation9], %s756_s4 }
 0x6a5   : > { %1201 = dma.done.wait (!%p982_p12), %s766_s29, 256  }
 0x6a6   : > { %1203 = vsyncadd (!%p982_p12), %s766_s29, 4294967040  ;;  %p23_p13 = scmp.ge.s32.totalorder %s1286_s18, 4   ;;  %s1606_s12 = smov %s1210_s13 }
 0x6a7   : > { %s1607_s13 = smov %s1214_s14  ;;  %s1608_s14 = smov %s1298_s21 }
 0x6a8   : > { %s1609_s15 = smov %s1286_s18  ;;  %25 = sbr.rel (!%p23_p13) target bundleno = 9 (0x9), region = 106 }
 0x6af   :  { %771 = vsyncpa [#allocation3], 1 }
 0x6b0   :  { %773 = vsyncpa [#allocation3 + $0x1], 1 }
 0x6b1   :  { %774 = vsyncpa [#allocation6], 1 }
 0x6b2   :  { %776 = vsyncpa [#allocation6 + $0x1], 1 }
 0x6b3   :  { %777 = vsyncpa [#allocation4], 1 }
 0x6b4   :  { %779 = vsyncpa [#allocation4 + $0x1], 1 }
 0x6b5   :  { %780 = vsyncpa [#allocation9], 1 }
 0x6b6   :  { %782 = vsyncpa [#allocation9 + $0x1], 1 }

// kernel: weighted_transformer_block.7
= control target key start
LH: loop header
LB: loop body
LE: loop exit
PB: predicated region body
PF: predicated region fallthrough
CT: control target
= control target key end

     0   :  { %s3222_s0 = inlined_call_operand.hbm [shape: bf16[4,2,8,8], index: 0, kind: input, shape index: {}]   ;;  %s3223_s1 = inlined_call_operand.hbm [shape: f32[2,8,32], index: 1, kind: input, shape index: {}]   ;;  %s3224_s2 = inlined_call_operand.hbm [shape: bf16[4,8,32], index: 2, kind: input, shape index: {}]   ;;  %s3225_s3 = inlined_call_operand.hbm [shape: f32[4,1,32], index: 3, kind: input, shape index: {}]   ;;  %s3226_s4 = inlined_call_operand.hbm [shape: bf16[4,32,160], index: 4, kind: input, shape index: {}]   ;;  %s3227_s5 = inlined_call_operand.hbm [shape: f32[4,1,32], index: 5, kind: input, shape index: {}]   ;;  %s3228_s6 = inlined_call_operand.hbm [shape: bf16[4,32,160], index: 6, kind: input, shape index: {}]   ;;  %s3229_s7 = inlined_call_operand.hbm [shape: f32[4,1,32], index: 7, kind: input, shape index: {}]   ;;  %s3230_s8 = inlined_call_operand.hbm [shape: f32[4,1,32], index: 8, kind: input, shape index: {}]   ;;  %s3231_s9 = inlined_call_operand.hbm [shape: f32[4,1,32], index: 9, kind: input, shape index: {}]   ;;  %s3232_s10 = inlined_call_operand.hbm [shape: bf16[32,32], index: 10, kind: input, shape index: {}]   ;;  %s3233_s11 = inlined_call_operand.hbm [shape: f32[1,32], index: 11, kind: input, shape index: {}]   ;;  %s3234_s12 = inlined_call_operand.hbm [shape: f32[2,8,32], index: 12, kind: output, shape index: {}]  }
   0x1   :  { %3279 = sst [smem:[#allocation48_spill]] %s3222_s0 }
   0x2   :  { %3280 = sst [smem:[#allocation49_spill]] %s3223_s1 }
   0x3   :  { %3281 = sst [smem:[#allocation50_spill]] %s3224_s2 }
   0x4   :  { %3282 = sst [smem:[#allocation51_spill]] %s3225_s3 }
   0x5   :  { %3283 = sst [smem:[#allocation52_spill]] %s3226_s4 }
   0x6   :  { %3284 = sst [smem:[#allocation53_spill]] %s3227_s5 }
   0x7   :  { %3285 = sst [smem:[#allocation54_spill]] %s3228_s6 }
   0x8   :  { %3286 = sst [smem:[#allocation55_spill]] %s3229_s7 }
   0x9   :  { %3287 = sst [smem:[#allocation56_spill]] %s3230_s8 }
   0xa   :  { %3288 = sst [smem:[#allocation57_spill]] %s3231_s9 }
   0xb   :  { %3289 = sst [smem:[#allocation58_spill]] %s3232_s10 }
   0xc   :  { %3290 = sst [smem:[#allocation59_spill]] %s3233_s11 }
   0xd   :  { %3291 = sst [smem:[#allocation60_spill]] %s3234_s12 }
   0xe   :  { %17 = vsyncpa [#allocation3], 0 }
   0xf   :  { %19 = vsyncpa [#allocation3 + $0x1], 0 }
  0x10   :  { %20 = vsyncpa [#allocation6], 0 }
  0x11   :  { %22 = vsyncpa [#allocation6 + $0x1], 0 }
  0x12   :  { %23 = vsyncpa [#allocation9], 0 }
  0x13   :  { %25 = vsyncpa [#allocation9 + $0x1], 0 }
  0x14   :  { %26 = vsyncpa [#allocation12], 0 }
  0x15   :  { %28 = vsyncpa [#allocation12 + $0x1], 0 }
  0x16   :  { %29 = vsyncpa [#allocation15], 0 }
  0x17   :  { %31 = vsyncpa [#allocation15 + $0x1], 0 }
  0x18   :  { %32 = vsyncpa [#allocation18], 0 }
  0x19   :  { %34 = vsyncpa [#allocation18 + $0x1], 0 }
  0x1a   :  { %35 = vsyncpa [#allocation21], 0 }
  0x1b   :  { %36 = vsyncpa [#allocation4], 0 }
  0x1c   :  { %38 = vsyncpa [#allocation4 + $0x1], 0  ;;  %s2421_s21 = smov 0   ;;  %s2423_s22 = smov 0  }
  0x1d   :  { %s2425_s23 = smov 0   ;;  %s2427_s24 = smov 0  }
  0x1e   :  { %s2429_s25 = smov 0   ;;  %s2431_s26 = smov 0  }
  0x1f   :  { %s2433_s27 = smov 0   ;;  %s2435_s28 = smov 0  }
  0x20   :  { %s2437_s29 = smov 0   ;;  %s2439_s30 = smov 0  }
  0x21   :  { %s2441_s13 = smov 0   ;;  %s2443_s14 = smov 0  }
  0x22   :  { %s2445_s15 = smov 0   ;;  %s2447_s16 = smov 0  }
  0x23 LB: > { %3292 = sst [smem:[#allocation33_spill]] %s2280_s22  ;;  %s2492_s17 = sadd.s32 4294967295, %s2328_s16   ;;  %s2328_s16 = sphi %s2447_s16, %s44_s16   ;;  %s2324_s15 = sphi %s2445_s15, %s3403_s15   ;;  %s2320_s14 = sphi %s2443_s14, %s3402_s14   ;;  %s2316_s13 = sphi %s2441_s13, %s3401_s13   ;;  %s2312_s30 = sphi %s2439_s30, %s3400_s30   ;;  %s2308_s29 = sphi %s2437_s29, %s3399_s29   ;;  %s2304_s28 = sphi %s2435_s28, %s3398_s28   ;;  %s2300_s27 = sphi %s2433_s27, %s3397_s27   ;;  %s2296_s26 = sphi %s2431_s26, %s3387_s26   ;;  %s2292_s25 = sphi %s2429_s25, %s3396_s25   ;;  %s2288_s24 = sphi %s2427_s24, %s3395_s24   ;;  %s2284_s23 = sphi %s2425_s23, %s3394_s23   ;;  %s2280_s22 = sphi %s2423_s22, %s3393_s22   ;;  %s2276_s21 = sphi %s2421_s21, %s3385_s21  }
  0x24   : > { %3293 = sst [smem:[#allocation34_spill]] %s2288_s24  ;;  %p1488_p0 = scmp.ge.s32.totalorder %s2328_s16, 1 }
  0x25   : > { %3294 = sst [smem:[#allocation35_spill]] %s2296_s26  ;;  %p3240_p1 = scmp.eq.s32.totalorder %s2492_s17, 0 }
  0x26   : > { %3295 = sst [smem:[#allocation36_spill]] %s2312_s30  ;;  %p391_p2 = scmp.lt.s32.totalorder %s2328_s16, 9 }
  0x27   : > { %3296 = sst [smem:[#allocation37_spill]] %s2316_s13  ;;  %s2330_s19 = smov [#allocation19]  }
  0x28   : > { %3297 = sst [smem:[#allocation38_spill]] %s2324_s15  ;;  %p2497_p3 = pnand %p1488_p0, %p391_p2 }
  0x29   : > { %3298 = sst [smem:[#allocation39_spill]] %s2492_s17  ;;  %s403_s20 = sshll.u32 %s2330_s19, 4  ;;  %s404_s20 = int_to_ptr.vmem [resolvable:$true] %s403_s20 }
  0x2a   : > { %s3299_s18 = scalar_select %p2497_p3, 1, 0 }
  0x2b   : > { %p1597_p4 = pneg %p2497_p3  ;;  %s3302_s10 = sld [smem:[#allocation58_spill]] }
  0x2c   : > { %3300 = sst [smem:[#allocation40_spill]] %s3299_s18 }
  0x2d   : > { %p2505_p5 = pnand %p1597_p4, %p3240_p1 }
  0x2f   : > { %s3301_s12 = scalar_select %p2505_p5, 1, 0 }
  0x30   : > { %p3244_p7 = pneg %p2505_p5 }
  0x31   : > { %s1794_s9 = scalar_lea.hbm %s3302_s10, 256 }
  0x32   : > { %p1795_p6 = scmp.ne.s32.totalorder %s3302_s10, %s1794_s9  ;;  %p1801_p10 = scmp.lt.u32.totalorder %s1794_s9, %s3302_s10 }
  0x34   : > { %p1797_p8 = pnand %p3244_p7, %p1795_p6 }
  0x36   : > { %p1798_p9 = pneg %p1797_p8 }
  0x38   : > { %p1803_p11 = pnand %p1801_p10, %p1798_p9 }
  0x3a   : > { %1806 = shalt.err (!%p1803_p11)
}
  0x3b   : > { %s1807_s30 = scalar_lea.vmem %s404_s20, 256  ;;  %p1815_p2 = scmp.lt.s32.totalorder %s404_s20, %s404_s20 }
  0x3c   : > { %p1808_p12 = scmp.ne.s32.totalorder %s404_s20, %s1807_s30  ;;  %p1816_p4 = scmp.lt.s32.totalorder %s1807_s30, %s1807_s30 }
  0x3e   : > { %p1810_p13 = pnand %p1808_p12, %p3244_p7  ;;  %p1817_p1 = por %p1816_p4, %p1815_p2 }
  0x40   : > { %p1811_p0 = pneg %p1810_p13 }
  0x42   : > { %p1818_p3 = pnand %p1817_p1, %p1811_p0 }
  0x44   : > { %1821 = shalt.err (!%p1818_p3)
}
  0x45   : > { %s2331_s6 = smov 64   ;;  %s2332_s8 = smov 4  }
  0x46   : > { %1600 = dma.hbm_to_vmem [thread:$0]  (!%p2505_p5), %s3302_s10, 256, %s404_s20, [#allocation18], %s2331_s6, %s2331_s6, %s2332_s8  }
  0x47   : > { %s1487_s18 = sadd.s32 4294967294, %s2328_s16   ;;  %s3246_s19 = sadd.s32 1, %s2320_s14 }
  0x48   : > { %s56_s30 = sadd.s32 1, %s2324_s15  ;;  %p2536_p1 = scmp.ge.s32.totalorder %s3246_s19, 4 }
  0x49   : > { %p3247_p3 = scmp.eq.s32.totalorder %s2328_s16, 0  ;;  %s91_s2 = sadd.s32 1, %s2296_s26 }
  0x4a   : > { %s3303_s4 = scalar_select %p2536_p1, 1, 0 }
  0x4b   : > { %p98_p6 = scmp.ne.s32.totalorder %s2296_s26, %s2292_s25  ;;  %s3405_s30 = smov (!%p2536_p1, %s56_s30), %s2324_s15 }
  0x4c   : > { %p3245_p9 = scmp.ne.s32.totalorder %s2292_s25, %s2288_s24  ;;  %p58_p10 = scmp.ge.s32.totalorder %s3405_s30, 2 }
  0x4d   : > { %p2552_p8 = por %p98_p6, %p3247_p3  ;;  %p124_p11 = scmp.ne.s32.totalorder %s2284_s23, %s2280_s22 }
  0x4e   : > { %p3305_p12 = scmp.eq.s32.totalorder %s2492_s17, 0  ;;  %p130_p0 = scmp.ne.s32.totalorder %s2280_s22, %s2276_s21 }
  0x4f   : > { %s3407_s30 = smov (%p58_p10, %s3405_s30), 0  ;;  %p2575_p2 = por %p124_p11, %p3247_p3 }
  0x50   : > { %p2565_p13 = por %p3245_p9, %p3305_p12  ;;  %3308 = sst [smem:[#allocation42_spill]] %s3407_s30 }
  0x51   : > { %p3310_p4 = pmov %p3305_p12  ;;  %s2587_s13 = ssub.s32 %s2324_s15, %s3407_s30 }
  0x52   : > { %s3306_s6 = scalar_select %p2565_p13, 1, 0 }
  0x53   : > { %p2581_p7 = por %p130_p0, %p3310_p4  ;;  %p378_p12 = scmp.eq.s32.totalorder %s2492_s17, 7 }
  0x54   : > { %3307 = sst [smem:[#allocation41_spill]] %s3306_s6  ;;  %p89_p10 = scmp.eq.s32.totalorder %s2587_s13, 0 }
  0x55   : > { %s3311_s9 = scalar_select %p2581_p7, 1, 0 }
  0x56   : > { %p384_p9 = scmp.eq.s32.totalorder %s1487_s18, 7  ;;  %p2594_p11 = por %p378_p12, %p98_p6 }
  0x57   : > { %3312 = sst [smem:[#allocation43_spill]] %s3311_s9  ;;  %p3259_p0 = scmp.lt.s32.totalorder %s2328_s16, 8 }
  0x58   : > { %s3313_s21 = scalar_select %p2594_p11, 1, 0 }
  0x59   : > { %s2600_s19 = scalar_select %p89_p10, %s2296_s26, %s91_s2  }
  0x5a   : > { %p3315_p4 = scmp.ne.s32.totalorder %s2292_s25, %s2288_s24  ;;  %s2610_s30 = sand.u32 1, %s2328_s16  }
  0x5b   : > { %3314 = sst [smem:[#allocation44_spill]] %s2600_s19  ;;  %s450_s9 = sand.u32 1, %s2296_s26  }
  0x5c   : > { %p2605_p3 = por %p384_p9, %p3315_p4  ;;  %s1495_s22 = sshll.u32 %s450_s9, 3 }
  0x5d   : > { %s1496_s6 = sshll.u32 %s2324_s15, 7  ;;  %s3318_s1 = sld [smem:[#allocation49_spill]] }
  0x5e   : > { %s3316_s10 = scalar_select %p2605_p3, 1, 0 }
  0x5f   : > { %s452_s2 = scalar_lea.vmem [#allocation5], %s1495_s22  ;;  %p2623_p6 = pnand %p3259_p0, %p2552_p8 }
  0x60   : > { %3317 = sst [smem:[#allocation45_spill]] %s3316_s10  ;;  %s459_s19 = sshll.u32 %s452_s2, 4  ;;  %s2627_s19 = int_to_ptr.vmem [resolvable:$true] %s459_s19 }
  0x61   : > { %p2633_p9 = pnand %p3259_p0, %p2575_p2  ;;  %p1824_p8 = pneg %p2623_p6 }
  0x63   : > { %s2617_s17 = scalar_lea.hbm %s3318_s1, %s1496_s6  ;;  %s2638_s6 = sand.u32 1, %s2284_s23  }
  0x64   : > { %s3320_s0 = scalar_select %p2633_p9, 1, 0 }
  0x65   : > { %s1822_s9 = scalar_lea.hbm %s2617_s17, 128  ;;  %s1827_s8 = scalar_lea.hbm %s3318_s1, 256 }
  0x66   : > { %p1823_p12 = scmp.ne.s32.totalorder %s2617_s17, %s1822_s9  ;;  %p1828_p2 = scmp.lt.u32.totalorder %s2617_s17, %s3318_s1 }
  0x67   : > { %p1829_p0 = scmp.lt.u32.totalorder %s1827_s8, %s1822_s9  ;;  %p1831_p11 = scmp.lt.u32.totalorder %s1822_s9, %s2617_s17 }
  0x68   : > { %p1825_p10 = pnand %p1824_p8, %p1823_p12 }
  0x69   : > { %p1830_p3 = por %p1829_p0, %p1828_p2 }
  0x6a   : > { %p1826_p4 = pneg %p1825_p10 }
  0x6b   : > { %p1832_p7 = por %p1831_p11, %p1830_p3 }
  0x6d   : > { %p1833_p13 = pnand %p1832_p7, %p1826_p4 }
  0x6f   : > { %1836 = shalt.err (!%p1833_p13)
}
  0x70   : > { %s1837_s22 = scalar_lea.vmem %s2627_s19, 128  ;;  %s2333_s20 = smov [#allocation5]  }
  0x71   : > { %p1838_p12 = scmp.ne.s32.totalorder %s2627_s19, %s1837_s22  ;;  %s1842_s18 = sshll.u32 %s2333_s20, 4  ;;  %s1843_s18 = int_to_ptr.vmem [resolvable:$false] %s1842_s18 }
  0x72   : > { %s1844_s26 = scalar_lea.vmem %s1843_s18, 256  ;;  %p1845_p5 = scmp.lt.s32.totalorder %s2627_s19, %s1843_s18 }
  0x73   : > { %p1840_p10 = pnand %p1838_p12, %p1824_p8  ;;  %p1846_p0 = scmp.lt.s32.totalorder %s1844_s26, %s1837_s22 }
  0x75   : > { %p1841_p1 = pneg %p1840_p10  ;;  %p1847_p2 = por %p1846_p0, %p1845_p5 }
  0x77   : > { %p1848_p3 = pnand %p1847_p2, %p1841_p1 }
  0x79   : > { %1851 = shalt.err (!%p1848_p3)
}
  0x7a   : > { %s3321_s9 = scalar_lea.sflag [#allocation6], %s2610_s30  ;;  %s2669_s8 = sshll.u32 %s2320_s14, 4 }
  0x7b   : > { %1610 = dma.hbm_to_vmem [thread:$0]  (!%p2623_p6), %s2617_s17, 128, %s2627_s19, %s3321_s9  }
  0x7c   : > { %s3322_s3 = sld [smem:[#allocation51_spill]]  ;;  %s487_s10 = scalar_lea.vmem [#allocation8], %s2638_s6 }
  0x7d   : > { %s494_s18 = sshll.u32 %s487_s10, 4  ;;  %p2685_p7 = pneg %p2633_p9  ;;  %s2678_s18 = int_to_ptr.vmem [resolvable:$true] %s494_s18 }
  0x7f   : > { %s3323_s17 = scalar_select %p2685_p7, 1, 0 }
  0x82   : > { %s2675_s22 = scalar_lea.hbm %s3322_s3, %s2669_s8  ;;  %s1857_s2 = scalar_lea.hbm %s3322_s3, 64 }
  0x83   : > { %s1852_s1 = scalar_lea.hbm %s2675_s22, 16  ;;  %p1858_p11 = scmp.lt.u32.totalorder %s2675_s22, %s3322_s3 }
  0x84   : > { %p1853_p5 = scmp.ne.s32.totalorder %s2675_s22, %s1852_s1  ;;  %p1859_p6 = scmp.lt.u32.totalorder %s1857_s2, %s1852_s1 }
  0x85   : > { %p1861_p4 = scmp.lt.u32.totalorder %s1852_s1, %s2675_s22 }
  0x86   : > { %p1855_p1 = pnand %p2685_p7, %p1853_p5  ;;  %p1860_p8 = por %p1859_p6, %p1858_p11 }
  0x88   : > { %p1856_p13 = pneg %p1855_p1  ;;  %p1862_p12 = por %p1861_p4, %p1860_p8 }
  0x8a   : > { %p1863_p10 = pnand %p1862_p12, %p1856_p13 }
  0x8c   : > { %1866 = shalt.err (!%p1863_p10)
}
  0x8d   : > { %s1867_s26 = scalar_lea.vmem %s2678_s18, 16  ;;  %s2334_s19 = smov [#allocation8]  }
  0x8e   : > { %p1868_p0 = scmp.ne.s32.totalorder %s2678_s18, %s1867_s26  ;;  %s1872_s9 = sshll.u32 %s2334_s19, 4  ;;  %s1873_s9 = int_to_ptr.vmem [resolvable:$false] %s1872_s9 }
  0x8f   : > { %s1874_s20 = scalar_lea.vmem %s1873_s9, 32  ;;  %p1875_p5 = scmp.lt.s32.totalorder %s2678_s18, %s1873_s9 }
  0x90   : > { %p1870_p2 = pnand %p1868_p0, %p2685_p7  ;;  %p1876_p1 = scmp.lt.s32.totalorder %s1874_s20, %s1867_s26 }
  0x92   : > { %p1871_p3 = pneg %p1870_p2  ;;  %p1877_p11 = por %p1876_p1, %p1875_p5 }
  0x94   : > { %p1878_p6 = pnand %p1877_p11, %p1871_p3 }
  0x96   : > { %1881 = shalt.err (!%p1878_p6)
}
  0x97   : > { %s3324_s1 = scalar_lea.sflag [#allocation9], %s2610_s30  ;;  %s3325_s5 = sld [smem:[#allocation53_spill]] }
  0x98   : > { %1616 = dma.hbm_to_vmem [thread:$0]  (!%p2633_p9), %s2675_s22, 16, %s2678_s18, %s3324_s1  }
  0x99   : > { %s525_s26 = scalar_lea.vmem [#allocation11], %s2638_s6 }
  0x9a   : > { %s532_s9 = sshll.u32 %s525_s26, 4  ;;  %s533_s9 = int_to_ptr.vmem [resolvable:$true] %s532_s9 }
  0x9d   : > { %s2714_s19 = scalar_lea.hbm %s3325_s5, %s2669_s8  ;;  %s1887_s18 = scalar_lea.hbm %s3325_s5, 64 }
  0x9e   : > { %s1882_s3 = scalar_lea.hbm %s2714_s19, 16  ;;  %p1888_p12 = scmp.lt.u32.totalorder %s2714_s19, %s3325_s5 }
  0x9f   : > { %p1883_p13 = scmp.ne.s32.totalorder %s2714_s19, %s1882_s3  ;;  %p1889_p10 = scmp.lt.u32.totalorder %s1887_s18, %s1882_s3 }
  0xa0   : > { %p1891_p2 = scmp.lt.u32.totalorder %s1882_s3, %s2714_s19 }
  0xa1   : > { %p1885_p8 = pnand %p1883_p13, %p2685_p7  ;;  %p1890_p0 = por %p1889_p10, %p1888_p12 }
  0xa3   : > { %p1886_p4 = pneg %p1885_p8  ;;  %p1892_p3 = por %p1891_p2, %p1890_p0 }
  0xa5   : > { %p1893_p5 = pnand %p1892_p3, %p1886_p4 }
  0xa7   : > { %1896 = shalt.err (!%p1893_p5)
}
  0xa8   : > { %s1897_s10 = scalar_lea.vmem %s533_s9, 16  ;;  %s2335_s26 = smov [#allocation11]  }
  0xa9   : > { %p1898_p1 = scmp.ne.s32.totalorder %s533_s9, %s1897_s10  ;;  %s1902_s20 = sshll.u32 %s2335_s26, 4  ;;  %s1903_s20 = int_to_ptr.vmem [resolvable:$false] %s1902_s20 }
  0xaa   : > { %s1904_s24 = scalar_lea.vmem %s1903_s20, 32  ;;  %p1905_p13 = scmp.lt.s32.totalorder %s533_s9, %s1903_s20 }
  0xab   : > { %p1900_p11 = pnand %p1898_p1, %p2685_p7  ;;  %p1906_p8 = scmp.lt.s32.totalorder %s1904_s24, %s1897_s10 }
  0xad   : > { %p1901_p6 = pneg %p1900_p11  ;;  %p1907_p9 = por %p1906_p8, %p1905_p13 }
  0xaf   : > { %p1908_p10 = pnand %p1907_p9, %p1901_p6 }
  0xb1   : > { %1911 = shalt.err (!%p1908_p10)
}
  0xb2   : > { %p3326_p12 = scmp.ne.s32.totalorder %s3320_s0, 0  ;;  %s3327_s3 = scalar_lea.sflag [#allocation12], %s2610_s30 }
  0xb3   : > { %s3328_s7 = sld [smem:[#allocation55_spill]]  ;;  %s563_s20 = scalar_lea.vmem [#allocation14], %s2638_s6 }
  0xb4   : > { %1622 = dma.hbm_to_vmem [thread:$0]  (!%p3326_p12), %s2714_s19, 16, %s533_s9, %s3327_s3  }
  0xb5   : > { %s570_s2 = sshll.u32 %s563_s20, 4  ;;  %s571_s2 = int_to_ptr.vmem [resolvable:$true] %s570_s2 }
  0xb9   : > { %s2741_s1 = scalar_lea.hbm %s3328_s7, %s2669_s8  ;;  %s1917_s9 = scalar_lea.hbm %s3328_s7, 64 }
  0xba   : > { %s1912_s26 = scalar_lea.hbm %s2741_s1, 16  ;;  %p1918_p2 = scmp.lt.u32.totalorder %s2741_s1, %s3328_s7 }
  0xbb   : > { %p1913_p9 = scmp.ne.s32.totalorder %s2741_s1, %s1912_s26  ;;  %p1919_p3 = scmp.lt.u32.totalorder %s1917_s9, %s1912_s26 }
  0xbc   : > { %p1921_p1 = scmp.lt.u32.totalorder %s1912_s26, %s2741_s1 }
  0xbd   : > { %p1915_p4 = pnand %p1913_p9, %p2685_p7  ;;  %p1920_p5 = por %p1919_p3, %p1918_p2 }
  0xbf   : > { %p1916_p0 = pneg %p1915_p4  ;;  %p1922_p11 = por %p1921_p1, %p1920_p5 }
  0xc1   : > { %p1923_p6 = pnand %p1922_p11, %p1916_p0 }
  0xc3   : > { %1926 = shalt.err (!%p1923_p6)
}
  0xc4   : > { %s1927_s18 = scalar_lea.vmem %s571_s2, 16  ;;  %s2336_s20 = smov [#allocation14]  }
  0xc5   : > { %p1928_p13 = scmp.ne.s32.totalorder %s571_s2, %s1927_s18  ;;  %s1932_s10 = sshll.u32 %s2336_s20, 4  ;;  %s1933_s10 = int_to_ptr.vmem [resolvable:$false] %s1932_s10 }
  0xc6   : > { %s1934_s24 = scalar_lea.vmem %s1933_s10, 32  ;;  %p1935_p9 = scmp.lt.s32.totalorder %s571_s2, %s1933_s10 }
  0xc7   : > { %p1930_p8 = pnand %p1928_p13, %p2685_p7  ;;  %p1936_p4 = scmp.lt.s32.totalorder %s1934_s24, %s1927_s18 }
  0xc9   : > { %p1931_p10 = pneg %p1930_p8  ;;  %p1937_p12 = por %p1936_p4, %p1935_p9 }
  0xcb   : > { %p1938_p2 = pnand %p1937_p12, %p1931_p10 }
  0xcd   : > { %1941 = shalt.err (!%p1938_p2)
}
  0xce   : > { %p3329_p3 = scmp.ne.s32.totalorder %s3320_s0, 0  ;;  %s3330_s26 = scalar_lea.sflag [#allocation15], %s2610_s30 }
  0xcf   : > { %s2337_s19 = smov [#allocation20]   ;;  %s3331_s11 = sld [smem:[#allocation59_spill]] }
  0xd0   : > { %1628 = dma.hbm_to_vmem [thread:$0]  (!%p3329_p3), %s2741_s1, 16, %s571_s2, %s3330_s26  }
  0xd1   : > { %s417_s9 = sshll.u32 %s2337_s19, 4  ;;  %p3332_p12 = scmp.ne.s32.totalorder %s3301_s12, 0  ;;  %s418_s9 = int_to_ptr.vmem [resolvable:$true] %s417_s9 }
  0xd3   : > { %p3333_p5 = pneg %p3332_p12 }
  0xd5   : > { %s1942_s20 = scalar_lea.hbm %s3331_s11, 16 }
  0xd6   : > { %p1943_p0 = scmp.ne.s32.totalorder %s3331_s11, %s1942_s20  ;;  %p1949_p6 = scmp.lt.u32.totalorder %s1942_s20, %s3331_s11 }
  0xd8   : > { %p1945_p1 = pnand %p1943_p0, %p3333_p5 }
  0xda   : > { %p1946_p11 = pneg %p1945_p1 }
  0xdc   : > { %p1951_p13 = pnand %p1949_p6, %p1946_p11 }
  0xde   : > { %1954 = shalt.err (!%p1951_p13)
}
  0xdf   : > { %s1955_s1 = scalar_lea.vmem %s418_s9, 16  ;;  %p3334_p10 = pmov %p3333_p5 }
  0xe0   : > { %p1956_p8 = scmp.ne.s32.totalorder %s418_s9, %s1955_s1  ;;  %s1962_s2 = scalar_lea.vmem %s418_s9, 32 }
  0xe1   : > { %p1963_p2 = scmp.lt.s32.totalorder %s418_s9, %s418_s9  ;;  %p1964_p3 = scmp.lt.s32.totalorder %s1962_s2, %s1955_s1 }
  0xe2   : > { %p1958_p9 = pnand %p1956_p8, %p3334_p10 }
  0xe3   : > { %p1965_p7 = por %p1964_p3, %p1963_p2 }
  0xe4   : > { %p1959_p4 = pneg %p1958_p9 }
  0xe6   : > { %p1966_p0 = pnand %p1965_p7, %p1959_p4 }
  0xe8   : > { %1969 = shalt.err (!%p1966_p0)
}
  0xe9   : > { %s3335_s19 = sld [smem:[#allocation39_spill]]  ;;  %s3336_s12 = sadd.s32 1, %s2320_s14 }
  0xea   : > { %1603 = dma.hbm_to_vmem [thread:$0]  (!%p3332_p12), %s3331_s11, 16, %s418_s9, [#allocation21]  }
  0xeb   : > { %p3337_p7 = scmp.ne.s32.totalorder %s3303_s4, 0  ;;  %s65_s3 = sadd.s32 1, %s2308_s29 }
  0xec   : > { %p72_p3 = scmp.ne.s32.totalorder %s2308_s29, %s2304_s28  ;;  %p78_p5 = scmp.ne.s32.totalorder %s2304_s28, %s2300_s27 }
  0xed   : > { %s3409_s12 = smov (%p3337_p7, %s3336_s12), 0  ;;  %p3339_p1 = scmp.eq.s32.totalorder %s2328_s16, 0 }
  0xee   : > { %3338 = sst [smem:[#allocation46_spill]] %s3409_s12  ;;  %s60_s22 = ssub.s32 %s2320_s14, %s3409_s12 }
  0xef   : > { %s62_s20 = sor.u32 %s2587_s13, %s60_s22  ;;  %p2800_p11 = por %p3339_p1, %p72_p3 }
  0xf0   : > { %p63_p6 = scmp.eq.s32.totalorder %s62_s20, 0  ;;  %p3341_p12 = scmp.eq.s32.totalorder %s3335_s19, 0 }
  0xf1   : > { %p115_p8 = scmp.eq.s32.totalorder %s60_s22, 0  ;;  %s117_s9 = sadd.s32 1, %s2284_s23 }
  0xf2   : > { %p2806_p13 = por %p3341_p12, %p78_p5  ;;  %s428_s13 = sand.u32 1, %s2308_s29  }
  0xf3   : > { %s2812_s18 = scalar_select %p63_p6, %s2308_s29, %s65_s3  }
  0xf4   : > { %s3342_s4 = scalar_select %p2806_p13, 1, 0 }
  0xf5   : > { %3343 = sst [smem:[#allocation47_spill]] %s2812_s18  ;;  %s1493_s24 = sshll.u32 %s2320_s14, 1 }
  0xf6   : > { %s2815_s27 = scalar_select %p115_p8, %s2284_s23, %s117_s9  }
  0xf7   : > { %s1492_s1 = sshll.u32 %s428_s13, 2  ;;  %s437_s2 = sadd.s32 %s2324_s15, %s1493_s24 }
  0xf8   : > { %s1494_s5 = sshll.u32 %s437_s2, 6  ;;  %s432_s26 = scalar_lea.vmem [#allocation2], %s1492_s1 }
  0xf9   : > { %s441_s20 = sshll.u32 %s432_s26, 4  ;;  %s3344_s11 = sld [smem:[#allocation48_spill]]  ;;  %s2825_s20 = int_to_ptr.vmem [resolvable:$true] %s441_s20 }
  0xfa   : > { %p3345_p10 = scmp.lt.s32.totalorder %s2328_s16, 8  ;;  %s1498_s9 = sshll.u32 %s2320_s14, 6 }
  0xfb   : > { %s3347_s1 = sld [smem:[#allocation50_spill]] }
  0xfc   : > { %p2831_p9 = pnand %p3345_p10, %p2800_p11 }
  0xfe   : > { %p1972_p2 = pneg %p2831_p9 }
  0xff   : > { %s2823_s12 = scalar_lea.hbm %s3344_s11, %s1494_s5  ;;  %s429_s5 = scalar_lea.sflag [#allocation3], %s428_s13 }
 0x100   : > { %s1970_s26 = scalar_lea.hbm %s2823_s12, 64  ;;  %s1975_s15 = scalar_lea.hbm %s3344_s11, 512 }
 0x101   : > { %s2840_s2 = scalar_lea.hbm %s3347_s1, %s1498_s9  ;;  %p1971_p4 = scmp.ne.s32.totalorder %s2823_s12, %s1970_s26 }
 0x102   : > { %p1976_p3 = scmp.lt.u32.totalorder %s2823_s12, %s3344_s11  ;;  %p1977_p5 = scmp.lt.u32.totalorder %s1975_s15, %s1970_s26 }
 0x103   : > { %p1973_p0 = pnand %p1972_p2, %p1971_p4  ;;  %p1979_p11 = scmp.lt.u32.totalorder %s1970_s26, %s2823_s12 }
 0x104   : > { %p1978_p1 = por %p1977_p5, %p1976_p3 }
 0x105   : > { %p1974_p7 = pneg %p1973_p0 }
 0x106   : > { %p1980_p6 = por %p1979_p11, %p1978_p1 }
 0x108   : > { %p1981_p12 = pnand %p1980_p6, %p1974_p7 }
 0x10a   : > { %1984 = shalt.err (!%p1981_p12)
}
 0x10b   : > { %s1985_s13 = scalar_lea.vmem %s2825_s20, 64  ;;  %s2338_s9 = smov [#allocation2]  }
 0x10c   : > { %p1986_p8 = scmp.ne.s32.totalorder %s2825_s20, %s1985_s13  ;;  %s1990_s24 = sshll.u32 %s2338_s9, 4  ;;  %s1991_s24 = int_to_ptr.vmem [resolvable:$false] %s1990_s24 }
 0x10d   : > { %s1992_s18 = scalar_lea.vmem %s1991_s24, 128  ;;  %p1993_p0 = scmp.lt.s32.totalorder %s2825_s20, %s1991_s24 }
 0x10e   : > { %p1988_p10 = pnand %p1986_p8, %p1972_p2  ;;  %p1994_p3 = scmp.lt.s32.totalorder %s1992_s18, %s1985_s13 }
 0x110   : > { %p1989_p4 = pneg %p1988_p10  ;;  %p1995_p5 = por %p1994_p3, %p1993_p0 }
 0x112   : > { %p1996_p1 = pnand %p1995_p5, %p1989_p4 }
 0x114   : > { %1999 = shalt.err (!%p1996_p1)
}
 0x115   : > { %1607 = dma.hbm_to_vmem [thread:$0]  (!%p2831_p9), %s2823_s12, 64, %s2825_s20, %s429_s5  }
 0x116   : > { %s3348_s15 = sshll.u32 %s2638_s6, 2  ;;  %s1500_s26 = sshll.u32 %s2638_s6, 5 }
 0x117   : > { %s470_s22 = scalar_lea.vmem [#allocation7], %s3348_s15  ;;  %s2000_s10 = scalar_lea.hbm %s2840_s2, 64 }
 0x118   : > { %s477_s7 = sshll.u32 %s470_s22, 4  ;;  %p2001_p2 = scmp.ne.s32.totalorder %s2840_s2, %s2000_s10  ;;  %s478_s7 = int_to_ptr.vmem [resolvable:$true] %s477_s7 }
 0x119   : > { %p3349_p7 = scmp.ne.s32.totalorder %s3323_s17, 0  ;;  %s2005_s13 = scalar_lea.hbm %s3347_s1, 256 }
 0x11a   : > { %p2006_p12 = scmp.lt.u32.totalorder %s2840_s2, %s3347_s1  ;;  %p2007_p8 = scmp.lt.u32.totalorder %s2005_s13, %s2000_s10 }
 0x11b   : > { %p2003_p11 = pnand %p2001_p2, %p3349_p7  ;;  %p2009_p10 = scmp.lt.u32.totalorder %s2000_s10, %s2840_s2 }
 0x11c   : > { %p2008_p9 = por %p2007_p8, %p2006_p12 }
 0x11d   : > { %p2004_p6 = pneg %p2003_p11 }
 0x11e   : > { %p2010_p4 = por %p2009_p10, %p2008_p9 }
 0x120   : > { %p2011_p0 = pnand %p2010_p4, %p2004_p6 }
 0x122   : > { %2014 = shalt.err (!%p2011_p0)
}
 0x123   : > { %s2015_s12 = scalar_lea.vmem %s478_s7, 64  ;;  %s2339_s20 = smov [#allocation7]  }
 0x124   : > { %p2016_p3 = scmp.ne.s32.totalorder %s478_s7, %s2015_s12  ;;  %s2020_s5 = sshll.u32 %s2339_s20, 4  ;;  %s2021_s5 = int_to_ptr.vmem [resolvable:$false] %s2020_s5 }
 0x125   : > { %s2022_s18 = scalar_lea.vmem %s2021_s5, 128  ;;  %p2023_p2 = scmp.lt.s32.totalorder %s478_s7, %s2021_s5 }
 0x126   : > { %p2018_p5 = pnand %p2016_p3, %p3349_p7  ;;  %p2024_p11 = scmp.lt.s32.totalorder %s2022_s18, %s2015_s12 }
 0x128   : > { %p2019_p1 = pneg %p2018_p5  ;;  %p2025_p13 = por %p2024_p11, %p2023_p2 }
 0x12a   : > { %p2026_p8 = pnand %p2025_p13, %p2019_p1 }
 0x12c   : > { %2029 = shalt.err (!%p2026_p8)
}
 0x12d   : > { %p3350_p12 = scmp.ne.s32.totalorder %s3320_s0, 0  ;;  %s3351_s15 = scalar_lea.sflag [#allocation6], %s2610_s30 }
 0x12e   : > { %s1546_s22 = sshll.u32 %s2320_s14, 9  ;;  %s505_s10 = scalar_lea.vmem [#allocation10], %s1500_s26 }
 0x12f   : > { %1613 = dma.hbm_to_vmem [thread:$0]  (!%p3350_p12), %s2840_s2, 64, %s478_s7, %s3351_s15  }
 0x130   : > { %s512_s3 = sshll.u32 %s505_s10, 4  ;;  %s3352_s9 = sld [smem:[#allocation52_spill]]  ;;  %s2899_s3 = int_to_ptr.vmem [resolvable:$true] %s512_s3 }
 0x136   : > { %s2897_s24 = scalar_lea.hbm %s3352_s9, %s1546_s22  ;;  %s2035_s20 = scalar_lea.hbm %s3352_s9, 2048 }
 0x137   : > { %s2030_s12 = scalar_lea.hbm %s2897_s24, 512  ;;  %p2036_p10 = scmp.lt.u32.totalorder %s2897_s24, %s3352_s9 }
 0x138   : > { %p2031_p13 = scmp.ne.s32.totalorder %s2897_s24, %s2030_s12  ;;  %p2037_p4 = scmp.lt.u32.totalorder %s2035_s20, %s2030_s12 }
 0x139   : > { %p2039_p3 = scmp.lt.u32.totalorder %s2030_s12, %s2897_s24 }
 0x13a   : > { %p2033_p6 = pnand %p2031_p13, %p3349_p7  ;;  %p2038_p0 = por %p2037_p4, %p2036_p10 }
 0x13c   : > { %p2034_p9 = pneg %p2033_p6  ;;  %p2040_p5 = por %p2039_p3, %p2038_p0 }
 0x13e   : > { %p2041_p1 = pnand %p2040_p5, %p2034_p9 }
 0x140   : > { %2044 = shalt.err (!%p2041_p1)
}
 0x141   : > { %s2045_s15 = scalar_lea.vmem %s2899_s3, 512  ;;  %s2340_s10 = smov [#allocation10]  }
 0x142   : > { %p2046_p2 = scmp.ne.s32.totalorder %s2899_s3, %s2045_s15  ;;  %s2050_s19 = sshll.u32 %s2340_s10, 4  ;;  %s2051_s19 = int_to_ptr.vmem [resolvable:$false] %s2050_s19 }
 0x143   : > { %s2052_s13 = scalar_lea.vmem %s2051_s19, 1024  ;;  %p2053_p13 = scmp.lt.s32.totalorder %s2899_s3, %s2051_s19 }
 0x144   : > { %p2048_p11 = pnand %p2046_p2, %p3349_p7  ;;  %p2054_p6 = scmp.lt.s32.totalorder %s2052_s13, %s2045_s15 }
 0x146   : > { %p2049_p8 = pneg %p2048_p11  ;;  %p2055_p10 = por %p2054_p6, %p2053_p13 }
 0x148   : > { %p2056_p4 = pnand %p2055_p10, %p2049_p8 }
 0x14a   : > { %2059 = shalt.err (!%p2056_p4)
}
 0x14b   : > { %s2341_s12 = smov 128   ;;  %s2342_s2 = smov 8  }
 0x14c   : > { %s3353_s7 = scalar_lea.sflag [#allocation9], %s2610_s30  ;;  %s3354_s18 = sld [smem:[#allocation54_spill]] }
 0x14d   : > { %1619 = dma.hbm_to_vmem [thread:$0]  (!%p3350_p12), %s2897_s24, 512, %s2899_s3, %s3353_s7, %s2341_s12, %s2341_s12, %s2342_s2  }
 0x14e   : > { %s543_s10 = scalar_lea.vmem [#allocation13], %s1500_s26  ;;  %s3355_s9 = sld [smem:[#allocation56_spill]] }
 0x14f   : > { %s550_s19 = sshll.u32 %s543_s10, 4  ;;  %s2936_s19 = int_to_ptr.vmem [resolvable:$true] %s550_s19 }
 0x152   : > { %s2932_s15 = scalar_lea.hbm %s3354_s18, %s1546_s22  ;;  %s2065_s7 = scalar_lea.hbm %s3354_s18, 2048 }
 0x153   : > { %s2060_s3 = scalar_lea.hbm %s2932_s15, 512  ;;  %p2066_p5 = scmp.lt.u32.totalorder %s2932_s15, %s3354_s18 }
 0x154   : > { %s2942_s11 = scalar_lea.hbm %s3355_s9, %s2669_s8  ;;  %p2061_p9 = scmp.ne.s32.totalorder %s2932_s15, %s2060_s3 }
 0x155   : > { %p2067_p1 = scmp.lt.u32.totalorder %s2065_s7, %s2060_s3  ;;  %p2069_p11 = scmp.lt.u32.totalorder %s2060_s3, %s2932_s15 }
 0x156   : > { %p2063_p0 = pnand %p2061_p9, %p3349_p7 }
 0x157   : > { %p2068_p2 = por %p2067_p1, %p2066_p5 }
 0x158   : > { %p2064_p3 = pneg %p2063_p0 }
 0x159   : > { %p2070_p8 = por %p2069_p11, %p2068_p2 }
 0x15b   : > { %p2071_p13 = pnand %p2070_p8, %p2064_p3 }
 0x15d   : > { %2074 = shalt.err (!%p2071_p13)
}
 0x15e   : > { %s2075_s1 = scalar_lea.vmem %s2936_s19, 512  ;;  %s2343_s26 = smov [#allocation13]  }
 0x15f   : > { %p2076_p6 = scmp.ne.s32.totalorder %s2936_s19, %s2075_s1  ;;  %s2080_s10 = sshll.u32 %s2343_s26, 4  ;;  %s2081_s10 = int_to_ptr.vmem [resolvable:$false] %s2080_s10 }
 0x160   : > { %s2082_s13 = scalar_lea.vmem %s2081_s10, 1024  ;;  %p2083_p9 = scmp.lt.s32.totalorder %s2936_s19, %s2081_s10 }
 0x161   : > { %p2078_p10 = pnand %p2076_p6, %p3349_p7  ;;  %p2084_p0 = scmp.lt.s32.totalorder %s2082_s13, %s2075_s1 }
 0x163   : > { %p2079_p4 = pneg %p2078_p10  ;;  %p2085_p5 = por %p2084_p0, %p2083_p9 }
 0x165   : > { %p2086_p1 = pnand %p2085_p5, %p2079_p4 }
 0x167   : > { %2089 = shalt.err (!%p2086_p1)
}
 0x168   : > { %s3356_s3 = scalar_lea.sflag [#allocation12], %s2610_s30  ;;  %s580_s22 = scalar_lea.vmem [#allocation16], %s2638_s6 }
 0x169   : > { %1625 = dma.hbm_to_vmem [thread:$0]  (!%p3350_p12), %s2932_s15, 512, %s2936_s19, %s3356_s3, %s2341_s12, %s2341_s12, %s2342_s2  }
 0x16a   : > { %s587_s24 = sshll.u32 %s580_s22, 4  ;;  %s2090_s7 = scalar_lea.hbm %s2942_s11, 16  ;;  %s588_s24 = int_to_ptr.vmem [resolvable:$true] %s587_s24 }
 0x16b   : > { %p2091_p3 = scmp.ne.s32.totalorder %s2942_s11, %s2090_s7  ;;  %s2095_s1 = scalar_lea.hbm %s3355_s9, 64 }
 0x16c   : > { %p2096_p8 = scmp.lt.u32.totalorder %s2942_s11, %s3355_s9  ;;  %p2097_p13 = scmp.lt.u32.totalorder %s2095_s1, %s2090_s7 }
 0x16d   : > { %p2093_p2 = pnand %p2091_p3, %p3349_p7  ;;  %p2099_p10 = scmp.lt.u32.totalorder %s2090_s7, %s2942_s11 }
 0x16e   : > { %p2098_p6 = por %p2097_p13, %p2096_p8 }
 0x16f   : > { %p2094_p11 = pneg %p2093_p2 }
 0x170   : > { %p2100_p4 = por %p2099_p10, %p2098_p6 }
 0x172   : > { %p2101_p9 = pnand %p2100_p4, %p2094_p11 }
 0x174   : > { %2104 = shalt.err (!%p2101_p9)
}
 0x175   : > { %s2105_s12 = scalar_lea.vmem %s588_s24, 16  ;;  %s2344_s2 = smov [#allocation16]  }
 0x176   : > { %p2106_p0 = scmp.ne.s32.totalorder %s588_s24, %s2105_s12  ;;  %s2110_s15 = sshll.u32 %s2344_s2, 4  ;;  %s2111_s15 = int_to_ptr.vmem [resolvable:$false] %s2110_s15 }
 0x177   : > { %s2112_s19 = scalar_lea.vmem %s2111_s15, 32  ;;  %p2113_p3 = scmp.lt.s32.totalorder %s588_s24, %s2111_s15 }
 0x178   : > { %p2108_p5 = pnand %p2106_p0, %p3349_p7  ;;  %p2114_p2 = scmp.lt.s32.totalorder %s2112_s19, %s2105_s12 }
 0x17a   : > { %p2109_p1 = pneg %p2108_p5  ;;  %p2115_p12 = por %p2114_p2, %p2113_p3 }
 0x17c   : > { %p2116_p8 = pnand %p2115_p12, %p2109_p1 }
 0x17e   : > { %2119 = shalt.err (!%p2116_p8)
}
 0x17f   : > { %p3357_p13 = scmp.ne.s32.totalorder %s3320_s0, 0  ;;  %s3358_s13 = scalar_lea.sflag [#allocation15], %s2610_s30 }
 0x180   : > { %s3359_s7 = sld [smem:[#allocation57_spill]]  ;;  %s597_s5 = scalar_lea.vmem [#allocation17], %s2638_s6 }
 0x181   : > { %1631 = dma.hbm_to_vmem [thread:$0]  (!%p3357_p13), %s2942_s11, 16, %s588_s24, %s3358_s13  }
 0x182   : > { %s604_s1 = sshll.u32 %s597_s5, 4  ;;  %s595_s26 = scalar_lea.sflag [#allocation18], %s2610_s30  ;;  %s605_s1 = int_to_ptr.vmem [resolvable:$true] %s604_s1 }
 0x186   : > { %s2994_s20 = scalar_lea.hbm %s3359_s7, %s2669_s8  ;;  %s2125_s24 = scalar_lea.hbm %s3359_s7, 64 }
 0x187   : > { %s2120_s10 = scalar_lea.hbm %s2994_s20, 16  ;;  %p2126_p10 = scmp.lt.u32.totalorder %s2994_s20, %s3359_s7 }
 0x188   : > { %p2121_p12 = scmp.ne.s32.totalorder %s2994_s20, %s2120_s10  ;;  %p2127_p4 = scmp.lt.u32.totalorder %s2125_s24, %s2120_s10 }
 0x189   : > { %p2129_p0 = scmp.lt.u32.totalorder %s2120_s10, %s2994_s20 }
 0x18a   : > { %p2123_p11 = pnand %p2121_p12, %p3349_p7  ;;  %p2128_p9 = por %p2127_p4, %p2126_p10 }
 0x18c   : > { %p2124_p6 = pneg %p2123_p11  ;;  %p2130_p5 = por %p2129_p0, %p2128_p9 }
 0x18e   : > { %p2131_p1 = pnand %p2130_p5, %p2124_p6 }
 0x190   : > { %2134 = shalt.err (!%p2131_p1)
}
 0x191   : > { %s2135_s30 = scalar_lea.vmem %s605_s1, 16  ;;  %s2345_s6 = smov [#allocation17]  }
 0x192   : > { %p2136_p3 = scmp.ne.s32.totalorder %s605_s1, %s2135_s30  ;;  %s2140_s15 = sshll.u32 %s2345_s6, 4  ;;  %s2141_s15 = int_to_ptr.vmem [resolvable:$false] %s2140_s15 }
 0x193   : > { %s2142_s19 = scalar_lea.vmem %s2141_s15, 32  ;;  %p2143_p12 = scmp.lt.s32.totalorder %s605_s1, %s2141_s15 }
 0x194   : > { %p2138_p2 = pnand %p2136_p3, %p3349_p7  ;;  %p2144_p11 = scmp.lt.s32.totalorder %s2142_s19, %s2135_s30 }
 0x196   : > { %p2139_p8 = pneg %p2138_p2  ;;  %p2145_p13 = por %p2144_p11, %p2143_p12 }
 0x198   : > { %p2146_p4 = pnand %p2145_p13, %p2139_p8 }
 0x19a   : > { %2149 = shalt.err (!%p2146_p4)
}
 0x19b   : > { %p3360_p10 = scmp.ne.s32.totalorder %s3320_s0, 0  ;;  %s3361_s13 = sld [smem:[#allocation40_spill]] }
 0x19d   : > { %1634 = dma.hbm_to_vmem [thread:$0]  (!%p3360_p10), %s2994_s20, 16, %s605_s1, %s595_s26  }
 0x1a1   : > { %p3362_p6 = scmp.ne.s32.totalorder %s3361_s13, 0 }
 0x1a2   : > { %s615_s17 = sand.u32 (!%p3362_p6), 1, %s2304_s28   ;;  %p3363_p7 = scmp.ne.s32.totalorder (!%p3362_p6), %s3342_s4, 0 }
 0x1a3   : > { %613 = sbr.rel (%p3362_p6) target bundleno = 1756 (0x6dc), region = 68  ;;  %s3018_s3 = sshll.u32 (!%p3362_p6), %s615_s17, 2 }
 0x1a4   : > { %s616_s22 = scalar_lea.sflag (!%p3362_p6), [#allocation3], %s615_s17  ;;  %s619_s5 = scalar_lea.vmem (!%p3362_p6), [#allocation2], %s3018_s3 }
 0x1aa   : > { %2235 = dma.done.wait (%p3363_p7), %s616_s22, 64  }
 0x1ab   : > { %2237 = vsyncadd (%p3363_p7), %s616_s22, 4294967232  ;;  %s3364_s10 = sld [smem:[#allocation39_spill]]  ;;  %s3365_s0 = sld [smem:[#allocation41_spill]] }
 0x1ac   : > { %s3278_s1 = sand.u32 1, %s2292_s25  }
 0x1ad   : > { %s3031_s26 = sshll.u32 %s3278_s1, 3 }
 0x1ae   : > { %s628_s11 = scalar_lea.vmem [#allocation5], %s3031_s26 }
 0x1b1   : > { %s3026_s20 = sand.u32 1, %s3364_s10   ;;  %p3366_p13 = scmp.ne.s32.totalorder %s3365_s0, 0 }
 0x1b2   : > { %s625_s12 = scalar_lea.sflag [#allocation6], %s3026_s20 }
 0x1b3   : > { %2239 = dma.done.wait (%p3366_p13), %s625_s12, 128  }
 0x1b4   : > { %2241 = vsyncadd (%p3366_p13), %s625_s12, 4294967168  ;;  %s3367_s4 = sld [smem:[#allocation33_spill]]  ;;  %s3368_s24 = sld [smem:[#allocation43_spill]] }
 0x1ba   : > { %s3040_s2 = sand.u32 1, %s3367_s4   ;;  %p3369_p9 = scmp.ne.s32.totalorder %s3368_s24, 0 }
 0x1bb   : > { %s1513_s8 = sshll.u32 %s3040_s2, 2 }
 0x1bc   : > { %s3043_s30 = scalar_lea.vmem [#allocation7], %s1513_s8 }
 0x1bd   : > { %2243 = dma.done.wait (%p3369_p9), %s625_s12, 64  }
 0x1be   : > { %2245 = vsyncadd (%p3369_p9), %s625_s12, 4294967232  ;;  %s643_s6 = scalar_lea.sflag [#allocation9], %s3026_s20  ;;  %s645_s15 = scalar_lea.vmem [#allocation8], %s3040_s2 }
 0x1bf   : > { %2247 = dma.done.wait (%p3369_p9), %s643_s6, 528  }
 0x1c0   : > { %2249 = vsyncadd (%p3369_p9), %s643_s6, 4294966768  ;;  %s1514_s19 = sshll.u32 %s3040_s2, 5  ;;  %s660_s17 = scalar_lea.sflag [#allocation12], %s3026_s20 }
 0x1c1   : > { %s3056_s13 = scalar_lea.vmem [#allocation10], %s1514_s19  ;;  %s662_s22 = scalar_lea.vmem [#allocation11], %s3040_s2 }
 0x1c2   : > { %2251 = dma.done.wait (%p3369_p9), %s660_s17, 528  }
 0x1c3   : > { %2253 = vsyncadd (%p3369_p9), %s660_s17, 4294966768  ;;  %s3064_s0 = scalar_lea.vmem [#allocation13], %s1514_s19  ;;  %s677_s12 = scalar_lea.sflag [#allocation15], %s3026_s20 }
 0x1c4   : > { %s679_s4 = scalar_lea.vmem [#allocation14], %s3040_s2 }
 0x1c5   : > { %2255 = dma.done.wait (%p3369_p9), %s677_s12, 32  }
 0x1c6   : > { %2257 = vsyncadd (%p3369_p9), %s677_s12, 4294967264  ;;  %s687_s8 = scalar_lea.vmem [#allocation16], %s3040_s2  ;;  %s693_s6 = scalar_lea.sflag [#allocation18], %s3026_s20 }
 0x1c7   : > { %s695_s1 = scalar_lea.vmem [#allocation17], %s3040_s2 }
 0x1c8   : > { %2259 = dma.done.wait (%p3369_p9), %s693_s6, 16  }
 0x1c9   : > { %2261 = vsyncadd (%p3369_p9), %s693_s6, 4294967280  ;;  %p3370_p0 = scmp.eq.s32.totalorder %s3364_s10, 0 }
 0x1cb   : > { %2263 = dma.done.wait (%p3370_p0), [#allocation18], 256   ;;  %p3371_p5 = pmov %p3370_p0 }
 0x1cc   : > { %p3372_p1 = pmov %p3370_p0 }
 0x1cd   : > { %2265 = vsyncadd (%p3371_p5), [#allocation18], 4294967040 }
 0x1ce   : > { %2267 = dma.done.wait (%p3372_p1), [#allocation21], 16   ;;  %p3373_p3 = pmov %p3370_p0 }
 0x1cf   : > { %s3088_s20 = scalar_lea.vmem [#allocation22], %s3031_s26  ;;  %s3374_s19 = sld [smem:[#allocation36_spill]] }
 0x1d0   : > { %2269 = vsyncadd (%p3373_p3), [#allocation21], 4294967280 }
 0x1d5   : > { %p1519_p2 = scmp.ne.s32.totalorder %s3374_s19, 0 }
 0x1d6   : > { %vm789_vm0 = vcmask (!%p1519_p2), 261120   ;;  %v2346_v0 = vmov (!%p1519_p2), 0.0  }
 0x1d7   : > { %788 = sbr.rel (%p1519_p2) target bundleno = 478 (0x1de), region = 120  ;;  %790 = vst.msk [vmem:[%s3088_s20] sm:$0xff] (!%p1519_p2), %vm789_vm0, %v2346_v0 }
 0x1de PF: > { %v792_v1 = vld [vmem:[%s3043_s30] sm:$0xf]  ;;  %vm804_vm1 = vcmask 1043456   ;;  %v2347_v2 = vmov 0.0   ;;  %vm2348_vm2 = vmmov 0   ;;  %vm800_vm3 = vcmask 64512  }
 0x1df   : > { %1553 = vmatprep.subr.bf16.mxu0 %v2347_v2  ;;  %v806_v3 = vsel %vm804_vm1, %v792_v1, 0  ;;  %1555 = vmatprep.mubr.msk.bf16.mxu0 %vm2348_vm2, %v2347_v2  ;;  %v791_v4 = vld [vmem:[%s619_s5] sm:$0xf]  ;;  %v1777_v8 = vld [vmem:[%s3056_s13 + $0x10] ss:$8 sps:$4 sm:$0xff]   ;;  %v2349_v9 = vmov 0   ;;  %v919_v25 = vlaneseq }
 0x1e0   : > { %1554 = vmatpush3.bf16.msra.mxu0 %v806_v3  ;;  %v1772_v5 = vld [vmem:[%s3056_s13 + $0x4] ss:$8 sps:$4 sm:$0xff]   ;;  %v1774_v6 = vld [vmem:[%s3056_s13] ss:$8 sps:$4 sm:$0xff]   ;;  %v1775_v7 = vld [vmem:[%s3056_s13 + $0x14] ss:$8 sps:$4 sm:$0xff]   ;;  %909 = vmatprep.mubr.bf16.mxu1 %v2349_v9 }
 0x1e1   : > { %877 = vmatprep.subr.bf16.mxu1 %v1772_v5  ;;  %v1520_v10 = vld [vmem:[%s645_s15] ss:$0 sm:$0xff]  ;;  %vm873_vm4 = vcmask 261120   ;;  %v1780_v17 = vld [vmem:[%s3064_s0 + $0x4] ss:$8 sps:$4 sm:$0xff]   ;;  %s2350_s3 = smov 64  }
 0x1e2   : > { %878 = vmatpush1.bf16.msra.mxu1 %v1774_v6  ;;  %v1778_v18 = vld [vmem:[%s3064_s0] ss:$8 sps:$4 sm:$0xff]   ;;  %992 = vmatprep.subr.bf16.mxu0 %v1780_v17  ;;  %v1783_v19 = vld [vmem:[%s3064_s0 + $0x14] ss:$8 sps:$4 sm:$0xff]   ;;  %v1781_v21 = vld [vmem:[%s3064_s0 + $0x10] ss:$8 sps:$4 sm:$0xff]  }
 0x1e3   : > { %1556 = vmatmul.mubr.msk.bf16.vlgmr.msra.gmra.mrb[0].mxu0 %vm800_vm3, %v791_v4  ;;  %879 = vmatprep.subr.bf16.mxu1 %v1775_v7  ;;  %s2351_s5 = smov 96   ;;  %s2352_s10 = smov 32   ;;  %v920_v26 = vshrl.u32 %v919_v25, 7  ;;  %v1527_v41 = vld [vmem:[%s662_s22] ss:$0 sm:$0xff] }
 0x1e4   : > { %1024 = vmatprep.mubr.bf16.mxu0 %v2349_v9  ;;  %993 = vmatpush1.bf16.msra.mxu0 %v1778_v18  ;;  %v1533_v0 = vld [vmem:[%s679_s4] ss:$0 sm:$0xff]  ;;  %s3375_s24 = sld [smem:[#allocation36_spill]] }
 0x1e5   : > { %994 = vmatprep.subr.bf16.mxu0 %v1783_v19  ;;  %vm922_vm5 = vcmp.ge.s32.totalorder %v920_v26, 2  ;;  %vm932_vm6 = vcmp.ge.s32.totalorder %v920_v26, 1  ;;  %vm946_vm7 = vcmp.lt.s32.totalorder %v920_v26, 7  ;;  %vm952_vm8 = vcmp.lt.s32.totalorder %v920_v26, 6  ;;  %v1534_v18 = vld [vmem:[%s687_s8] ss:$0 sm:$0xff] }
 0x1e6   : > { %880 = vmatpush1.bf16.msra.mxu1 %v1777_v8 }
 0x1e8   : > { %995 = vmatpush1.bf16.msra.mxu0 %v1781_v21  ;;  %v1535_v21 = vld [vmem:[%s695_s1] ss:$0 sm:$0xff] }
 0x1ea   : > { %p1536_p8 = scmp.ne.s32.totalorder %s3375_s24, 3 }
 0x1eb   : > { %v1788_v26 = vld [vmem:[#allocation19] sm:$0xff] (!%p1536_p8)   ;;  %vm2354_vm11 = vmmov (!%p1536_p8), 0  }
 0x2b6   : > { %v842_v11 = vpop.f32.mrb[0].mxu0 }
 0x2b7   : > { %v3101_v12 = vadd.f32 %v1520_v10, %v842_v11  ;;  %v1557_v13 = vpop.f32.mrb[1].mxu0 }
 0x2b8   : > { %v845_v14 = vpop.f32.mrb[2].mxu0 }
 0x2b9   : > { %v848_v15 = vpack.c.bf16 %v3101_v12, %v3101_v12  ;;  %v1558_v16 = vpop.f32.mrb[3].mxu0 }
 0x2bb   : > { %1526 = vmatmul.mubr.msk.bf16.vlgmr.msra.gmra.mrb[0].mxu1 %vm873_vm4, %v848_v15 }
 0x38e   : > { %v911_v20 = vpop.f32.mrb[0].mxu1 }
 0x38f   : > { %937 = vrot.lane.b32.xlu1 %v911_v20, %s2350_s3  ;;  %928 = vrot.lane.b32.xlu0 %v911_v20, %s2351_s5  ;;  %v913_v22 = vpop.f32.mrb[1].mxu1  ;;  %v921_v27 = vrot.slane %v911_v20, 6 }
 0x390   : > { %v915_v23 = vpop.f32.mrb[2].mxu1  ;;  %v950_v34 = vrot.slane %v913_v22, 2 }
 0x391   : > { %v916_v24 = vpop.f32.mrb[3].mxu1  ;;  %v925_v30 = vsel %vm922_vm5, %v921_v27, 0.0  ;;  %v1103_v23 = vld [vmem:[%s3088_s20] sm:$0xff]  ;;  %v2353_v27 = vmov (!%p1536_p8), 0.0  }
 0x392   : > { %v954_v40 = vsel %vm952_vm8, %v950_v34, 0.0  ;;  %1559 = vmatprep.subr.bf16.mxu0 (!%p1536_p8), %v2353_v27 }
 0x393   : > { %941 = vrot.lane.b32.xlu0 %v911_v20, %s2352_s10 }
 0x401   : > { %v929_v28 = vpop.permute.xlu0 %928  ;;  %v938_v35 = vpop.permute.xlu1 %937 }
 0x402   : > { %v931_v29 = vrot.slane %v929_v28, 7  ;;  %v1789_v28 = vld [vmem:[#allocation19 + $0x8] sm:$0xff] (!%p1536_p8)  }
 0x404   : > { %v935_v31 = vsel %vm932_vm6, %v931_v29, 0.0  ;;  %v1110_v29 = vld [vmem:[%s628_s11] sm:$0xff] (!%p1536_p8) }
 0x405   : > { %v936_v32 = vadd.f32 %v935_v31, %v925_v30  ;;  %v942_v33 = vpop.permute.xlu0 %941  ;;  %v1112_v30 = vpack.c.bf16 (!%p1536_p8), %v1110_v29, %v1110_v29  ;;  %v1537_v31 = vld [vmem:[#allocation20] ss:$0 sm:$0xff] (!%p1536_p8) }
 0x406   : > { %v944_v36 = vrot.slane %v942_v33, 1 }
 0x407   : > { %v940_v37 = vadd.f32 %v938_v35, %v936_v32 }
 0x408   : > { %v948_v38 = vsel %vm946_vm7, %v944_v36, 0.0 }
 0x409   : > { %v949_v39 = vadd.f32 %v948_v38, %v940_v37 }
 0x40b   : > { %v955_v42 = vadd.f32 %v954_v40, %v949_v39 }
 0x40d   : > { %v962_v43 = vadd.f32 %v1527_v41, %v955_v42 }
 0x40f   : > { %v963_v44 = vmax.f32 %v962_v43, 0.0 }
 0x411   : > { %v964_v45 = vpack.c.bf16 %v963_v44, %v963_v44 }
 0x413   : > { %1532 = vmatmul.mubr.msk.bf16.vlgmr.msra.gmra.mrb[4].mxu0 %vm873_vm4, %v964_v45 }
 0x414   : > { %1560 = vmatpush3.bf16.msra.mxu0 (!%p1536_p8), %v1788_v26  ;;  %1563 = vmatprep.mubr.msk.bf16.mxu0 (!%p1536_p8), %vm2354_vm11, %v2353_v27 }
 0x415   : > { %1561 = vmatprep.subr.bf16.mxu0 (!%p1536_p8), %v2353_v27 }
 0x418   : > { %1562 = vmatpush3.bf16.msra.mxu0 (!%p1536_p8), %v1789_v28 }
 0x41b   : > { %1564 = vmatmul.mubr.msk.bf16.vlgmr.msra.gmra.mrb[0].mxu0 (!%p1536_p8), %vm873_vm4, %v1112_v30 }
 0x4e6   : > { %v1026_v46 = vpop.f32.mrb[4].mxu0 }
 0x4e7   : > { %1048 = vrot.lane.b32.xlu0 %v1026_v46, %s2352_s10  ;;  %1038 = vrot.lane.b32.xlu1 %v1026_v46, %s2351_s5  ;;  %v1028_v47 = vpop.f32.mrb[5].mxu0  ;;  %v1034_v50 = vrot.slane %v1026_v46, 6 }
 0x4e8   : > { %v1030_v48 = vpop.f32.mrb[6].mxu0  ;;  %v1054_v59 = vrot.slane %v1028_v47, 2 }
 0x4e9   : > { %v1031_v49 = vpop.f32.mrb[7].mxu0  ;;  %v1035_v56 = vsel %vm922_vm5, %v1034_v50, 0.0 }
 0x4ea   : > { %v1055_v63 = vsel %vm952_vm8, %v1054_v59, 0.0 }
 0x4eb   : > { %1044 = vrot.lane.b32.xlu1 %v1026_v46, %s2350_s3 }
 0x4ee   : > { %v1173_v32 = vpop.f32.mrb[0].mxu0 (!%p1536_p8) }
 0x4ef   : > { %v1174_v33 = vadd.f32 (!%p1536_p8), %v1537_v31, %v1173_v32  ;;  %v1565_v34 = vpop.f32.mrb[1].mxu0 (!%p1536_p8) }
 0x4f0   : > { %v1176_v35 = vpop.f32.mrb[2].mxu0 (!%p1536_p8) }
 0x4f1   : > { %v1541_v36 = vmul.f32 (!%p1536_p8), -1.442695, %v1174_v33  ;;  %v1566_v37 = vpop.f32.mrb[3].mxu0 (!%p1536_p8) }
 0x559   : > { %v1049_v51 = vpop.permute.xlu0 %1048  ;;  %v1039_v52 = vpop.permute.xlu1 %1038 }
 0x55a   : > { %v1041_v53 = vrot.slane %v1039_v52, 7  ;;  %v1051_v54 = vrot.slane %v1049_v51, 1 }
 0x55c   : > { %v1042_v55 = vsel %vm932_vm6, %v1041_v53, 0.0  ;;  %v1052_v61 = vsel %vm946_vm7, %v1051_v54, 0.0 }
 0x55d   : > { %v1045_v57 = vpop.permute.xlu1 %1044  ;;  %v1043_v58 = vadd.f32 %v1042_v55, %v1035_v56 }
 0x55f   : > { %v1047_v60 = vadd.f32 %v1045_v57, %v1043_v58 }
 0x561   : > { %v1053_v62 = vadd.f32 %v1052_v61, %v1047_v60 }
 0x563   : > { %v1056_v1 = vadd.f32 %v1055_v63, %v1053_v62 }
 0x565   : > { %v1063_v2 = vadd.f32 %v1533_v0, %v1056_v1 }
 0x567   : > { %v1064_v3 = vadd.f32 %v1063_v2, %v3101_v12 }
 0x569   : > { %v1065_v4 = vsel %vm873_vm4, %v1064_v3, 0.0 }
 0x56a   : > { %1066 = vadd.xlane.f32.xlu0 %v1065_v4 }
 0x5f7   : > { %v1067_v5 = vpop.xlane.xlu0 %1066 }
 0x5f8   : > { %v1069_v6 = vmul.f32 0.03125, %v1067_v5 }
 0x5fa   : > { %v1070_v7 = vsub.f32 %v1064_v3, %v1069_v6 }
 0x5fc   : > { %v1071_v8 = vmul.f32 %v1070_v7, %v1070_v7  ;;  %v1093_v19 = vmul.f32 %v1534_v18, %v1070_v7 }
 0x5fe   : > { %v1072_v9 = vsel %vm873_vm4, %v1071_v8, 0.0 }
 0x5ff   : > { %1073 = vadd.xlane.f32.xlu1 %v1072_v9 }
 0x68c   : > { %v1074_v10 = vpop.xlane.xlu1 %1073 }
 0x68d   : > { %v1076_v11 = vmul.f32 0.032258064, %v1074_v10 }
 0x68f   : > { %1784 = vrsqrt.f32 %v1076_v11  ;;  %vm1079_vm9 = vcmp.eq.f32.partialorder %v1076_v11, inf  ;;  %v1082_v12 = vand.u32 2147483648, %v1076_v11  ;;  %vm1081_vm10 = vcmp.eq.f32.partialorder %v1076_v11, 0.0 }
 0x699   : > { %v1785_v13 = vpop.eup %1784 }
 0x69a   : > { %v1078_v14 = vmul.f32 %v1785_v13, %v1076_v11 }
 0x69c   : > { %v1080_v15 = vsel %vm1079_vm9, %v1076_v11, %v1078_v14 }
 0x69d   : > { %v1083_v16 = vsel %vm1081_vm10, %v1082_v12, %v1080_v15 }
 0x69e   : > { %v1084_v17 = vadd.f32 1e-06, %v1083_v16 }
 0x6a0   : > { %1786 = vrcp.f32 %v1084_v17 }
 0x6a1   : > { %1790 = vpow2.f32 (!%p1536_p8), %v1541_v36 }
 0x6aa   : > { %v1787_v20 = vpop.eup %1786 }
 0x6ab   : > { %v1094_v22 = vmul.f32 %v1787_v20, %v1093_v19  ;;  %1109 = sbr.rel (%p1536_p8) target bundleno = 1728 (0x6c0), region = 124  ;;  %v1791_v38 = vpop.eup (!%p1536_p8), %1790 }
 0x6ac   : > { %v1182_v39 = vadd.f32 (!%p1536_p8), 1.0, %v1791_v38 }
 0x6ad   : > { %v1102_v24 = vadd.f32 %v1535_v21, %v1094_v22 }
 0x6ae   : > { %1792 = vrcp.f32 (!%p1536_p8), %v1182_v39 }
 0x6af   : > { %v1104_v25 = vadd.f32 %v1103_v23, %v1102_v24 }
 0x6b1   : > { %1105 = vst.msk [vmem:[%s3088_s20] sm:$0xff] %vm873_vm4, %v1104_v25 }
 0x6b8   : > { %v1793_v40 = vpop.eup %1792  ;;  %v1111_v41 = vld [vmem:[%s3088_s20] sm:$0xff] }
 0x6b9   : > { %v1186_v42 = vsub.f32 1.0, %v1793_v40  ;;  %v1185_v43 = vmul.f32 %v1793_v40, %v1111_v41 }
 0x6bb   : > { %v1187_v44 = vmul.f32 %v1186_v42, %v1110_v29 }
 0x6bd   : > { %v1188_v45 = vadd.f32 %v1187_v44, %v1185_v43 }
 0x6bf   : > { %1189 = vst.msk [vmem:[%s3088_s20] sm:$0xff] %vm873_vm4, %v1188_v45 }
 0x6c0 PF: > { %s3376_s1 = sld [smem:[#allocation37_spill]]  ;;  %s3377_s30 = sld [smem:[#allocation60_spill]] }
 0x6c1   : > { %s1204_s13 = sshll.u32 %s3088_s20, 4  ;;  %s3379_s22 = sand.u32 1, %s2292_s25   ;;  %s1205_s13 = int_to_ptr.vmem [resolvable:$true] %s1204_s13 }
 0x6c2   : > { %s1191_s0 = scalar_lea.sflag [#allocation4], %s3379_s22  ;;  %s2150_s12 = scalar_lea.vmem %s1205_s13, 128 }
 0x6c3   : > { %p2151_p12 = scmp.ne.s32.totalorder %s1205_s13, %s2150_s12  ;;  %p3380_p11 = scmp.ne.s32.totalorder %s3313_s21, 0 }
 0x6c4   : > { %s2355_s4 = smov [#allocation22]  }
 0x6c5   : > { %p2152_p4 = pnand %p2151_p12, %p3380_p11  ;;  %s2154_s8 = sshll.u32 %s2355_s4, 4  ;;  %s2155_s8 = int_to_ptr.vmem [resolvable:$false] %s2154_s8 }
 0x6c6   : > { %s1543_s26 = sshll.u32 %s3376_s1, 7  ;;  %s3378_s17 = smov %s3377_s30 }
 0x6c7   : > { %s3148_s15 = scalar_lea.hbm %s3377_s30, %s1543_s26  ;;  %p2153_p10 = pneg %p2152_p4 }
 0x6c8   : > { %s2156_s6 = scalar_lea.vmem %s2155_s8, 256  ;;  %p2157_p6 = scmp.lt.s32.totalorder %s1205_s13, %s2155_s8 }
 0x6c9   : > { %p2158_p7 = scmp.lt.s32.totalorder %s2156_s6, %s2150_s12 }
 0x6cb   : > { %p2159_p13 = por %p2158_p7, %p2157_p6 }
 0x6cd   : > { %p2160_p9 = pnand %p2159_p13, %p2153_p10 }
 0x6cf   : > { %2163 = shalt.err (!%p2160_p9)
}
 0x6d0   : > { %s2164_s20 = scalar_lea.hbm %s3148_s15, 128  ;;  %s2168_s5 = scalar_lea.hbm %s3378_s17, 256 }
 0x6d1   : > { %p2165_p0 = scmp.ne.s32.totalorder %s3148_s15, %s2164_s20  ;;  %p2169_p3 = scmp.lt.u32.totalorder %s3148_s15, %s3378_s17 }
 0x6d2   : > { %p2170_p2 = scmp.lt.u32.totalorder %s2168_s5, %s2164_s20  ;;  %p2172_p12 = scmp.lt.u32.totalorder %s2164_s20, %s3148_s15 }
 0x6d3   : > { %p2166_p5 = pnand %p2165_p0, %p3380_p11 }
 0x6d4   : > { %p2171_p8 = por %p2170_p2, %p2169_p3 }
 0x6d5   : > { %p2167_p1 = pneg %p2166_p5 }
 0x6d6   : > { %p2173_p4 = por %p2172_p12, %p2171_p8 }
 0x6d8   : > { %p2174_p10 = pnand %p2173_p4, %p2167_p1 }
 0x6da   : > { %2177 = shalt.err (!%p2174_p10)
}
 0x6db   : > { %1595 = dma.vmem_to_hbm [thread:$0]  (%p3380_p11), %s1205_s13, 128, %s3148_s15, %s1191_s0  }
 0x6dc PF: > { %s3381_s1 = sld [smem:[#allocation34_spill]]  ;;  %s3382_s26 = sld [smem:[#allocation45_spill]] }
 0x6dd   : > { %p1644_p6 = scmp.ge.s32.totalorder %s2328_s16, 2 }
 0x6e2   : > { %s1216_s11 = sand.u32 1, %s3381_s1   ;;  %p3383_p7 = scmp.ne.s32.totalorder %s3382_s26, 0 }
 0x6e3   : > { %s1217_s2 = scalar_lea.sflag [#allocation4], %s1216_s11 }
 0x6e4   : > { %p1636_p13 = pnand %p1644_p6, %p3383_p7 }
 0x6e6   : > { %2271 = dma.done.wait (!%p1636_p13), %s1217_s2, 128  }
 0x6e7   : > { %2273 = vsyncadd (!%p1636_p13), %s1217_s2, 4294967168  ;;  %s44_s16 = sadd.s32 1, %s2328_s16   ;;  %s3385_s21 = sld [smem:[#allocation33_spill]] }
 0x6e8   : > { %p3175_p9 = scmp.ge.s32.totalorder %s44_s16, 10   ;;  %s3386_s15 = sld [smem:[#allocation35_spill]] }
 0x6e9   : > { %s3387_s26 = sld [smem:[#allocation44_spill]]  ;;  %s3388_s13 = sld [smem:[#allocation47_spill]] }
 0x6ea   : > { %s3389_s0 = sld [smem:[#allocation38_spill]]  ;;  %s3390_s12 = sld [smem:[#allocation46_spill]] }
 0x6eb   : > { %s3391_s4 = sld [smem:[#allocation42_spill]]  ;;  %s3393_s22 = smov %s2284_s23 }
 0x6ec   : > { %s3394_s23 = smov %s2815_s27  ;;  %s3395_s24 = smov %s2292_s25 }
 0x6ed   : > { %s3397_s27 = smov %s2304_s28  ;;  %s3398_s28 = smov %s2308_s29 }
 0x6ee   : > { %s3396_s25 = smov %s3386_s15  ;;  %s3400_s30 = smov %s2320_s14 }
 0x6ef   : > { %s3399_s29 = smov %s3388_s13  ;;  %43 = sbr.rel (!%p3175_p9) target bundleno = 35 (0x23), region = 238 }
 0x6f0   : > { %s3401_s13 = smov %s3389_s0  ;;  %s3402_s14 = smov %s3390_s12 }
 0x6f1   : > { %s3403_s15 = smov %s3391_s4 }
 0x6f6   :  { %1222 = vsyncpa [#allocation3], 1 }
 0x6f7   :  { %1224 = vsyncpa [#allocation3 + $0x1], 1 }
 0x6f8   :  { %1225 = vsyncpa [#allocation6], 1 }
 0x6f9   :  { %1227 = vsyncpa [#allocation6 + $0x1], 1 }
 0x6fa   :  { %1228 = vsyncpa [#allocation9], 1 }
 0x6fb   :  { %1230 = vsyncpa [#allocation9 + $0x1], 1 }
 0x6fc   :  { %1231 = vsyncpa [#allocation12], 1 }
 0x6fd   :  { %1233 = vsyncpa [#allocation12 + $0x1], 1 }
 0x6fe   :  { %1234 = vsyncpa [#allocation15], 1 }
 0x6ff   :  { %1236 = vsyncpa [#allocation15 + $0x1], 1 }
 0x700   :  { %1237 = vsyncpa [#allocation18], 1 }
 0x701   :  { %1239 = vsyncpa [#allocation18 + $0x1], 1 }
 0x702   :  { %1240 = vsyncpa [#allocation21], 1 }
 0x703   :  { %1241 = vsyncpa [#allocation4], 1 }
 0x704   :  { %1243 = vsyncpa [#allocation4 + $0x1], 1 }

</bundles_post_ra>
